<compile_context>
chip_gen: v7x
topology: tpu7x:2x2x1
jax: 0.10.0
libtpu: 0.0.40
codegen_flags: <defaults>
</compile_context>

<pallas_src>
import jax
import jax.numpy as jnp
from jax.experimental import pallas as pl
from jax.experimental.pallas import tpu as pltpu

DILATIONS = (1, 2, 4, 8)
PAD = max(DILATIONS)            # one shared halo wide enough for every dilation


def _make_kernel(C, H, W, NB):
    P = PAD
    Hp, Wp = H + 2 * P, W + 2 * P
    HPWP = Hp * Wp
    LANES = NB * HPWP
    # Guard band so every dilated-tap shifted view is an in-bounds static
    # slice.  max |offset| = P*Wp + P; round up to a multiple of 128 so the
    # interior placement, output store and the center tap are lane-aligned.
    maxoff = P * Wp + P
    EXT = ((maxoff + 127) // 128) * 128
    EXTLEN = LANES + 2 * EXT

    def kernel(x_ref, w_ref, b_ref, m_ref, o_ref, ext_ref):
        # x_ref  : (1, C, LANES)  zero-padded images, concatenated along lanes
        # w_ref  : (36, C, C)     per-(stage, tap) weight matrices (Cout, Cin)
        # b_ref  : (4, C, 1)      per-stage biases
        # m_ref  : (1, LANES)     1.0 on interior pixels, 0.0 on halo
        # o_ref  : (1, C, LANES)  padded-grid output (wrapper slices interior)
        # ext_ref: (C, EXTLEN)    guarded flat activation planes (scratch)

        # Zero only the guard bands (interior is fully overwritten below).
        ext_ref[:, :EXT] = jnp.zeros((C, EXT), jnp.float32)
        ext_ref[:, EXT + LANES:EXTLEN] = jnp.zeros((C, EXT), jnp.float32)

        x = x_ref[0].astype(jnp.float32)            # (C, LANES), halo already 0
        interior = m_ref[...]                       # (1, LANES)
        ext_ref[:, EXT:EXT + LANES] = x             # aligned full-width store
        acc = x                                     # residual accumulator

        for s, d in enumerate(DILATIONS):
            conv = None
            # 9 dilated taps: RHS is a shifted view of the padded planes,
            # accumulated with 9 small MXU matmuls (no im2col buffer).
            for k in range(9):
                ky, kx = divmod(k, 3)
                off = (ky - 1) * d * Wp + (kx - 1) * d
                tap = ext_ref[:, EXT + off:EXT + off + LANES]   # (C, LANES)
                t = jnp.dot(w_ref[s * 9 + k], tap,
                            preferred_element_type=jnp.float32)
                conv = t if conv is None else conv + t
            # Bias + ReLU, then re-zero halo pixels so the next stage reads
            # correct zero padding (and the residual sum stays clean).
            cur = jnp.maximum(conv + b_ref[s], 0.0) * interior
            ext_ref[:, EXT:EXT + LANES] = cur       # next stage's input
            acc = acc + cur                         # residual accumulation

        o_ref[0] = acc.astype(o_ref.dtype)          # aligned full-width store

    scratch = [pltpu.VMEM((C, EXTLEN), jnp.float32)]
    return kernel, scratch, HPWP, LANES


def _split_taps(w_hwio):
    """(3,3,Cin,Cout) HWIO -> (9, Cout, Cin), tap order k = ky*3 + kx."""
    co, ci = w_hwio.shape[3], w_hwio.shape[2]
    return jnp.transpose(w_hwio, (0, 1, 3, 2)).reshape(9, co, ci)


def dblock_forward(x_nchw, params, *, images_per_step=None):
    """Fused Pallas implementation of Dblock.forward.  x_nchw: (N,C,H,W) f32."""
    N, C, H, W = x_nchw.shape
    P = PAD
    Hp, Wp = H + 2 * P, W + 2 * P

    # Images per grid step (stacked along the lane axis).  Default keeps at
    # least two grid steps so dual-TC chips (v7x) get parallel work, while
    # amortizing per-step overhead on single-TC chips for larger batches.
    if images_per_step is None:
        images_per_step = max(1, N // 2)
    NB = min(max(1, images_per_step), N)
    if N % NB != 0:
        NB = 1
    G = N // NB

    kernel, scratch, HPWP, LANES = _make_kernel(C, H, W, NB)

    # Per-(stage, tap) weight matrices and per-stage biases.
    w_all = jnp.concatenate(
        [_split_taps(params[f"w{i}"]) for i in range(1, 5)], axis=0)      # (36,C,C)
    b_all = jnp.stack([params[f"b{i}"] for i in range(1, 5)]).reshape(4, C, 1)

    # Interior mask over the padded grid, tiled over the NB lane-batched images.
    m1 = jnp.zeros((Hp, Wp), jnp.float32).at[P:P + H, P:P + W].set(1.0).reshape(-1)
    mask = jnp.tile(m1, (NB,)).reshape(1, LANES)

    # Layout plumbing (no compute moved out of the kernel): zero-pad the halo
    # on the XLA side so the kernel's pack/unpack is one aligned full-width
    # copy instead of H misaligned 16-lane row writes.
    x_pad = jnp.pad(x_nchw, ((0, 0), (0, 0), (P, P), (P, P))).reshape(N, C, HPWP)
    x_g = x_pad.reshape(G, NB, C, HPWP).transpose(0, 2, 1, 3).reshape(G, C, LANES)

    out_g = pl.pallas_call(
        kernel,
        out_shape=jax.ShapeDtypeStruct((G, C, LANES), x_nchw.dtype),
        grid=(G,),
        in_specs=[
            pl.BlockSpec((1, C, LANES), lambda g: (g, 0, 0)),
            pl.BlockSpec((36, C, C), lambda g: (0, 0, 0)),
            pl.BlockSpec((4, C, 1), lambda g: (0, 0, 0)),
            pl.BlockSpec((1, LANES), lambda g: (0, 0)),
        ],
        out_specs=pl.BlockSpec((1, C, LANES), lambda g: (g, 0, 0)),
        scratch_shapes=scratch,
        compiler_params=pltpu.CompilerParams(dimension_semantics=("parallel",)),
    )(x_g, w_all, b_all, mask)

    out_pad = out_g.reshape(G, C, NB, HPWP).transpose(0, 2, 1, 3).reshape(N, C, Hp, Wp)
    return out_pad[:, :, P:P + H, P:P + W]


# ---------------- pure-JAX reference for verification ----------------
def _conv_ref(x_nhwc, w_hwio, bias, d):
    y = jax.lax.conv_general_dilated(
        x_nhwc, w_hwio, window_strides=(1, 1),
        padding=[(d, d), (d, d)], rhs_dilation=(d, d),
        dimension_numbers=("NHWC", "HWIO", "NHWC"))
    return jax.nn.relu(y + bias)


def dblock_ref(x_nchw, params):
    x = jnp.transpose(x_nchw, (0, 2, 3, 1))
    d1 = _conv_ref(x,  params["w1"], params["b1"], 1)
    d2 = _conv_ref(d1, params["w2"], params["b2"], 2)
    d3 = _conv_ref(d2, params["w3"], params["b3"], 4)
    d4 = _conv_ref(d3, params["w4"], params["b4"], 8)
    out = x + d1 + d2 + d3 + d4
    return jnp.transpose(out, (0, 3, 1, 2))


if __name__ == "__main__":
    N, C, H, W = 2, 4, 16, 16
    key = jax.random.PRNGKey(0)
    kx, kw1, kw2, kw3, kw4 = jax.random.split(key, 5)

    x = jax.random.normal(kx, (N, C, H, W), dtype=jnp.float32)

    # Weights stored HWIO = (3, 3, Cin, Cout); biases zeroed as in the module.
    scale = 0.1
    params = {
        "w1": scale * jax.random.normal(kw1, (3, 3, C, C), jnp.float32),
        "w2": scale * jax.random.normal(kw2, (3, 3, C, C), jnp.float32),
        "w3": scale * jax.random.normal(kw3, (3, 3, C, C), jnp.float32),
        "w4": scale * jax.random.normal(kw4, (3, 3, C, C), jnp.float32),
        "b1": jnp.zeros((C,), jnp.float32),
        "b2": jnp.zeros((C,), jnp.float32),
        "b3": jnp.zeros((C,), jnp.float32),
        "b4": jnp.zeros((C,), jnp.float32),
    }

    ref = jax.block_until_ready(dblock_ref(x, params))

    # Default: one image per grid step (keeps 2 parallel steps -> v7x 2 TCs).
    out1 = jax.block_until_ready(jax.jit(dblock_forward)(x, params))
    assert out1.shape == (N, C, H, W)
    assert jnp.allclose(out1, ref, atol=1e-4, rtol=1e-4), "mismatch (per-image grid)"

    # Whole batch in one grid step (single-TC v5e/v6e configuration).
    fwd_batched = jax.jit(lambda xx, pp: dblock_forward(xx, pp, images_per_step=2))
    out2 = jax.block_until_ready(fwd_batched(x, params))
    assert jnp.allclose(out2, ref, atol=1e-4, rtol=1e-4), "mismatch (lane-batched grid)"

    print("KERNEL_OK")
</pallas_src>

<mosaic_0001>
module attributes {stable_mosaic.version = 11 : i64} {
  func.func @kernel(%arg0: i32, %arg1: memref<1x4x1024xf32, #tpu.memory_space<vmem>>, %arg2: memref<36x4x4xf32, #tpu.memory_space<vmem>>, %arg3: memref<4x4x1xf32, #tpu.memory_space<vmem>>, %arg4: memref<1x1024xf32, #tpu.memory_space<vmem>>, %arg5: memref<1x4x1024xf32, #tpu.memory_space<vmem>>, %arg6: memref<4x1792xf32, #tpu.memory_space<vmem>>) attributes {dimension_semantics = [#tpu.dimension_semantics<parallel>], iteration_bounds = array<i64: 2>, scalar_prefetch = 0 : i64, scratch_operands = 1 : i64, tpu.core_type = #tpu.core_type<tc>, window_params = [{transform_indices = @transform_0, window_bounds = array<i64: 1, 4, 1024>}, {pipeline_mode = #tpu.pipeline_mode<synchronous>, transform_indices = @transform_1, window_bounds = array<i64: 36, 4, 4>}, {pipeline_mode = #tpu.pipeline_mode<synchronous>, transform_indices = @transform_2, window_bounds = array<i64: 4, 4, 1>}, {pipeline_mode = #tpu.pipeline_mode<synchronous>, transform_indices = @transform_3, window_bounds = array<i64: 1, 1024>}, {transform_indices = @transform_4, window_bounds = array<i64: 1, 4, 1024>}]} {
    %cst = arith.constant 0.000000e+00 : f32
    %0 = vector.broadcast %cst : f32 to vector<4x384xf32>
    %c0 = arith.constant 0 : index
    %c0_0 = arith.constant 0 : index
    %1 = vector.load %arg6[%c0, %c0_0] : memref<4x1792xf32, #tpu.memory_space<vmem>>, vector<4x384xf32>
    tpu.vector_store %arg6[%c0, %c0_0], %0 {strides = array<i32>} : memref<4x1792xf32, #tpu.memory_space<vmem>>, vector<4x384xf32>,
    %cst_1 = arith.constant 0.000000e+00 : f32
    %2 = vector.broadcast %cst_1 : f32 to vector<4x384xf32>
    %c0_2 = arith.constant 0 : index
    %c1408 = arith.constant 1408 : index
    %3 = vector.load %arg6[%c0_2, %c1408] : memref<4x1792xf32, #tpu.memory_space<vmem>>, vector<4x384xf32>
    tpu.vector_store %arg6[%c0_2, %c1408], %2 {strides = array<i32>} : memref<4x1792xf32, #tpu.memory_space<vmem>>, vector<4x384xf32>,
    %c0_3 = arith.constant 0 : index
    %c0_4 = arith.constant 0 : index
    %c0_5 = arith.constant 0 : index
    %4 = vector.load %arg1[%c0_3, %c0_4, %c0_5] : memref<1x4x1024xf32, #tpu.memory_space<vmem>>, vector<1x4x1024xf32>
    %5 = vector.shape_cast %4 : vector<1x4x1024xf32> to vector<4x1024xf32>
    %c0_6 = arith.constant 0 : index
    %c0_7 = arith.constant 0 : index
    %6 = vector.load %arg4[%c0_6, %c0_7] : memref<1x1024xf32, #tpu.memory_space<vmem>>, vector<1x1024xf32>
    %c0_8 = arith.constant 0 : index
    %c384 = arith.constant 384 : index
    %7 = vector.load %arg6[%c0_8, %c384] : memref<4x1792xf32, #tpu.memory_space<vmem>>, vector<4x1024xf32>
    tpu.vector_store %arg6[%c0_8, %c384], %5 {strides = array<i32>} : memref<4x1792xf32, #tpu.memory_space<vmem>>, vector<4x1024xf32>,
    %c0_9 = arith.constant 0 : index
    %c351 = arith.constant 351 : index
    %8 = vector.load %arg6[%c0_9, %c351] : memref<4x1792xf32, #tpu.memory_space<vmem>>, vector<4x1024xf32>
    %c0_10 = arith.constant 0 : index
    %c0_11 = arith.constant 0 : index
    %c0_12 = arith.constant 0 : index
    %9 = vector.load %arg2[%c0_10, %c0_11, %c0_12] : memref<36x4x4xf32, #tpu.memory_space<vmem>>, vector<1x4x4xf32>
    %10 = vector.shape_cast %9 : vector<1x4x4xf32> to vector<4x4xf32>
    %cst_13 = arith.constant dense<0.000000e+00> : vector<4x1024xf32>
    %11 = tpu.matmul %10, %8, %cst_13 {dimension_numbers = #tpu.dot_dimension_numbers<[1], [0], [0], [1], [0, 0, 1, 1], [], []>} : vector<4x4xf32>, vector<4x1024xf32>, vector<4x1024xf32> -> vector<4x1024xf32>
    %c0_14 = arith.constant 0 : index
    %c352 = arith.constant 352 : index
    %12 = vector.load %arg6[%c0_14, %c352] : memref<4x1792xf32, #tpu.memory_space<vmem>>, vector<4x1024xf32>
    %c1 = arith.constant 1 : index
    %c0_15 = arith.constant 0 : index
    %c0_16 = arith.constant 0 : index
    %13 = vector.load %arg2[%c1, %c0_15, %c0_16] : memref<36x4x4xf32, #tpu.memory_space<vmem>>, vector<1x4x4xf32>
    %14 = vector.shape_cast %13 : vector<1x4x4xf32> to vector<4x4xf32>
    %cst_17 = arith.constant dense<0.000000e+00> : vector<4x1024xf32>
    %15 = tpu.matmul %14, %12, %cst_17 {dimension_numbers = #tpu.dot_dimension_numbers<[1], [0], [0], [1], [0, 0, 1, 1], [], []>} : vector<4x4xf32>, vector<4x1024xf32>, vector<4x1024xf32> -> vector<4x1024xf32>
    %16 = arith.addf %11, %15 : vector<4x1024xf32>
    %c0_18 = arith.constant 0 : index
    %c353 = arith.constant 353 : index
    %17 = vector.load %arg6[%c0_18, %c353] : memref<4x1792xf32, #tpu.memory_space<vmem>>, vector<4x1024xf32>
    %c2 = arith.constant 2 : index
    %c0_19 = arith.constant 0 : index
    %c0_20 = arith.constant 0 : index
    %18 = vector.load %arg2[%c2, %c0_19, %c0_20] : memref<36x4x4xf32, #tpu.memory_space<vmem>>, vector<1x4x4xf32>
    %19 = vector.shape_cast %18 : vector<1x4x4xf32> to vector<4x4xf32>
    %cst_21 = arith.constant dense<0.000000e+00> : vector<4x1024xf32>
    %20 = tpu.matmul %19, %17, %cst_21 {dimension_numbers = #tpu.dot_dimension_numbers<[1], [0], [0], [1], [0, 0, 1, 1], [], []>} : vector<4x4xf32>, vector<4x1024xf32>, vector<4x1024xf32> -> vector<4x1024xf32>
    %21 = arith.addf %16, %20 : vector<4x1024xf32>
    %c0_22 = arith.constant 0 : index
    %c383 = arith.constant 383 : index
    %22 = vector.load %arg6[%c0_22, %c383] : memref<4x1792xf32, #tpu.memory_space<vmem>>, vector<4x1024xf32>
    %c3 = arith.constant 3 : index
    %c0_23 = arith.constant 0 : index
    %c0_24 = arith.constant 0 : index
    %23 = vector.load %arg2[%c3, %c0_23, %c0_24] : memref<36x4x4xf32, #tpu.memory_space<vmem>>, vector<1x4x4xf32>
    %24 = vector.shape_cast %23 : vector<1x4x4xf32> to vector<4x4xf32>
    %cst_25 = arith.constant dense<0.000000e+00> : vector<4x1024xf32>
    %25 = tpu.matmul %24, %22, %cst_25 {dimension_numbers = #tpu.dot_dimension_numbers<[1], [0], [0], [1], [0, 0, 1, 1], [], []>} : vector<4x4xf32>, vector<4x1024xf32>, vector<4x1024xf32> -> vector<4x1024xf32>
    %26 = arith.addf %21, %25 : vector<4x1024xf32>
    %c0_26 = arith.constant 0 : index
    %c384_27 = arith.constant 384 : index
    %27 = vector.load %arg6[%c0_26, %c384_27] : memref<4x1792xf32, #tpu.memory_space<vmem>>, vector<4x1024xf32>
    %c4 = arith.constant 4 : index
    %c0_28 = arith.constant 0 : index
    %c0_29 = arith.constant 0 : index
    %28 = vector.load %arg2[%c4, %c0_28, %c0_29] : memref<36x4x4xf32, #tpu.memory_space<vmem>>, vector<1x4x4xf32>
    %29 = vector.shape_cast %28 : vector<1x4x4xf32> to vector<4x4xf32>
    %cst_30 = arith.constant dense<0.000000e+00> : vector<4x1024xf32>
    %30 = tpu.matmul %29, %27, %cst_30 {dimension_numbers = #tpu.dot_dimension_numbers<[1], [0], [0], [1], [0, 0, 1, 1], [], []>} : vector<4x4xf32>, vector<4x1024xf32>, vector<4x1024xf32> -> vector<4x1024xf32>
    %31 = arith.addf %26, %30 : vector<4x1024xf32>
    %c0_31 = arith.constant 0 : index
    %c385 = arith.constant 385 : index
    %32 = vector.load %arg6[%c0_31, %c385] : memref<4x1792xf32, #tpu.memory_space<vmem>>, vector<4x1024xf32>
    %c5 = arith.constant 5 : index
    %c0_32 = arith.constant 0 : index
    %c0_33 = arith.constant 0 : index
    %33 = vector.load %arg2[%c5, %c0_32, %c0_33] : memref<36x4x4xf32, #tpu.memory_space<vmem>>, vector<1x4x4xf32>
    %34 = vector.shape_cast %33 : vector<1x4x4xf32> to vector<4x4xf32>
    %cst_34 = arith.constant dense<0.000000e+00> : vector<4x1024xf32>
    %35 = tpu.matmul %34, %32, %cst_34 {dimension_numbers = #tpu.dot_dimension_numbers<[1], [0], [0], [1], [0, 0, 1, 1], [], []>} : vector<4x4xf32>, vector<4x1024xf32>, vector<4x1024xf32> -> vector<4x1024xf32>
    %36 = arith.addf %31, %35 : vector<4x1024xf32>
    %c0_35 = arith.constant 0 : index
    %c415 = arith.constant 415 : index
    %37 = vector.load %arg6[%c0_35, %c415] : memref<4x1792xf32, #tpu.memory_space<vmem>>, vector<4x1024xf32>
    %c6 = arith.constant 6 : index
    %c0_36 = arith.constant 0 : index
    %c0_37 = arith.constant 0 : index
    %38 = vector.load %arg2[%c6, %c0_36, %c0_37] : memref<36x4x4xf32, #tpu.memory_space<vmem>>, vector<1x4x4xf32>
    %39 = vector.shape_cast %38 : vector<1x4x4xf32> to vector<4x4xf32>
    %cst_38 = arith.constant dense<0.000000e+00> : vector<4x1024xf32>
    %40 = tpu.matmul %39, %37, %cst_38 {dimension_numbers = #tpu.dot_dimension_numbers<[1], [0], [0], [1], [0, 0, 1, 1], [], []>} : vector<4x4xf32>, vector<4x1024xf32>, vector<4x1024xf32> -> vector<4x1024xf32>
    %41 = arith.addf %36, %40 : vector<4x1024xf32>
    %c0_39 = arith.constant 0 : index
    %c416 = arith.constant 416 : index
    %42 = vector.load %arg6[%c0_39, %c416] : memref<4x1792xf32, #tpu.memory_space<vmem>>, vector<4x1024xf32>
    %c7 = arith.constant 7 : index
    %c0_40 = arith.constant 0 : index
    %c0_41 = arith.constant 0 : index
    %43 = vector.load %arg2[%c7, %c0_40, %c0_41] : memref<36x4x4xf32, #tpu.memory_space<vmem>>, vector<1x4x4xf32>
    %44 = vector.shape_cast %43 : vector<1x4x4xf32> to vector<4x4xf32>
    %cst_42 = arith.constant dense<0.000000e+00> : vector<4x1024xf32>
    %45 = tpu.matmul %44, %42, %cst_42 {dimension_numbers = #tpu.dot_dimension_numbers<[1], [0], [0], [1], [0, 0, 1, 1], [], []>} : vector<4x4xf32>, vector<4x1024xf32>, vector<4x1024xf32> -> vector<4x1024xf32>
    %46 = arith.addf %41, %45 : vector<4x1024xf32>
    %c0_43 = arith.constant 0 : index
    %c417 = arith.constant 417 : index
    %47 = vector.load %arg6[%c0_43, %c417] : memref<4x1792xf32, #tpu.memory_space<vmem>>, vector<4x1024xf32>
    %c8 = arith.constant 8 : index
    %c0_44 = arith.constant 0 : index
    %c0_45 = arith.constant 0 : index
    %48 = vector.load %arg2[%c8, %c0_44, %c0_45] : memref<36x4x4xf32, #tpu.memory_space<vmem>>, vector<1x4x4xf32>
    %49 = vector.shape_cast %48 : vector<1x4x4xf32> to vector<4x4xf32>
    %cst_46 = arith.constant dense<0.000000e+00> : vector<4x1024xf32>
    %50 = tpu.matmul %49, %47, %cst_46 {dimension_numbers = #tpu.dot_dimension_numbers<[1], [0], [0], [1], [0, 0, 1, 1], [], []>} : vector<4x4xf32>, vector<4x1024xf32>, vector<4x1024xf32> -> vector<4x1024xf32>
    %51 = arith.addf %46, %50 : vector<4x1024xf32>
    %c0_47 = arith.constant 0 : index
    %c0_48 = arith.constant 0 : index
    %c0_49 = arith.constant 0 : index
    %52 = vector.load %arg3[%c0_47, %c0_48, %c0_49] : memref<4x4x1xf32, #tpu.memory_space<vmem>>, vector<1x4x1xf32>
    %53 = vector.shape_cast %52 : vector<1x4x1xf32> to vector<4x1xf32>
    %54 = vector.broadcast %53 : vector<4x1xf32> to vector<4x1024xf32>
    %55 = arith.addf %51, %54 : vector<4x1024xf32>
    %cst_50 = arith.constant 0.000000e+00 : f32
    %56 = vector.broadcast %cst_50 : f32 to vector<4x1024xf32>
    %57 = arith.maximumf %55, %56 : vector<4x1024xf32>
    %58 = vector.broadcast %6 : vector<1x1024xf32> to vector<4x1024xf32>
    %59 = arith.mulf %57, %58 : vector<4x1024xf32>
    %c0_51 = arith.constant 0 : index
    %c384_52 = arith.constant 384 : index
    %60 = vector.load %arg6[%c0_51, %c384_52] : memref<4x1792xf32, #tpu.memory_space<vmem>>, vector<4x1024xf32>
    tpu.vector_store %arg6[%c0_51, %c384_52], %59 {strides = array<i32>} : memref<4x1792xf32, #tpu.memory_space<vmem>>, vector<4x1024xf32>,
    %61 = arith.addf %5, %59 : vector<4x1024xf32>
    %c0_53 = arith.constant 0 : index
    %c318 = arith.constant 318 : index
    %62 = vector.load %arg6[%c0_53, %c318] : memref<4x1792xf32, #tpu.memory_space<vmem>>, vector<4x1024xf32>
    %c9 = arith.constant 9 : index
    %c0_54 = arith.constant 0 : index
    %c0_55 = arith.constant 0 : index
    %63 = vector.load %arg2[%c9, %c0_54, %c0_55] : memref<36x4x4xf32, #tpu.memory_space<vmem>>, vector<1x4x4xf32>
    %64 = vector.shape_cast %63 : vector<1x4x4xf32> to vector<4x4xf32>
    %cst_56 = arith.constant dense<0.000000e+00> : vector<4x1024xf32>
    %65 = tpu.matmul %64, %62, %cst_56 {dimension_numbers = #tpu.dot_dimension_numbers<[1], [0], [0], [1], [0, 0, 1, 1], [], []>} : vector<4x4xf32>, vector<4x1024xf32>, vector<4x1024xf32> -> vector<4x1024xf32>
    %c0_57 = arith.constant 0 : index
    %c320 = arith.constant 320 : index
    %66 = vector.load %arg6[%c0_57, %c320] : memref<4x1792xf32, #tpu.memory_space<vmem>>, vector<4x1024xf32>
    %c10 = arith.constant 10 : index
    %c0_58 = arith.constant 0 : index
    %c0_59 = arith.constant 0 : index
    %67 = vector.load %arg2[%c10, %c0_58, %c0_59] : memref<36x4x4xf32, #tpu.memory_space<vmem>>, vector<1x4x4xf32>
    %68 = vector.shape_cast %67 : vector<1x4x4xf32> to vector<4x4xf32>
    %cst_60 = arith.constant dense<0.000000e+00> : vector<4x1024xf32>
    %69 = tpu.matmul %68, %66, %cst_60 {dimension_numbers = #tpu.dot_dimension_numbers<[1], [0], [0], [1], [0, 0, 1, 1], [], []>} : vector<4x4xf32>, vector<4x1024xf32>, vector<4x1024xf32> -> vector<4x1024xf32>
    %70 = arith.addf %65, %69 : vector<4x1024xf32>
    %c0_61 = arith.constant 0 : index
    %c322 = arith.constant 322 : index
    %71 = vector.load %arg6[%c0_61, %c322] : memref<4x1792xf32, #tpu.memory_space<vmem>>, vector<4x1024xf32>
    %c11 = arith.constant 11 : index
    %c0_62 = arith.constant 0 : index
    %c0_63 = arith.constant 0 : index
    %72 = vector.load %arg2[%c11, %c0_62, %c0_63] : memref<36x4x4xf32, #tpu.memory_space<vmem>>, vector<1x4x4xf32>
    %73 = vector.shape_cast %72 : vector<1x4x4xf32> to vector<4x4xf32>
    %cst_64 = arith.constant dense<0.000000e+00> : vector<4x1024xf32>
    %74 = tpu.matmul %73, %71, %cst_64 {dimension_numbers = #tpu.dot_dimension_numbers<[1], [0], [0], [1], [0, 0, 1, 1], [], []>} : vector<4x4xf32>, vector<4x1024xf32>, vector<4x1024xf32> -> vector<4x1024xf32>
    %75 = arith.addf %70, %74 : vector<4x1024xf32>
    %c0_65 = arith.constant 0 : index
    %c382 = arith.constant 382 : index
    %76 = vector.load %arg6[%c0_65, %c382] : memref<4x1792xf32, #tpu.memory_space<vmem>>, vector<4x1024xf32>
    %c12 = arith.constant 12 : index
    %c0_66 = arith.constant 0 : index
    %c0_67 = arith.constant 0 : index
    %77 = vector.load %arg2[%c12, %c0_66, %c0_67] : memref<36x4x4xf32, #tpu.memory_space<vmem>>, vector<1x4x4xf32>
    %78 = vector.shape_cast %77 : vector<1x4x4xf32> to vector<4x4xf32>
    %cst_68 = arith.constant dense<0.000000e+00> : vector<4x1024xf32>
    %79 = tpu.matmul %78, %76, %cst_68 {dimension_numbers = #tpu.dot_dimension_numbers<[1], [0], [0], [1], [0, 0, 1, 1], [], []>} : vector<4x4xf32>, vector<4x1024xf32>, vector<4x1024xf32> -> vector<4x1024xf32>
    %80 = arith.addf %75, %79 : vector<4x1024xf32>
    %c0_69 = arith.constant 0 : index
    %c384_70 = arith.constant 384 : index
    %81 = vector.load %arg6[%c0_69, %c384_70] : memref<4x1792xf32, #tpu.memory_space<vmem>>, vector<4x1024xf32>
    %c13 = arith.constant 13 : index
    %c0_71 = arith.constant 0 : index
    %c0_72 = arith.constant 0 : index
    %82 = vector.load %arg2[%c13, %c0_71, %c0_72] : memref<36x4x4xf32, #tpu.memory_space<vmem>>, vector<1x4x4xf32>
    %83 = vector.shape_cast %82 : vector<1x4x4xf32> to vector<4x4xf32>
    %cst_73 = arith.constant dense<0.000000e+00> : vector<4x1024xf32>
    %84 = tpu.matmul %83, %81, %cst_73 {dimension_numbers = #tpu.dot_dimension_numbers<[1], [0], [0], [1], [0, 0, 1, 1], [], []>} : vector<4x4xf32>, vector<4x1024xf32>, vector<4x1024xf32> -> vector<4x1024xf32>
    %85 = arith.addf %80, %84 : vector<4x1024xf32>
    %c0_74 = arith.constant 0 : index
    %c386 = arith.constant 386 : index
    %86 = vector.load %arg6[%c0_74, %c386] : memref<4x1792xf32, #tpu.memory_space<vmem>>, vector<4x1024xf32>
    %c14 = arith.constant 14 : index
    %c0_75 = arith.constant 0 : index
    %c0_76 = arith.constant 0 : index
    %87 = vector.load %arg2[%c14, %c0_75, %c0_76] : memref<36x4x4xf32, #tpu.memory_space<vmem>>, vector<1x4x4xf32>
    %88 = vector.shape_cast %87 : vector<1x4x4xf32> to vector<4x4xf32>
    %cst_77 = arith.constant dense<0.000000e+00> : vector<4x1024xf32>
    %89 = tpu.matmul %88, %86, %cst_77 {dimension_numbers = #tpu.dot_dimension_numbers<[1], [0], [0], [1], [0, 0, 1, 1], [], []>} : vector<4x4xf32>, vector<4x1024xf32>, vector<4x1024xf32> -> vector<4x1024xf32>
    %90 = arith.addf %85, %89 : vector<4x1024xf32>
    %c0_78 = arith.constant 0 : index
    %c446 = arith.constant 446 : index
    %91 = vector.load %arg6[%c0_78, %c446] : memref<4x1792xf32, #tpu.memory_space<vmem>>, vector<4x1024xf32>
    %c15 = arith.constant 15 : index
    %c0_79 = arith.constant 0 : index
    %c0_80 = arith.constant 0 : index
    %92 = vector.load %arg2[%c15, %c0_79, %c0_80] : memref<36x4x4xf32, #tpu.memory_space<vmem>>, vector<1x4x4xf32>
    %93 = vector.shape_cast %92 : vector<1x4x4xf32> to vector<4x4xf32>
    %cst_81 = arith.constant dense<0.000000e+00> : vector<4x1024xf32>
    %94 = tpu.matmul %93, %91, %cst_81 {dimension_numbers = #tpu.dot_dimension_numbers<[1], [0], [0], [1], [0, 0, 1, 1], [], []>} : vector<4x4xf32>, vector<4x1024xf32>, vector<4x1024xf32> -> vector<4x1024xf32>
    %95 = arith.addf %90, %94 : vector<4x1024xf32>
    %c0_82 = arith.constant 0 : index
    %c448 = arith.constant 448 : index
    %96 = vector.load %arg6[%c0_82, %c448] : memref<4x1792xf32, #tpu.memory_space<vmem>>, vector<4x1024xf32>
    %c16 = arith.constant 16 : index
    %c0_83 = arith.constant 0 : index
    %c0_84 = arith.constant 0 : index
    %97 = vector.load %arg2[%c16, %c0_83, %c0_84] : memref<36x4x4xf32, #tpu.memory_space<vmem>>, vector<1x4x4xf32>
    %98 = vector.shape_cast %97 : vector<1x4x4xf32> to vector<4x4xf32>
    %cst_85 = arith.constant dense<0.000000e+00> : vector<4x1024xf32>
    %99 = tpu.matmul %98, %96, %cst_85 {dimension_numbers = #tpu.dot_dimension_numbers<[1], [0], [0], [1], [0, 0, 1, 1], [], []>} : vector<4x4xf32>, vector<4x1024xf32>, vector<4x1024xf32> -> vector<4x1024xf32>
    %100 = arith.addf %95, %99 : vector<4x1024xf32>
    %c0_86 = arith.constant 0 : index
    %c450 = arith.constant 450 : index
    %101 = vector.load %arg6[%c0_86, %c450] : memref<4x1792xf32, #tpu.memory_space<vmem>>, vector<4x1024xf32>
    %c17 = arith.constant 17 : index
    %c0_87 = arith.constant 0 : index
    %c0_88 = arith.constant 0 : index
    %102 = vector.load %arg2[%c17, %c0_87, %c0_88] : memref<36x4x4xf32, #tpu.memory_space<vmem>>, vector<1x4x4xf32>
    %103 = vector.shape_cast %102 : vector<1x4x4xf32> to vector<4x4xf32>
    %cst_89 = arith.constant dense<0.000000e+00> : vector<4x1024xf32>
    %104 = tpu.matmul %103, %101, %cst_89 {dimension_numbers = #tpu.dot_dimension_numbers<[1], [0], [0], [1], [0, 0, 1, 1], [], []>} : vector<4x4xf32>, vector<4x1024xf32>, vector<4x1024xf32> -> vector<4x1024xf32>
    %105 = arith.addf %100, %104 : vector<4x1024xf32>
    %c1_90 = arith.constant 1 : index
    %c0_91 = arith.constant 0 : index
    %c0_92 = arith.constant 0 : index
    %106 = vector.load %arg3[%c1_90, %c0_91, %c0_92] : memref<4x4x1xf32, #tpu.memory_space<vmem>>, vector<1x4x1xf32>
    %107 = vector.shape_cast %106 : vector<1x4x1xf32> to vector<4x1xf32>
    %108 = vector.broadcast %107 : vector<4x1xf32> to vector<4x1024xf32>
    %109 = arith.addf %105, %108 : vector<4x1024xf32>
    %cst_93 = arith.constant 0.000000e+00 : f32
    %110 = vector.broadcast %cst_93 : f32 to vector<4x1024xf32>
    %111 = arith.maximumf %109, %110 : vector<4x1024xf32>
    %112 = vector.broadcast %6 : vector<1x1024xf32> to vector<4x1024xf32>
    %113 = arith.mulf %111, %112 : vector<4x1024xf32>
    %c0_94 = arith.constant 0 : index
    %c384_95 = arith.constant 384 : index
    %114 = vector.load %arg6[%c0_94, %c384_95] : memref<4x1792xf32, #tpu.memory_space<vmem>>, vector<4x1024xf32>
    tpu.vector_store %arg6[%c0_94, %c384_95], %113 {strides = array<i32>} : memref<4x1792xf32, #tpu.memory_space<vmem>>, vector<4x1024xf32>,
    %115 = arith.addf %61, %113 : vector<4x1024xf32>
    %c0_96 = arith.constant 0 : index
    %c252 = arith.constant 252 : index
    %116 = vector.load %arg6[%c0_96, %c252] : memref<4x1792xf32, #tpu.memory_space<vmem>>, vector<4x1024xf32>
    %c18 = arith.constant 18 : index
    %c0_97 = arith.constant 0 : index
    %c0_98 = arith.constant 0 : index
    %117 = vector.load %arg2[%c18, %c0_97, %c0_98] : memref<36x4x4xf32, #tpu.memory_space<vmem>>, vector<1x4x4xf32>
    %118 = vector.shape_cast %117 : vector<1x4x4xf32> to vector<4x4xf32>
    %cst_99 = arith.constant dense<0.000000e+00> : vector<4x1024xf32>
    %119 = tpu.matmul %118, %116, %cst_99 {dimension_numbers = #tpu.dot_dimension_numbers<[1], [0], [0], [1], [0, 0, 1, 1], [], []>} : vector<4x4xf32>, vector<4x1024xf32>, vector<4x1024xf32> -> vector<4x1024xf32>
    %c0_100 = arith.constant 0 : index
    %c256 = arith.constant 256 : index
    %120 = vector.load %arg6[%c0_100, %c256] : memref<4x1792xf32, #tpu.memory_space<vmem>>, vector<4x1024xf32>
    %c19 = arith.constant 19 : index
    %c0_101 = arith.constant 0 : index
    %c0_102 = arith.constant 0 : index
    %121 = vector.load %arg2[%c19, %c0_101, %c0_102] : memref<36x4x4xf32, #tpu.memory_space<vmem>>, vector<1x4x4xf32>
    %122 = vector.shape_cast %121 : vector<1x4x4xf32> to vector<4x4xf32>
    %cst_103 = arith.constant dense<0.000000e+00> : vector<4x1024xf32>
    %123 = tpu.matmul %122, %120, %cst_103 {dimension_numbers = #tpu.dot_dimension_numbers<[1], [0], [0], [1], [0, 0, 1, 1], [], []>} : vector<4x4xf32>, vector<4x1024xf32>, vector<4x1024xf32> -> vector<4x1024xf32>
    %124 = arith.addf %119, %123 : vector<4x1024xf32>
    %c0_104 = arith.constant 0 : index
    %c260 = arith.constant 260 : index
    %125 = vector.load %arg6[%c0_104, %c260] : memref<4x1792xf32, #tpu.memory_space<vmem>>, vector<4x1024xf32>
    %c20 = arith.constant 20 : index
    %c0_105 = arith.constant 0 : index
    %c0_106 = arith.constant 0 : index
    %126 = vector.load %arg2[%c20, %c0_105, %c0_106] : memref<36x4x4xf32, #tpu.memory_space<vmem>>, vector<1x4x4xf32>
    %127 = vector.shape_cast %126 : vector<1x4x4xf32> to vector<4x4xf32>
    %cst_107 = arith.constant dense<0.000000e+00> : vector<4x1024xf32>
    %128 = tpu.matmul %127, %125, %cst_107 {dimension_numbers = #tpu.dot_dimension_numbers<[1], [0], [0], [1], [0, 0, 1, 1], [], []>} : vector<4x4xf32>, vector<4x1024xf32>, vector<4x1024xf32> -> vector<4x1024xf32>
    %129 = arith.addf %124, %128 : vector<4x1024xf32>
    %c0_108 = arith.constant 0 : index
    %c380 = arith.constant 380 : index
    %130 = vector.load %arg6[%c0_108, %c380] : memref<4x1792xf32, #tpu.memory_space<vmem>>, vector<4x1024xf32>
    %c21 = arith.constant 21 : index
    %c0_109 = arith.constant 0 : index
    %c0_110 = arith.constant 0 : index
    %131 = vector.load %arg2[%c21, %c0_109, %c0_110] : memref<36x4x4xf32, #tpu.memory_space<vmem>>, vector<1x4x4xf32>
    %132 = vector.shape_cast %131 : vector<1x4x4xf32> to vector<4x4xf32>
    %cst_111 = arith.constant dense<0.000000e+00> : vector<4x1024xf32>
    %133 = tpu.matmul %132, %130, %cst_111 {dimension_numbers = #tpu.dot_dimension_numbers<[1], [0], [0], [1], [0, 0, 1, 1], [], []>} : vector<4x4xf32>, vector<4x1024xf32>, vector<4x1024xf32> -> vector<4x1024xf32>
    %134 = arith.addf %129, %133 : vector<4x1024xf32>
    %c0_112 = arith.constant 0 : index
    %c384_113 = arith.constant 384 : index
    %135 = vector.load %arg6[%c0_112, %c384_113] : memref<4x1792xf32, #tpu.memory_space<vmem>>, vector<4x1024xf32>
    %c22 = arith.constant 22 : index
    %c0_114 = arith.constant 0 : index
    %c0_115 = arith.constant 0 : index
    %136 = vector.load %arg2[%c22, %c0_114, %c0_115] : memref<36x4x4xf32, #tpu.memory_space<vmem>>, vector<1x4x4xf32>
    %137 = vector.shape_cast %136 : vector<1x4x4xf32> to vector<4x4xf32>
    %cst_116 = arith.constant dense<0.000000e+00> : vector<4x1024xf32>
    %138 = tpu.matmul %137, %135, %cst_116 {dimension_numbers = #tpu.dot_dimension_numbers<[1], [0], [0], [1], [0, 0, 1, 1], [], []>} : vector<4x4xf32>, vector<4x1024xf32>, vector<4x1024xf32> -> vector<4x1024xf32>
    %139 = arith.addf %134, %138 : vector<4x1024xf32>
    %c0_117 = arith.constant 0 : index
    %c388 = arith.constant 388 : index
    %140 = vector.load %arg6[%c0_117, %c388] : memref<4x1792xf32, #tpu.memory_space<vmem>>, vector<4x1024xf32>
    %c23 = arith.constant 23 : index
    %c0_118 = arith.constant 0 : index
    %c0_119 = arith.constant 0 : index
    %141 = vector.load %arg2[%c23, %c0_118, %c0_119] : memref<36x4x4xf32, #tpu.memory_space<vmem>>, vector<1x4x4xf32>
    %142 = vector.shape_cast %141 : vector<1x4x4xf32> to vector<4x4xf32>
    %cst_120 = arith.constant dense<0.000000e+00> : vector<4x1024xf32>
    %143 = tpu.matmul %142, %140, %cst_120 {dimension_numbers = #tpu.dot_dimension_numbers<[1], [0], [0], [1], [0, 0, 1, 1], [], []>} : vector<4x4xf32>, vector<4x1024xf32>, vector<4x1024xf32> -> vector<4x1024xf32>
    %144 = arith.addf %139, %143 : vector<4x1024xf32>
    %c0_121 = arith.constant 0 : index
    %c508 = arith.constant 508 : index
    %145 = vector.load %arg6[%c0_121, %c508] : memref<4x1792xf32, #tpu.memory_space<vmem>>, vector<4x1024xf32>
    %c24 = arith.constant 24 : index
    %c0_122 = arith.constant 0 : index
    %c0_123 = arith.constant 0 : index
    %146 = vector.load %arg2[%c24, %c0_122, %c0_123] : memref<36x4x4xf32, #tpu.memory_space<vmem>>, vector<1x4x4xf32>
    %147 = vector.shape_cast %146 : vector<1x4x4xf32> to vector<4x4xf32>
    %cst_124 = arith.constant dense<0.000000e+00> : vector<4x1024xf32>
    %148 = tpu.matmul %147, %145, %cst_124 {dimension_numbers = #tpu.dot_dimension_numbers<[1], [0], [0], [1], [0, 0, 1, 1], [], []>} : vector<4x4xf32>, vector<4x1024xf32>, vector<4x1024xf32> -> vector<4x1024xf32>
    %149 = arith.addf %144, %148 : vector<4x1024xf32>
    %c0_125 = arith.constant 0 : index
    %c512 = arith.constant 512 : index
    %150 = vector.load %arg6[%c0_125, %c512] : memref<4x1792xf32, #tpu.memory_space<vmem>>, vector<4x1024xf32>
    %c25 = arith.constant 25 : index
    %c0_126 = arith.constant 0 : index
    %c0_127 = arith.constant 0 : index
    %151 = vector.load %arg2[%c25, %c0_126, %c0_127] : memref<36x4x4xf32, #tpu.memory_space<vmem>>, vector<1x4x4xf32>
    %152 = vector.shape_cast %151 : vector<1x4x4xf32> to vector<4x4xf32>
    %cst_128 = arith.constant dense<0.000000e+00> : vector<4x1024xf32>
    %153 = tpu.matmul %152, %150, %cst_128 {dimension_numbers = #tpu.dot_dimension_numbers<[1], [0], [0], [1], [0, 0, 1, 1], [], []>} : vector<4x4xf32>, vector<4x1024xf32>, vector<4x1024xf32> -> vector<4x1024xf32>
    %154 = arith.addf %149, %153 : vector<4x1024xf32>
    %c0_129 = arith.constant 0 : index
    %c516 = arith.constant 516 : index
    %155 = vector.load %arg6[%c0_129, %c516] : memref<4x1792xf32, #tpu.memory_space<vmem>>, vector<4x1024xf32>
    %c26 = arith.constant 26 : index
    %c0_130 = arith.constant 0 : index
    %c0_131 = arith.constant 0 : index
    %156 = vector.load %arg2[%c26, %c0_130, %c0_131] : memref<36x4x4xf32, #tpu.memory_space<vmem>>, vector<1x4x4xf32>
    %157 = vector.shape_cast %156 : vector<1x4x4xf32> to vector<4x4xf32>
    %cst_132 = arith.constant dense<0.000000e+00> : vector<4x1024xf32>
    %158 = tpu.matmul %157, %155, %cst_132 {dimension_numbers = #tpu.dot_dimension_numbers<[1], [0], [0], [1], [0, 0, 1, 1], [], []>} : vector<4x4xf32>, vector<4x1024xf32>, vector<4x1024xf32> -> vector<4x1024xf32>
    %159 = arith.addf %154, %158 : vector<4x1024xf32>
    %c2_133 = arith.constant 2 : index
    %c0_134 = arith.constant 0 : index
    %c0_135 = arith.constant 0 : index
    %160 = vector.load %arg3[%c2_133, %c0_134, %c0_135] : memref<4x4x1xf32, #tpu.memory_space<vmem>>, vector<1x4x1xf32>
    %161 = vector.shape_cast %160 : vector<1x4x1xf32> to vector<4x1xf32>
    %162 = vector.broadcast %161 : vector<4x1xf32> to vector<4x1024xf32>
    %163 = arith.addf %159, %162 : vector<4x1024xf32>
    %cst_136 = arith.constant 0.000000e+00 : f32
    %164 = vector.broadcast %cst_136 : f32 to vector<4x1024xf32>
    %165 = arith.maximumf %163, %164 : vector<4x1024xf32>
    %166 = vector.broadcast %6 : vector<1x1024xf32> to vector<4x1024xf32>
    %167 = arith.mulf %165, %166 : vector<4x1024xf32>
    %c0_137 = arith.constant 0 : index
    %c384_138 = arith.constant 384 : index
    %168 = vector.load %arg6[%c0_137, %c384_138] : memref<4x1792xf32, #tpu.memory_space<vmem>>, vector<4x1024xf32>
    tpu.vector_store %arg6[%c0_137, %c384_138], %167 {strides = array<i32>} : memref<4x1792xf32, #tpu.memory_space<vmem>>, vector<4x1024xf32>,
    %169 = arith.addf %115, %167 : vector<4x1024xf32>
    %c0_139 = arith.constant 0 : index
    %c120 = arith.constant 120 : index
    %170 = vector.load %arg6[%c0_139, %c120] : memref<4x1792xf32, #tpu.memory_space<vmem>>, vector<4x1024xf32>
    %c27 = arith.constant 27 : index
    %c0_140 = arith.constant 0 : index
    %c0_141 = arith.constant 0 : index
    %171 = vector.load %arg2[%c27, %c0_140, %c0_141] : memref<36x4x4xf32, #tpu.memory_space<vmem>>, vector<1x4x4xf32>
    %172 = vector.shape_cast %171 : vector<1x4x4xf32> to vector<4x4xf32>
    %cst_142 = arith.constant dense<0.000000e+00> : vector<4x1024xf32>
    %173 = tpu.matmul %172, %170, %cst_142 {dimension_numbers = #tpu.dot_dimension_numbers<[1], [0], [0], [1], [0, 0, 1, 1], [], []>} : vector<4x4xf32>, vector<4x1024xf32>, vector<4x1024xf32> -> vector<4x1024xf32>
    %c0_143 = arith.constant 0 : index
    %c128 = arith.constant 128 : index
    %174 = vector.load %arg6[%c0_143, %c128] : memref<4x1792xf32, #tpu.memory_space<vmem>>, vector<4x1024xf32>
    %c28 = arith.constant 28 : index
    %c0_144 = arith.constant 0 : index
    %c0_145 = arith.constant 0 : index
    %175 = vector.load %arg2[%c28, %c0_144, %c0_145] : memref<36x4x4xf32, #tpu.memory_space<vmem>>, vector<1x4x4xf32>
    %176 = vector.shape_cast %175 : vector<1x4x4xf32> to vector<4x4xf32>
    %cst_146 = arith.constant dense<0.000000e+00> : vector<4x1024xf32>
    %177 = tpu.matmul %176, %174, %cst_146 {dimension_numbers = #tpu.dot_dimension_numbers<[1], [0], [0], [1], [0, 0, 1, 1], [], []>} : vector<4x4xf32>, vector<4x1024xf32>, vector<4x1024xf32> -> vector<4x1024xf32>
    %178 = arith.addf %173, %177 : vector<4x1024xf32>
    %c0_147 = arith.constant 0 : index
    %c136 = arith.constant 136 : index
    %179 = vector.load %arg6[%c0_147, %c136] : memref<4x1792xf32, #tpu.memory_space<vmem>>, vector<4x1024xf32>
    %c29 = arith.constant 29 : index
    %c0_148 = arith.constant 0 : index
    %c0_149 = arith.constant 0 : index
    %180 = vector.load %arg2[%c29, %c0_148, %c0_149] : memref<36x4x4xf32, #tpu.memory_space<vmem>>, vector<1x4x4xf32>
    %181 = vector.shape_cast %180 : vector<1x4x4xf32> to vector<4x4xf32>
    %cst_150 = arith.constant dense<0.000000e+00> : vector<4x1024xf32>
    %182 = tpu.matmul %181, %179, %cst_150 {dimension_numbers = #tpu.dot_dimension_numbers<[1], [0], [0], [1], [0, 0, 1, 1], [], []>} : vector<4x4xf32>, vector<4x1024xf32>, vector<4x1024xf32> -> vector<4x1024xf32>
    %183 = arith.addf %178, %182 : vector<4x1024xf32>
    %c0_151 = arith.constant 0 : index
    %c376 = arith.constant 376 : index
    %184 = vector.load %arg6[%c0_151, %c376] : memref<4x1792xf32, #tpu.memory_space<vmem>>, vector<4x1024xf32>
    %c30 = arith.constant 30 : index
    %c0_152 = arith.constant 0 : index
    %c0_153 = arith.constant 0 : index
    %185 = vector.load %arg2[%c30, %c0_152, %c0_153] : memref<36x4x4xf32, #tpu.memory_space<vmem>>, vector<1x4x4xf32>
    %186 = vector.shape_cast %185 : vector<1x4x4xf32> to vector<4x4xf32>
    %cst_154 = arith.constant dense<0.000000e+00> : vector<4x1024xf32>
    %187 = tpu.matmul %186, %184, %cst_154 {dimension_numbers = #tpu.dot_dimension_numbers<[1], [0], [0], [1], [0, 0, 1, 1], [], []>} : vector<4x4xf32>, vector<4x1024xf32>, vector<4x1024xf32> -> vector<4x1024xf32>
    %188 = arith.addf %183, %187 : vector<4x1024xf32>
    %c0_155 = arith.constant 0 : index
    %c384_156 = arith.constant 384 : index
    %189 = vector.load %arg6[%c0_155, %c384_156] : memref<4x1792xf32, #tpu.memory_space<vmem>>, vector<4x1024xf32>
    %c31 = arith.constant 31 : index
    %c0_157 = arith.constant 0 : index
    %c0_158 = arith.constant 0 : index
    %190 = vector.load %arg2[%c31, %c0_157, %c0_158] : memref<36x4x4xf32, #tpu.memory_space<vmem>>, vector<1x4x4xf32>
    %191 = vector.shape_cast %190 : vector<1x4x4xf32> to vector<4x4xf32>
    %cst_159 = arith.constant dense<0.000000e+00> : vector<4x1024xf32>
    %192 = tpu.matmul %191, %189, %cst_159 {dimension_numbers = #tpu.dot_dimension_numbers<[1], [0], [0], [1], [0, 0, 1, 1], [], []>} : vector<4x4xf32>, vector<4x1024xf32>, vector<4x1024xf32> -> vector<4x1024xf32>
    %193 = arith.addf %188, %192 : vector<4x1024xf32>
    %c0_160 = arith.constant 0 : index
    %c392 = arith.constant 392 : index
    %194 = vector.load %arg6[%c0_160, %c392] : memref<4x1792xf32, #tpu.memory_space<vmem>>, vector<4x1024xf32>
    %c32 = arith.constant 32 : index
    %c0_161 = arith.constant 0 : index
    %c0_162 = arith.constant 0 : index
    %195 = vector.load %arg2[%c32, %c0_161, %c0_162] : memref<36x4x4xf32, #tpu.memory_space<vmem>>, vector<1x4x4xf32>
    %196 = vector.shape_cast %195 : vector<1x4x4xf32> to vector<4x4xf32>
    %cst_163 = arith.constant dense<0.000000e+00> : vector<4x1024xf32>
    %197 = tpu.matmul %196, %194, %cst_163 {dimension_numbers = #tpu.dot_dimension_numbers<[1], [0], [0], [1], [0, 0, 1, 1], [], []>} : vector<4x4xf32>, vector<4x1024xf32>, vector<4x1024xf32> -> vector<4x1024xf32>
    %198 = arith.addf %193, %197 : vector<4x1024xf32>
    %c0_164 = arith.constant 0 : index
    %c632 = arith.constant 632 : index
    %199 = vector.load %arg6[%c0_164, %c632] : memref<4x1792xf32, #tpu.memory_space<vmem>>, vector<4x1024xf32>
    %c33 = arith.constant 33 : index
    %c0_165 = arith.constant 0 : index
    %c0_166 = arith.constant 0 : index
    %200 = vector.load %arg2[%c33, %c0_165, %c0_166] : memref<36x4x4xf32, #tpu.memory_space<vmem>>, vector<1x4x4xf32>
    %201 = vector.shape_cast %200 : vector<1x4x4xf32> to vector<4x4xf32>
    %cst_167 = arith.constant dense<0.000000e+00> : vector<4x1024xf32>
    %202 = tpu.matmul %201, %199, %cst_167 {dimension_numbers = #tpu.dot_dimension_numbers<[1], [0], [0], [1], [0, 0, 1, 1], [], []>} : vector<4x4xf32>, vector<4x1024xf32>, vector<4x1024xf32> -> vector<4x1024xf32>
    %203 = arith.addf %198, %202 : vector<4x1024xf32>
    %c0_168 = arith.constant 0 : index
    %c640 = arith.constant 640 : index
    %204 = vector.load %arg6[%c0_168, %c640] : memref<4x1792xf32, #tpu.memory_space<vmem>>, vector<4x1024xf32>
    %c34 = arith.constant 34 : index
    %c0_169 = arith.constant 0 : index
    %c0_170 = arith.constant 0 : index
    %205 = vector.load %arg2[%c34, %c0_169, %c0_170] : memref<36x4x4xf32, #tpu.memory_space<vmem>>, vector<1x4x4xf32>
    %206 = vector.shape_cast %205 : vector<1x4x4xf32> to vector<4x4xf32>
    %cst_171 = arith.constant dense<0.000000e+00> : vector<4x1024xf32>
    %207 = tpu.matmul %206, %204, %cst_171 {dimension_numbers = #tpu.dot_dimension_numbers<[1], [0], [0], [1], [0, 0, 1, 1], [], []>} : vector<4x4xf32>, vector<4x1024xf32>, vector<4x1024xf32> -> vector<4x1024xf32>
    %208 = arith.addf %203, %207 : vector<4x1024xf32>
    %c0_172 = arith.constant 0 : index
    %c648 = arith.constant 648 : index
    %209 = vector.load %arg6[%c0_172, %c648] : memref<4x1792xf32, #tpu.memory_space<vmem>>, vector<4x1024xf32>
    %c35 = arith.constant 35 : index
    %c0_173 = arith.constant 0 : index
    %c0_174 = arith.constant 0 : index
    %210 = vector.load %arg2[%c35, %c0_173, %c0_174] : memref<36x4x4xf32, #tpu.memory_space<vmem>>, vector<1x4x4xf32>
    %211 = vector.shape_cast %210 : vector<1x4x4xf32> to vector<4x4xf32>
    %cst_175 = arith.constant dense<0.000000e+00> : vector<4x1024xf32>
    %212 = tpu.matmul %211, %209, %cst_175 {dimension_numbers = #tpu.dot_dimension_numbers<[1], [0], [0], [1], [0, 0, 1, 1], [], []>} : vector<4x4xf32>, vector<4x1024xf32>, vector<4x1024xf32> -> vector<4x1024xf32>
    %213 = arith.addf %208, %212 : vector<4x1024xf32>
    %c3_176 = arith.constant 3 : index
    %c0_177 = arith.constant 0 : index
    %c0_178 = arith.constant 0 : index
    %214 = vector.load %arg3[%c3_176, %c0_177, %c0_178] : memref<4x4x1xf32, #tpu.memory_space<vmem>>, vector<1x4x1xf32>
    %215 = vector.shape_cast %214 : vector<1x4x1xf32> to vector<4x1xf32>
    %216 = vector.broadcast %215 : vector<4x1xf32> to vector<4x1024xf32>
    %217 = arith.addf %213, %216 : vector<4x1024xf32>
    %cst_179 = arith.constant 0.000000e+00 : f32
    %218 = vector.broadcast %cst_179 : f32 to vector<4x1024xf32>
    %219 = arith.maximumf %217, %218 : vector<4x1024xf32>
    %220 = vector.broadcast %6 : vector<1x1024xf32> to vector<4x1024xf32>
    %221 = arith.mulf %219, %220 : vector<4x1024xf32>
    %c0_180 = arith.constant 0 : index
    %c384_181 = arith.constant 384 : index
    %222 = vector.load %arg6[%c0_180, %c384_181] : memref<4x1792xf32, #tpu.memory_space<vmem>>, vector<4x1024xf32>
    tpu.vector_store %arg6[%c0_180, %c384_181], %221 {strides = array<i32>} : memref<4x1792xf32, #tpu.memory_space<vmem>>, vector<4x1024xf32>,
    %223 = arith.addf %169, %221 : vector<4x1024xf32>
    %c0_182 = arith.constant 0 : index
    %c0_183 = arith.constant 0 : index
    %c0_184 = arith.constant 0 : index
    %224 = vector.load %arg5[%c0_182, %c0_183, %c0_184] : memref<1x4x1024xf32, #tpu.memory_space<vmem>>, vector<1x4x1024xf32>
    %225 = vector.shape_cast %224 : vector<1x4x1024xf32> to vector<4x1024xf32>
    %226 = vector.shape_cast %223 : vector<4x1024xf32> to vector<1x4x1024xf32>
    tpu.vector_store %arg5[%c0_182, %c0_183, %c0_184], %226 {strides = array<i32>} : memref<1x4x1024xf32, #tpu.memory_space<vmem>>, vector<1x4x1024xf32>,
    return
  }
  func.func @transform_0(%arg0: i32) -> (i32, i32, i32) {
    %c0_i32 = arith.constant 0 : i32
    %c0_i32_0 = arith.constant 0 : i32
    %c0_i32_1 = arith.constant 0 : i32
    return %arg0, %c0_i32, %c0_i32_0 : i32, i32, i32
  }
  func.func @transform_1(%arg0: i32) -> (i32, i32, i32) {
    %c0_i32 = arith.constant 0 : i32
    %c0_i32_0 = arith.constant 0 : i32
    %c0_i32_1 = arith.constant 0 : i32
    %c0_i32_2 = arith.constant 0 : i32
    return %c0_i32, %c0_i32_0, %c0_i32_1 : i32, i32, i32
  }
  func.func @transform_2(%arg0: i32) -> (i32, i32, i32) {
    %c0_i32 = arith.constant 0 : i32
    %c0_i32_0 = arith.constant 0 : i32
    %c0_i32_1 = arith.constant 0 : i32
    %c0_i32_2 = arith.constant 0 : i32
    return %c0_i32, %c0_i32_0, %c0_i32_1 : i32, i32, i32
  }
  func.func @transform_3(%arg0: i32) -> (i32, i32) {
    %c0_i32 = arith.constant 0 : i32
    %c0_i32_0 = arith.constant 0 : i32
    %c0_i32_1 = arith.constant 0 : i32
    return %c0_i32, %c0_i32_0 : i32, i32
  }
  func.func @transform_4(%arg0: i32) -> (i32, i32, i32) {
    %c0_i32 = arith.constant 0 : i32
    %c0_i32_0 = arith.constant 0 : i32
    %c0_i32_1 = arith.constant 0 : i32
    return %arg0, %c0_i32, %c0_i32_0 : i32, i32, i32
  }
}

</mosaic_0001>

<bundles_post_ra>
// kernel: dblock_forward.1
= control target key start
LH: loop header
LB: loop body
LE: loop exit
PB: predicated region body
PF: predicated region fallthrough
CT: control target
= control target key end

     0   :  { %s13801_s15 = smov 0   ;;  %s15549_s0 = inlined_call_operand.vmem [shape: f32[2,4,1024], index: 0, kind: input, shape index: {}]   ;;  %s15550_s1 = inlined_call_operand.vmem [shape: f32[36,4,4], index: 1, kind: input, shape index: {}]   ;;  %s15551_s2 = inlined_call_operand.vmem [shape: f32[4,4,1], index: 2, kind: input, shape index: {}]   ;;  %s15552_s3 = inlined_call_operand.vmem [shape: f32[1,1024], index: 3, kind: input, shape index: {}]   ;;  %s15553_s4 = inlined_call_operand.vmem [shape: f32[2,4,1024], index: 4, kind: output, shape index: {}]  }
   0x1 LB: > { %s12939_s16 = sadd.s32 4294967295, %s13755_s15   ;;  %p12943_p0 = scmp.ge.s32.totalorder %s13755_s15, 1  ;;  %s13755_s15 = sphi %s13801_s15, %s14_s15  }
   0x2   : > { %p162_p1 = scmp.lt.s32.totalorder %s13755_s15, 3 }
   0x4   : > { %p163_p2 = pnand %p12943_p0, %p162_p1 }
   0x6   : > { %166 = sbr.rel (%p163_p2) target bundleno = 1865 (0x749), region = 36 }
   0xd   : > { %p188_p3 = scmp.lt.s32.totalorder %s12939_s16, 1  ;;  %v13757_v0 = vmov 0.0   ;;  %s13758_s21 = smov 32   ;;  %vm246_vm0 = vcmask 261120   ;;  %vm259_vm1 = vcmask 1043456   ;;  %vm255_vm2 = vcmask 31744  }
   0xe   : > { %199 = vst [vmem:[#allocation2 + $0x8] sm:$0xf] %v13757_v0  ;;  %198 = vst [vmem:[#allocation2] sm:$0xff] %v13757_v0  ;;  %411 = vmatprep.mubr.f32.mxu1 %v13757_v0  ;;  %340 = vmatprep.mubr.f32.mxu0 %v13757_v0  ;;  %s13759_s22 = smov 33   ;;  %s13760_s23 = smov 31   ;;  %vm578_vm3 = vcmask 269312  }
   0xf   : > { %200 = vst [vmem:[#allocation2 + $0x2c] sm:$0xff] %v13757_v0  ;;  %201 = vst [vmem:[#allocation2 + $0x34] sm:$0xf] %v13757_v0  ;;  %s15558_s16 = smov (!%p188_p3, %s12939_s16), 1  ;;  %s13761_s24 = smov 1   ;;  %v13766_v46 = vmov 0  }
  0x10   : > { %s13420_s17 = sshll.u32 %s15558_s16, 5  ;;  %s13762_s25 = smov 127   ;;  %v12948_v28 = vld [vmem:[%s15550_s1 + $0x4] sm:$0xf]  ;;  %13706 = vset.pattern.permute.xlu1 %v13766_v46  ;;  %13705 = vset.pattern.permute.xlu0 %v13766_v46  ;;  %v216_v52 = vld [vmem:[%s15550_s1] sm:$0xf] }
  0x11   : > { %s192_s20 = scalar_lea.vmem %s15549_s0, %s13420_s17  ;;  %s13763_s26 = smov 97   ;;  %v3339_v55 = vld [vmem:[%s15551_s2] sm:$0xf]  ;;  %vm924_vm4 = vcmask 252928   ;;  %vm1278_vm5 = vcmask 7168   ;;  %vm1957_vm6 = vcmask 1039360  }
  0x12   : > { %v13823_v1 = vld [vmem:[%s192_s20] sm:$0xff]  ;;  %v13825_v2 = vld [vmem:[%s192_s20 + $0x8] sm:$0xff]  ;;  %v13827_v3 = vld [vmem:[%s192_s20 + $0x10] sm:$0xff]  ;;  %s13764_s27 = smov 96   ;;  %s13765_s30 = smov 95   ;;  %vm2311_vm7 = vcmask 793600  }
  0x13   : > { %207 = vst [vmem:[#allocation2 + $0xc] sm:$0xff] %v13823_v1  ;;  %208 = vst [vmem:[#allocation2 + $0x14] sm:$0xff] %v13825_v2  ;;  %v13832_v4 = vld [vmem:[%s192_s20 + $0x18] sm:$0xff]  ;;  %v13837_v16 = vcombine.high %v13823_v1, %v13823_v1  ;;  %v13843_v17 = vcombine.high %v13825_v2, %v13825_v2  ;;  %v13849_v18 = vcombine.high %v13827_v3, %v13827_v3  ;;  %vm2665_vm8 = vcmask 785408   ;;  %s13768_s29 = smov 64   ;;  %s13770_s5 = smov 62  }
  0x14   : > { %209 = vst [vmem:[#allocation2 + $0x1c] sm:$0xff] %v13827_v3  ;;  %15555 = vst [vmem:[#allocation3_spill] sm:$0xff] %v13832_v4  ;;  %v13855_v19 = vcombine.high %v13832_v4, %v13832_v4  ;;  %vm3019_vm9 = vcmask 777216   ;;  %s13771_s6 = smov 2   ;;  %vm3470_vm10 = vcmask 523264   ;;  %vm3800_vm11 = vcmask 539648  }
  0x15   : > { %210 = vst [vmem:[#allocation2 + $0x24] sm:$0xff] %v13832_v4  ;;  %vm4146_vm12 = vcmask 506880   ;;  %vm4500_vm13 = vcmask 15360   ;;  %vm5179_vm14 = vcmask 1031168   ;;  %vm7309_vm15 = vcmask 1014784  }
  0x16   : > { %v1927_v20 = vld [vmem:[#allocation2 + $0x2c] sm:$0xf] }
  0x17   : > { %v2281_v21 = vld [vmem:[#allocation2 + $0x2c] sm:$0xf] }
  0x18   : > { %v2635_v31 = vld [vmem:[#allocation2 + $0x2c] sm:$0xf] }
  0x19   : > { %v2989_v45 = vld [vmem:[#allocation2 + $0x2c] sm:$0xf] }
  0x1a   : > { %v212_v5 = vld [vmem:[#allocation2 + $0x10] sm:$0xff]  ;;  %v211_v6 = vld [vmem:[#allocation2 + $0x8] sm:$0xff] }
  0x1b   : > { %232 = vrot.lane.b32.xlu0 %v212_v5, %s13758_s21  ;;  %228 = vrot.lane.b32.xlu1 %v211_v6, %s13758_s21  ;;  %v225_v7 = vcombine.high %v212_v5, %v212_v5  ;;  %v213_v8 = vld [vmem:[#allocation2 + $0x18] sm:$0xff]  ;;  %v224_v13 = vcombine.high %v211_v6, %v211_v6 }
  0x1c   : > { %v226_v9 = vcombine.high %v213_v8, %v213_v8  ;;  %v214_v10 = vld [vmem:[#allocation2 + $0x20] sm:$0xff]  ;;  %v215_v12 = vld [vmem:[#allocation2 + $0x28] sm:$0xf] }
  0x1d   : > { %v227_v11 = vcombine.high %v214_v10, %v214_v10  ;;  %v894_v14 = vld [vmem:[#allocation2 + $0x28] sm:$0xf] }
  0x1e   : > { %v1248_v15 = vld [vmem:[#allocation2 + $0x28] sm:$0xf] }
  0x1f   : > { %236 = vrot.lane.b32.xlu0 %v213_v8, %s13758_s21  ;;  %234 = vrot.lane.b32.xlu1 %v225_v7, %s13758_s21 }
  0x23   : > { %240 = vrot.lane.b32.xlu0 %v214_v10, %s13758_s21  ;;  %238 = vrot.lane.b32.xlu1 %v226_v9, %s13758_s21 }
  0x27   : > { %244 = vrot.lane.b32.xlu0 %v215_v12, %s13758_s21  ;;  %242 = vrot.lane.b32.xlu1 %v227_v11, %s13758_s21 }
  0x2b   : > { %562 = vrot.lane.b32.xlu1 %v224_v13, %s13759_s22  ;;  %230 = vrot.lane.b32.xlu0 %v224_v13, %s13758_s21 }
  0x2f   : > { %560 = vrot.lane.b32.xlu1 %v211_v6, %s13759_s22  ;;  %564 = vrot.lane.b32.xlu0 %v212_v5, %s13759_s22 }
  0x33   : > { %568 = vrot.lane.b32.xlu1 %v213_v8, %s13759_s22  ;;  %566 = vrot.lane.b32.xlu0 %v225_v7, %s13759_s22 }
  0x37   : > { %572 = vrot.lane.b32.xlu1 %v214_v10, %s13759_s22  ;;  %570 = vrot.lane.b32.xlu0 %v226_v9, %s13759_s22 }
  0x3b   : > { %576 = vrot.lane.b32.xlu1 %v215_v12, %s13759_s22  ;;  %574 = vrot.lane.b32.xlu0 %v227_v11, %s13759_s22 }
  0x3f   : > { %910 = vrot.lane.b32.xlu1 %v212_v5, %s13760_s23  ;;  %908 = vrot.lane.b32.xlu0 %v224_v13, %s13760_s23 }
  0x43   : > { %912 = vrot.lane.b32.xlu1 %v225_v7, %s13760_s23  ;;  %906 = vrot.lane.b32.xlu0 %v211_v6, %s13760_s23 }
  0x47   : > { %916 = vrot.lane.b32.xlu1 %v226_v9, %s13760_s23  ;;  %914 = vrot.lane.b32.xlu0 %v213_v8, %s13760_s23 }
  0x4b   : > { %920 = vrot.lane.b32.xlu1 %v227_v11, %s13760_s23  ;;  %918 = vrot.lane.b32.xlu0 %v214_v10, %s13760_s23 }
  0x4f   : > { %1262 = vrot.lane.b32.xlu1 %v224_v13, %s13761_s24  ;;  %922 = vrot.lane.b32.xlu0 %v894_v14, %s13760_s23 }
  0x53   : > { %1260 = vrot.lane.b32.xlu1 %v211_v6, %s13761_s24  ;;  %1264 = vrot.lane.b32.xlu0 %v212_v5, %s13761_s24 }
  0x57   : > { %1268 = vrot.lane.b32.xlu1 %v213_v8, %s13761_s24  ;;  %1266 = vrot.lane.b32.xlu0 %v225_v7, %s13761_s24  ;;  %v12973_v8 = vld [vmem:[%s15550_s1 + $0x8] sm:$0xf] }
  0x5b   : > { %1272 = vrot.lane.b32.xlu1 %v214_v10, %s13761_s24  ;;  %1270 = vrot.lane.b32.xlu0 %v226_v9, %s13761_s24 }
  0x5f   : > { %1276 = vrot.lane.b32.xlu1 %v1248_v15, %s13761_s24  ;;  %1274 = vrot.lane.b32.xlu0 %v227_v11, %s13761_s24 }
  0x63   : > { %1943 = vrot.lane.b32.xlu1 %v13825_v2, %s13762_s25  ;;  %1941 = vrot.lane.b32.xlu0 %v13837_v16, %s13762_s25 }
  0x67   : > { %1945 = vrot.lane.b32.xlu1 %v13843_v17, %s13762_s25  ;;  %1939 = vrot.lane.b32.xlu0 %v13823_v1, %s13762_s25 }
  0x6b   : > { %1949 = vrot.lane.b32.xlu1 %v13849_v18, %s13762_s25  ;;  %1947 = vrot.lane.b32.xlu0 %v13827_v3, %s13762_s25 }
  0x6f   : > { %1953 = vrot.lane.b32.xlu1 %v13855_v19, %s13762_s25  ;;  %1951 = vrot.lane.b32.xlu0 %v13832_v4, %s13762_s25 }
  0x73   : > { %2295 = vrot.lane.b32.xlu1 %v13837_v16, %s13763_s26  ;;  %1955 = vrot.lane.b32.xlu0 %v1927_v20, %s13762_s25 }
  0x77   : > { %2293 = vrot.lane.b32.xlu1 %v13823_v1, %s13763_s26  ;;  %2297 = vrot.lane.b32.xlu0 %v13825_v2, %s13763_s26 }
  0x7b   : > { %2301 = vrot.lane.b32.xlu1 %v13827_v3, %s13763_s26  ;;  %2299 = vrot.lane.b32.xlu0 %v13843_v17, %s13763_s26 }
  0x7f   : > { %2305 = vrot.lane.b32.xlu1 %v13832_v4, %s13763_s26  ;;  %2303 = vrot.lane.b32.xlu0 %v13849_v18, %s13763_s26 }
  0x83   : > { %2309 = vrot.lane.b32.xlu1 %v2281_v21, %s13763_s26  ;;  %2307 = vrot.lane.b32.xlu0 %v13855_v19, %s13763_s26  ;;  %s13767_s26 = smov 126  }
  0x87   : > { %2651 = vrot.lane.b32.xlu1 %v13825_v2, %s13764_s27  ;;  %2649 = vrot.lane.b32.xlu0 %v13837_v16, %s13764_s27 }
  0x8b   : > { %2653 = vrot.lane.b32.xlu1 %v13843_v17, %s13764_s27  ;;  %2647 = vrot.lane.b32.xlu0 %v13823_v1, %s13764_s27 }
  0x8d   : > { %v233_v22 = vpop.permute.xlu0 %232  ;;  %v229_v23 = vpop.permute.xlu1 %228 }
  0x8f   : > { %2657 = vrot.lane.b32.xlu1 %v13849_v18, %s13764_s27  ;;  %2655 = vrot.lane.b32.xlu0 %v13827_v3, %s13764_s27 }
  0x91   : > { %v237_v24 = vpop.permute.xlu0 %236  ;;  %v235_v25 = vpop.permute.xlu1 %234 }
  0x92   : > { %v250_v26 = vsel %vm246_vm0, %v235_v25, %v237_v24  ;;  %v249_v27 = vsel %vm246_vm0, %v233_v22, %v235_v25 }
  0x93   : > { %12952 = vmatprep.subr.msk.mxu1 %vm259_vm1, %v250_v26  ;;  %2661 = vrot.lane.b32.xlu1 %v13855_v19, %s13764_s27 }
  0x94   : > { %2659 = vrot.lane.b32.xlu0 %v13832_v4, %s13764_s27  ;;  %12953 = vmatpush1.msk.msra.mxu1 %vm259_vm1, %v249_v27 }
  0x95   : > { %v241_v29 = vpop.permute.xlu0 %240  ;;  %v239_v30 = vpop.permute.xlu1 %238  ;;  %12954 = vmatmul.mubr.msk.f32.vlgmr.msra.gmra.mrb[0].mxu1 %vm255_vm2, %v12948_v28 }
  0x96   : > { %553 = vmatprep.mubr.f32.mxu1 %v13757_v0  ;;  %v252_v40 = vsel %vm246_vm0, %v239_v30, %v241_v29  ;;  %v251_v41 = vsel %vm246_vm0, %v237_v24, %v239_v30  ;;  %v12986_v30 = vld [vmem:[%s15550_s1 + $0xc] sm:$0xf] }
  0x97   : > { %3003 = vrot.lane.b32.xlu1 %v13837_v16, %s13765_s30 }
  0x98   : > { %2663 = vrot.lane.b32.xlu0 %v2635_v31, %s13764_s27 }
  0x99   : > { %v245_v32 = vpop.permute.xlu0 %244  ;;  %v243_v33 = vpop.permute.xlu1 %242 }
  0x9a   : > { %v253_v34 = vsel %vm246_vm0, %v241_v29, %v243_v33  ;;  %v254_v35 = vsel %vm246_vm0, %v243_v33, %v245_v32 }
  0x9b   : > { %12958 = vmatprep.subr.msk.mxu1 %vm259_vm1, %v254_v35  ;;  %3001 = vrot.lane.b32.xlu1 %v13823_v1, %s13765_s30 }
  0x9c   : > { %3005 = vrot.lane.b32.xlu0 %v13825_v2, %s13765_s30  ;;  %12959 = vmatpush1.msk.msra.mxu1 %vm259_vm1, %v253_v34 }
  0x9d   : > { %v563_v36 = vpop.permute.xlu1 %562  ;;  %v231_v37 = vpop.permute.xlu0 %230  ;;  %12960 = vmatmul.mubr.msk.f32.vlgmr.msra.gmra.mrb[2].mxu1 %vm255_vm2, %v12948_v28 }
  0x9e   : > { %v248_v38 = vsel %vm246_vm0, %v231_v37, %v233_v22  ;;  %v247_v39 = vsel %vm246_vm0, %v229_v23, %v231_v37  ;;  %741 = vmatprep.mubr.f32.mxu1 %v13757_v0  ;;  %vm10097_vm0 = vcmask 64512  }
  0x9f   : > { %3009 = vrot.lane.b32.xlu1 %v13827_v3, %s13765_s30  ;;  %12949 = vmatprep.subr.msk.mxu0 %vm259_vm1, %v248_v38 }
  0xa0   : > { %3007 = vrot.lane.b32.xlu0 %v13843_v17, %s13765_s30  ;;  %12950 = vmatpush1.msk.msra.mxu0 %vm259_vm1, %v247_v39 }
  0xa1   : > { %v561_v42 = vpop.permute.xlu1 %560  ;;  %12951 = vmatmul.mubr.msk.f32.vlgmr.msra.gmra.mrb[0].mxu0 %vm255_vm2, %v12948_v28  ;;  %12955 = vmatprep.subr.msk.mxu0 %vm259_vm1, %v252_v40  ;;  %v565_v43 = vpop.permute.xlu0 %564 }
  0xa2   : > { %12956 = vmatpush1.msk.msra.mxu0 %vm259_vm1, %v251_v41  ;;  %v580_v44 = vsel %vm578_vm3, %v563_v36, %v565_v43  ;;  %482 = vmatprep.mubr.f32.mxu0 %v13757_v0  ;;  %v579_v47 = vsel %vm578_vm3, %v561_v42, %v563_v36 }
  0xa3   : > { %3013 = vrot.lane.b32.xlu1 %v13832_v4, %s13765_s30  ;;  %12961 = vmatprep.subr.msk.mxu0 %vm259_vm1, %v580_v44 }
  0xa4   : > { %3011 = vrot.lane.b32.xlu0 %v13849_v18, %s13765_s30 }
  0xa5   : > { %v569_v48 = vpop.permute.xlu1 %568  ;;  %12957 = vmatmul.mubr.msk.f32.vlgmr.msra.gmra.mrb[2].mxu0 %vm255_vm2, %v12948_v28  ;;  %v567_v49 = vpop.permute.xlu0 %566 }
  0xa6   : > { %12962 = vmatpush1.msk.msra.mxu0 %vm259_vm1, %v579_v47  ;;  %v581_v50 = vsel %vm578_vm3, %v565_v43, %v567_v49  ;;  %v582_v51 = vsel %vm578_vm3, %v567_v49, %v569_v48  ;;  %670 = vmatprep.mubr.f32.mxu0 %v13757_v0  ;;  %v12999_v43 = vld [vmem:[%s15550_s1 + $0x10] sm:$0xf] }
  0xa7   : > { %3017 = vrot.lane.b32.xlu1 %v2989_v45, %s13765_s30  ;;  %12964 = vmatprep.subr.msk.mxu1 %vm259_vm1, %v582_v51 }
  0xa8   : > { %3015 = vrot.lane.b32.xlu0 %v13855_v19, %s13765_s30  ;;  %12965 = vmatpush1.msk.msra.mxu1 %vm259_vm1, %v581_v50  ;;  %s13769_s30 = smov 66  }
  0xa9   : > { %v573_v53 = vpop.permute.xlu1 %572  ;;  %v571_v54 = vpop.permute.xlu0 %570  ;;  %12963 = vmatmul.mubr.msk.f32.vlgmr.msra.gmra.mrb[0].mxu0 %vm255_vm2, %v216_v52  ;;  %12966 = vmatmul.mubr.msk.f32.vlgmr.msra.gmra.mrb[0].mxu1 %vm255_vm2, %v216_v52 }
  0xaa   : > { %v583_v56 = vsel %vm578_vm3, %v569_v48, %v571_v54  ;;  %v584_v57 = vsel %vm578_vm3, %v571_v54, %v573_v53  ;;  %812 = vmatprep.mubr.f32.mxu0 %v13757_v0  ;;  %883 = vmatprep.mubr.f32.mxu1 %v13757_v0 }
  0xab   : > { %12967 = vmatprep.subr.msk.mxu0 %vm259_vm1, %v584_v57 }
  0xac   : > { %12968 = vmatpush1.msk.msra.mxu0 %vm259_vm1, %v583_v56  ;;  %3342 = vperm.xlu0 %13705, %v3339_v55  }
  0xad   : > { %v577_v58 = vpop.permute.xlu1 %576  ;;  %v575_v59 = vpop.permute.xlu0 %574  ;;  %12969 = vmatmul.mubr.msk.f32.vlgmr.msra.gmra.mrb[2].mxu0 %vm255_vm2, %v216_v52 }
  0xae   : > { %v585_v60 = vsel %vm578_vm3, %v573_v53, %v575_v59  ;;  %v586_v61 = vsel %vm578_vm3, %v575_v59, %v577_v58  ;;  %1016 = vmatprep.mubr.f32.mxu0 %v13757_v0  ;;  %vm10443_vm3 = vcmask 982016  }
  0xaf   : > { %12970 = vmatprep.subr.msk.mxu1 %vm259_vm1, %v586_v61 }
  0xb0   : > { %12971 = vmatpush1.msk.msra.mxu1 %vm259_vm1, %v585_v60 }
  0xb1   : > { %v911_v62 = vpop.permute.xlu1 %910  ;;  %v909_v63 = vpop.permute.xlu0 %908  ;;  %12972 = vmatmul.mubr.msk.f32.vlgmr.msra.gmra.mrb[2].mxu1 %vm255_vm2, %v216_v52 }
  0xb2   : > { %v926_v5 = vsel %vm924_vm4, %v909_v63, %v911_v62  ;;  %1087 = vmatprep.mubr.f32.mxu1 %v13757_v0 }
  0xb3   : > { %12974 = vmatprep.subr.msk.mxu0 %vm259_vm1, %v926_v5 }
  0xb5   : > { %v913_v6 = vpop.permute.xlu1 %912  ;;  %v907_v7 = vpop.permute.xlu0 %906 }
  0xb6   : > { %v925_v9 = vsel %vm924_vm4, %v907_v7, %v909_v63  ;;  %v927_v13 = vsel %vm924_vm4, %v911_v62, %v913_v6  ;;  %v13025_v63 = vld [vmem:[%s15550_s1 + $0x18] sm:$0xf] }
  0xb7   : > { %12975 = vmatpush1.msk.msra.mxu0 %vm259_vm1, %v925_v9 }
  0xb8   : > { %12976 = vmatmul.mubr.msk.f32.vlgmr.msra.gmra.mrb[0].mxu0 %vm255_vm2, %v12973_v8 }
  0xb9   : > { %v917_v10 = vpop.permute.xlu1 %916  ;;  %v915_v11 = vpop.permute.xlu0 %914  ;;  %1158 = vmatprep.mubr.f32.mxu0 %v13757_v0 }
  0xba   : > { %v928_v12 = vsel %vm924_vm4, %v913_v6, %v915_v11  ;;  %v929_v21 = vsel %vm924_vm4, %v915_v11, %v917_v10 }
  0xbb   : > { %12977 = vmatprep.subr.msk.mxu1 %vm259_vm1, %v928_v12 }
  0xbc   : > { %12978 = vmatpush1.msk.msra.mxu1 %vm259_vm1, %v927_v13 }
  0xbd   : > { %v921_v14 = vpop.permute.xlu1 %920  ;;  %v919_v15 = vpop.permute.xlu0 %918  ;;  %12979 = vmatmul.mubr.msk.f32.vlgmr.msra.gmra.mrb[0].mxu1 %vm255_vm2, %v12973_v8 }
  0xbe   : > { %v930_v20 = vsel %vm924_vm4, %v917_v10, %v919_v15  ;;  %1229 = vmatprep.mubr.f32.mxu1 %v13757_v0  ;;  %v931_v25 = vsel %vm924_vm4, %v919_v15, %v921_v14 }
  0xbf   : > { %12980 = vmatprep.subr.msk.mxu0 %vm259_vm1, %v930_v20 }
  0xc0   : > { %12981 = vmatpush1.msk.msra.mxu0 %vm259_vm1, %v929_v21 }
  0xc1   : > { %v1263_v22 = vpop.permute.xlu1 %1262  ;;  %v923_v23 = vpop.permute.xlu0 %922  ;;  %12982 = vmatmul.mubr.msk.f32.vlgmr.msra.gmra.mrb[2].mxu0 %vm255_vm2, %v12973_v8 }
  0xc2   : > { %v932_v24 = vsel %vm924_vm4, %v921_v14, %v923_v23  ;;  %1370 = vmatprep.mubr.f32.mxu0 %v13757_v0 }
  0xc3   : > { %12983 = vmatprep.subr.msk.mxu1 %vm259_vm1, %v932_v24 }
  0xc4   : > { %12984 = vmatpush1.msk.msra.mxu1 %vm259_vm1, %v931_v25 }
  0xc5   : > { %v1261_v26 = vpop.permute.xlu1 %1260  ;;  %v1265_v27 = vpop.permute.xlu0 %1264  ;;  %12985 = vmatmul.mubr.msk.f32.vlgmr.msra.gmra.mrb[2].mxu1 %vm255_vm2, %v12973_v8 }
  0xc6   : > { %v1279_v28 = vsel %vm1278_vm5, %v1261_v26, %v1263_v22  ;;  %v1280_v29 = vsel %vm1278_vm5, %v1263_v22, %v1265_v27  ;;  %1441 = vmatprep.mubr.f32.mxu1 %v13757_v0  ;;  %v13038_v26 = vld [vmem:[%s15550_s1 + $0x1c] sm:$0xf] }
  0xc7   : > { %12987 = vmatprep.subr.msk.mxu0 %vm259_vm1, %v1280_v29 }
  0xc8   : > { %12988 = vmatpush1.msk.msra.mxu0 %vm259_vm1, %v1279_v28 }
  0xc9   : > { %v1269_v31 = vpop.permute.xlu1 %1268  ;;  %v1267_v32 = vpop.permute.xlu0 %1266  ;;  %12989 = vmatmul.mubr.msk.f32.vlgmr.msra.gmra.mrb[0].mxu0 %vm255_vm2, %v12986_v30 }
  0xca   : > { %v1281_v33 = vsel %vm1278_vm5, %v1265_v27, %v1267_v32  ;;  %v1282_v34 = vsel %vm1278_vm5, %v1267_v32, %v1269_v31  ;;  %1512 = vmatprep.mubr.f32.mxu0 %v13757_v0 }
  0xcb   : > { %12990 = vmatprep.subr.msk.mxu1 %vm259_vm1, %v1282_v34 }
  0xcc   : > { %12991 = vmatpush1.msk.msra.mxu1 %vm259_vm1, %v1281_v33 }
  0xcd   : > { %v1273_v35 = vpop.permute.xlu1 %1272  ;;  %v1271_v36 = vpop.permute.xlu0 %1270  ;;  %12992 = vmatmul.mubr.msk.f32.vlgmr.msra.gmra.mrb[0].mxu1 %vm255_vm2, %v12986_v30 }
  0xce   : > { %v1283_v37 = vsel %vm1278_vm5, %v1269_v31, %v1271_v36  ;;  %v1284_v38 = vsel %vm1278_vm5, %v1271_v36, %v1273_v35  ;;  %1583 = vmatprep.mubr.f32.mxu1 %v13757_v0 }
  0xcf   : > { %12993 = vmatprep.subr.msk.mxu0 %vm259_vm1, %v1284_v38 }
  0xd0   : > { %12994 = vmatpush1.msk.msra.mxu0 %vm259_vm1, %v1283_v37 }
  0xd1   : > { %v1277_v39 = vpop.permute.xlu1 %1276  ;;  %v1275_v40 = vpop.permute.xlu0 %1274  ;;  %12995 = vmatmul.mubr.msk.f32.vlgmr.msra.gmra.mrb[2].mxu0 %vm255_vm2, %v12986_v30  ;;  %13000 = vmatprep.subr.msk.mxu0 %vm259_vm1, %v13837_v16 }
  0xd2   : > { %v1285_v41 = vsel %vm1278_vm5, %v1273_v35, %v1275_v40  ;;  %v1286_v42 = vsel %vm1278_vm5, %v1275_v40, %v1277_v39  ;;  %13001 = vmatpush1.msk.msra.mxu0 %vm259_vm1, %v13823_v1  ;;  %1695 = vmatprep.mubr.f32.mxu0 %v13757_v0 }
  0xd3   : > { %12996 = vmatprep.subr.msk.mxu1 %vm259_vm1, %v1286_v42  ;;  %13006 = vmatprep.subr.msk.mxu0 %vm259_vm1, %v13849_v18 }
  0xd4   : > { %12997 = vmatpush1.msk.msra.mxu1 %vm259_vm1, %v1285_v41 }
  0xd5   : > { %v1944_v16 = vpop.permute.xlu1 %1943  ;;  %v1942_v44 = vpop.permute.xlu0 %1941  ;;  %13002 = vmatmul.mubr.msk.f32.vlgmr.msra.gmra.mrb[0].mxu0 %vm255_vm2, %v12999_v43  ;;  %12998 = vmatmul.mubr.msk.f32.vlgmr.msra.gmra.mrb[2].mxu1 %vm255_vm2, %v12986_v30 }
  0xd6   : > { %13007 = vmatpush1.msk.msra.mxu0 %vm259_vm1, %v13827_v3  ;;  %v1959_v45 = vsel %vm1957_vm6, %v1942_v44, %v1944_v16  ;;  %13003 = vmatprep.subr.msk.mxu1 %vm259_vm1, %v13843_v17  ;;  %v13012_v17 = vld [vmem:[%s15550_s1 + $0x14] sm:$0xf] }
  0xd7   : > { %13013 = vmatprep.subr.msk.mxu0 %vm259_vm1, %v1959_v45  ;;  %1837 = vmatprep.mubr.f32.mxu0 %v13757_v0 }
  0xd8   : > { %13004 = vmatpush1.msk.msra.mxu1 %vm259_vm1, %v13825_v2  ;;  %1766 = vmatprep.mubr.f32.mxu1 %v13757_v0 }
  0xd9   : > { %v1946_v18 = vpop.permute.xlu1 %1945  ;;  %v1940_v46 = vpop.permute.xlu0 %1939  ;;  %13008 = vmatmul.mubr.msk.f32.vlgmr.msra.gmra.mrb[2].mxu0 %vm255_vm2, %v12999_v43  ;;  %13005 = vmatmul.mubr.msk.f32.vlgmr.msra.gmra.mrb[0].mxu1 %vm255_vm2, %v12999_v43 }
  0xda   : > { %v1958_v47 = vsel %vm1957_vm6, %v1940_v46, %v1942_v44  ;;  %13009 = vmatprep.subr.msk.mxu1 %vm259_vm1, %v13855_v19  ;;  %1908 = vmatprep.mubr.f32.mxu1 %v13757_v0  ;;  %v1960_v50 = vsel %vm1957_vm6, %v1944_v16, %v1946_v18  ;;  %v13051_v16 = vld [vmem:[%s15550_s1 + $0x20] sm:$0xf] }
  0xdb   : > { %13014 = vmatpush1.msk.msra.mxu0 %vm259_vm1, %v1958_v47  ;;  %13010 = vmatpush1.msk.msra.mxu1 %vm259_vm1, %v13832_v4 }
  0xdc   : > { %2049 = vmatprep.mubr.f32.mxu0 %v13757_v0 }
  0xdd   : > { %v1950_v48 = vpop.permute.xlu1 %1949  ;;  %v1948_v49 = vpop.permute.xlu0 %1947  ;;  %13011 = vmatmul.mubr.msk.f32.vlgmr.msra.gmra.mrb[2].mxu1 %vm255_vm2, %v12999_v43  ;;  %13015 = vmatmul.mubr.msk.f32.vlgmr.msra.gmra.mrb[0].mxu0 %vm255_vm2, %v13012_v17 }
  0xde   : > { %v1961_v19 = vsel %vm1957_vm6, %v1946_v18, %v1948_v49  ;;  %2120 = vmatprep.mubr.f32.mxu1 %v13757_v0  ;;  %2191 = vmatprep.mubr.f32.mxu0 %v13757_v0  ;;  %v1962_v54 = vsel %vm1957_vm6, %v1948_v49, %v1950_v48 }
  0xdf   : > { %13016 = vmatprep.subr.msk.mxu1 %vm259_vm1, %v1961_v19 }
  0xe0   : > { %13017 = vmatpush1.msk.msra.mxu1 %vm259_vm1, %v1960_v50 }
  0xe1   : > { %v1954_v51 = vpop.permute.xlu1 %1953  ;;  %v1952_v52 = vpop.permute.xlu0 %1951  ;;  %13018 = vmatmul.mubr.msk.f32.vlgmr.msra.gmra.mrb[0].mxu1 %vm255_vm2, %v13012_v17 }
  0xe2   : > { %v1963_v53 = vsel %vm1957_vm6, %v1950_v48, %v1952_v52  ;;  %2262 = vmatprep.mubr.f32.mxu1 %v13757_v0  ;;  %v1964_v58 = vsel %vm1957_vm6, %v1952_v52, %v1954_v51 }
  0xe3   : > { %13019 = vmatprep.subr.msk.mxu0 %vm259_vm1, %v1963_v53  ;;  %v5149_v53 = vld [vmem:[#allocation2 + $0x2c] sm:$0xf] }
  0xe4   : > { %13020 = vmatpush1.msk.msra.mxu0 %vm259_vm1, %v1962_v54  ;;  %5177 = vrot.lane.b32.xlu0 %v5149_v53, %s13767_s26  ;;  %v3362_v54 = vlaneseq }
  0xe5   : > { %v2296_v55 = vpop.permute.xlu1 %2295  ;;  %v1956_v56 = vpop.permute.xlu0 %1955  ;;  %13021 = vmatmul.mubr.msk.f32.vlgmr.msra.gmra.mrb[2].mxu0 %vm255_vm2, %v13012_v17 }
  0xe6   : > { %v1965_v57 = vsel %vm1957_vm6, %v1954_v51, %v1956_v56  ;;  %2403 = vmatprep.mubr.f32.mxu0 %v13757_v0 }
  0xe7   : > { %13022 = vmatprep.subr.msk.mxu1 %vm259_vm1, %v1965_v57 }
  0xe8   : > { %13023 = vmatpush1.msk.msra.mxu1 %vm259_vm1, %v1964_v58  ;;  %v206_v58 = vld [vmem:[%s15552_s3] sm:$0xff] }
  0xe9   : > { %v2294_v59 = vpop.permute.xlu1 %2293  ;;  %v2298_v60 = vpop.permute.xlu0 %2297  ;;  %13024 = vmatmul.mubr.msk.f32.vlgmr.msra.gmra.mrb[2].mxu1 %vm255_vm2, %v13012_v17 }
  0xea   : > { %v2312_v61 = vsel %vm2311_vm7, %v2294_v59, %v2296_v55  ;;  %v2313_v62 = vsel %vm2311_vm7, %v2296_v55, %v2298_v60  ;;  %2474 = vmatprep.mubr.f32.mxu1 %v13757_v0  ;;  %v3363_v55 = vshrl.u32 %v3362_v54, 7 }
  0xeb   : > { %13026 = vmatprep.subr.msk.mxu0 %vm259_vm1, %v2313_v62 }
  0xec   : > { %13027 = vmatpush1.msk.msra.mxu0 %vm259_vm1, %v2312_v61  ;;  %v3364_v56 = vsub.s32 0, %v3363_v55  ;;  %v3368_v59 = vsub.s32 1, %v3363_v55 }
  0xed   : > { %v2302_v5 = vpop.permute.xlu1 %2301  ;;  %v2300_v6 = vpop.permute.xlu0 %2299  ;;  %13028 = vmatmul.mubr.msk.f32.vlgmr.msra.gmra.mrb[0].mxu0 %vm255_vm2, %v13025_v63 }
  0xee   : > { %v2314_v7 = vsel %vm2311_vm7, %v2298_v60, %v2300_v6  ;;  %v2315_v8 = vsel %vm2311_vm7, %v2300_v6, %v2302_v5  ;;  %2545 = vmatprep.mubr.f32.mxu0 %v13757_v0  ;;  %v14144_v6 = vrot.slane %v206_v58, %v3368_v59 }
  0xef   : > { %13029 = vmatprep.subr.msk.mxu1 %vm259_vm1, %v2315_v8 }
  0xf0   : > { %13030 = vmatpush1.msk.msra.mxu1 %vm259_vm1, %v2314_v7  ;;  %v3376_v7 = vsub.s32 3, %v3363_v55 }
  0xf1   : > { %v2306_v9 = vpop.permute.xlu1 %2305  ;;  %v2304_v10 = vpop.permute.xlu0 %2303  ;;  %13031 = vmatmul.mubr.msk.f32.vlgmr.msra.gmra.mrb[0].mxu1 %vm255_vm2, %v13025_v63 }
  0xf2   : > { %v2316_v11 = vsel %vm2311_vm7, %v2302_v5, %v2304_v10  ;;  %v2317_v12 = vsel %vm2311_vm7, %v2304_v10, %v2306_v9  ;;  %2616 = vmatprep.mubr.f32.mxu1 %v13757_v0  ;;  %v3372_v5 = vsub.s32 2, %v3363_v55 }
  0xf3   : > { %13032 = vmatprep.subr.msk.mxu0 %vm259_vm1, %v2317_v12 }
  0xf4   : > { %13033 = vmatpush1.msk.msra.mxu0 %vm259_vm1, %v2316_v11 }
  0xf5   : > { %v2310_v13 = vpop.permute.xlu1 %2309  ;;  %v2308_v14 = vpop.permute.xlu0 %2307  ;;  %13034 = vmatmul.mubr.msk.f32.vlgmr.msra.gmra.mrb[2].mxu0 %vm255_vm2, %v13025_v63 }
  0xf6   : > { %v2318_v15 = vsel %vm2311_vm7, %v2306_v9, %v2308_v14  ;;  %v2319_v20 = vsel %vm2311_vm7, %v2308_v14, %v2310_v13  ;;  %2757 = vmatprep.mubr.f32.mxu0 %v13757_v0  ;;  %v14147_v13 = vrot.slane %v206_v58, %v3372_v5  ;;  %v5503_v5 = vld [vmem:[#allocation2 + $0x2c] sm:$0xf] }
  0xf7   : > { %13035 = vmatprep.subr.msk.mxu1 %vm259_vm1, %v2319_v20 }
  0xf8   : > { %13036 = vmatpush1.msk.msra.mxu1 %vm259_vm1, %v2318_v15  ;;  %v3380_v15 = vsub.s32 4, %v3363_v55 }
  0xf9   : > { %v2652_v21 = vpop.permute.xlu1 %2651  ;;  %v2650_v22 = vpop.permute.xlu0 %2649  ;;  %13037 = vmatmul.mubr.msk.f32.vlgmr.msra.gmra.mrb[2].mxu1 %vm255_vm2, %v13025_v63  ;;  %v14142_v63 = vrot.slane %v206_v58, %v3364_v56 }
  0xfa   : > { %v2667_v23 = vsel %vm2665_vm8, %v2650_v22, %v2652_v21  ;;  %2828 = vmatprep.mubr.f32.mxu1 %v13757_v0 }
  0xfb   : > { %13039 = vmatprep.subr.msk.mxu0 %vm259_vm1, %v2667_v23  ;;  %v3384_v23 = vsub.s32 5, %v3363_v55 }
  0xfd   : > { %v2654_v24 = vpop.permute.xlu1 %2653  ;;  %v2648_v25 = vpop.permute.xlu0 %2647 }
  0xfe   : > { %v2666_v27 = vsel %vm2665_vm8, %v2648_v25, %v2650_v22  ;;  %v2668_v31 = vsel %vm2665_vm8, %v2652_v21, %v2654_v24  ;;  %v14150_v22 = vrot.slane %v206_v58, %v3376_v7 }
  0xff   : > { %13040 = vmatpush1.msk.msra.mxu0 %vm259_vm1, %v2666_v27 }
 0x100   : > { %13041 = vmatmul.mubr.msk.f32.vlgmr.msra.gmra.mrb[0].mxu0 %vm255_vm2, %v13038_v26 }
 0x101   : > { %v2658_v28 = vpop.permute.xlu1 %2657  ;;  %v2656_v29 = vpop.permute.xlu0 %2655  ;;  %2899 = vmatprep.mubr.f32.mxu0 %v13757_v0 }
 0x102   : > { %v2669_v30 = vsel %vm2665_vm8, %v2654_v24, %v2656_v29  ;;  %v2670_v35 = vsel %vm2665_vm8, %v2656_v29, %v2658_v28 }
 0x103   : > { %13042 = vmatprep.subr.msk.mxu1 %vm259_vm1, %v2669_v30  ;;  %v14155_v30 = vrot.slane %v206_v58, %v3380_v15 }
 0x104   : > { %13043 = vmatpush1.msk.msra.mxu1 %vm259_vm1, %v2668_v31 }
 0x105   : > { %v2662_v32 = vpop.permute.xlu1 %2661  ;;  %13044 = vmatmul.mubr.msk.f32.vlgmr.msra.gmra.mrb[0].mxu1 %vm255_vm2, %v13038_v26 }
 0x106   : > { %v2660_v33 = vpop.permute.xlu0 %2659  ;;  %2970 = vmatprep.mubr.f32.mxu1 %v13757_v0 }
 0x107   : > { %v2671_v34 = vsel %vm2665_vm8, %v2658_v28, %v2660_v33  ;;  %v2672_v39 = vsel %vm2665_vm8, %v2660_v33, %v2662_v32 }
 0x108   : > { %13045 = vmatprep.subr.msk.mxu0 %vm259_vm1, %v2671_v34 }
 0x109   : > { %13046 = vmatpush1.msk.msra.mxu0 %vm259_vm1, %v2670_v35  ;;  %v3004_v36 = vpop.permute.xlu1 %3003  ;;  %v14159_v35 = vrot.slane %v206_v58, %v3384_v23 }
 0x10a   : > { %v2664_v37 = vpop.permute.xlu0 %2663  ;;  %13047 = vmatmul.mubr.msk.f32.vlgmr.msra.gmra.mrb[2].mxu0 %vm255_vm2, %v13038_v26 }
 0x10b   : > { %v2673_v38 = vsel %vm2665_vm8, %v2662_v32, %v2664_v37  ;;  %3111 = vmatprep.mubr.f32.mxu0 %v13757_v0  ;;  %v3388_v32 = vsub.s32 6, %v3363_v55 }
 0x10c   : > { %13048 = vmatprep.subr.msk.mxu1 %vm259_vm1, %v2673_v38 }
 0x10d   : > { %13049 = vmatpush1.msk.msra.mxu1 %vm259_vm1, %v2672_v39  ;;  %v3002_v40 = vpop.permute.xlu1 %3001 }
 0x10e   : > { %v3020_v41 = vsel %vm3019_vm9, %v3002_v40, %v3004_v36  ;;  %v3006_v42 = vpop.permute.xlu0 %3005  ;;  %13050 = vmatmul.mubr.msk.f32.vlgmr.msra.gmra.mrb[2].mxu1 %vm255_vm2, %v13038_v26 }
 0x10f   : > { %v3021_v43 = vsel %vm3019_vm9, %v3004_v36, %v3006_v42  ;;  %3182 = vmatprep.mubr.f32.mxu1 %v13757_v0  ;;  %v3392_v36 = vsub.s32 7, %v3363_v55 }
 0x110   : > { %13052 = vmatprep.subr.msk.mxu0 %vm259_vm1, %v3021_v43  ;;  %v14164_v43 = vrot.slane %v206_v58, %v3388_v32 }
 0x111   : > { %13053 = vmatpush1.msk.msra.mxu0 %vm259_vm1, %v3020_v41  ;;  %v3010_v44 = vpop.permute.xlu1 %3009 }
 0x112   : > { %13054 = vmatmul.mubr.msk.f32.vlgmr.msra.gmra.mrb[0].mxu0 %vm255_vm2, %v13051_v16  ;;  %v3008_v45 = vpop.permute.xlu0 %3007 }
 0x113   : > { %v3022_v18 = vsel %vm3019_vm9, %v3006_v42, %v3008_v45  ;;  %v3023_v46 = vsel %vm3019_vm9, %v3008_v45, %v3010_v44  ;;  %3253 = vmatprep.mubr.f32.mxu0 %v13757_v0 }
 0x114   : > { %13055 = vmatprep.subr.msk.mxu1 %vm259_vm1, %v3023_v46 }
 0x115   : > { %13056 = vmatpush1.msk.msra.mxu1 %vm259_vm1, %v3022_v18  ;;  %v3014_v47 = vpop.permute.xlu1 %3013  ;;  %v14170_v18 = vrot.slane %v206_v58, %v3392_v36 }
 0x116   : > { %13057 = vmatmul.mubr.msk.f32.vlgmr.msra.gmra.mrb[0].mxu1 %vm255_vm2, %v13051_v16  ;;  %v3012_v17 = vpop.permute.xlu0 %3011 }
 0x117   : > { %v3024_v48 = vsel %vm3019_vm9, %v3010_v44, %v3012_v17  ;;  %v3025_v49 = vsel %vm3019_vm9, %v3012_v17, %v3014_v47  ;;  %3324 = vmatprep.mubr.f32.mxu1 %v13757_v0 }
 0x118   : > { %13058 = vmatprep.subr.msk.mxu0 %vm259_vm1, %v3025_v49 }
 0x119   : > { %13059 = vmatpush1.msk.msra.mxu0 %vm259_vm1, %v3024_v48  ;;  %v3018_v19 = vpop.permute.xlu1 %3017 }
 0x11a   : > { %13060 = vmatmul.mubr.msk.f32.vlgmr.msra.gmra.mrb[2].mxu0 %vm255_vm2, %v13051_v16  ;;  %v3016_v50 = vpop.permute.xlu0 %3015 }
 0x11b   : > { %v3026_v51 = vsel %vm3019_vm9, %v3014_v47, %v3016_v50  ;;  %v3027_v52 = vsel %vm3019_vm9, %v3016_v50, %v3018_v19  ;;  %3562 = vmatprep.mubr.f32.mxu0 %v13757_v0 }
 0x11c   : > { %13061 = vmatprep.subr.msk.mxu1 %vm259_vm1, %v3027_v52 }
 0x11d   : > { %13062 = vmatpush1.msk.msra.mxu1 %vm259_vm1, %v3026_v51 }
 0x11e   : > { %13063 = vmatmul.mubr.msk.f32.vlgmr.msra.gmra.mrb[2].mxu1 %vm255_vm2, %v13051_v16 }
 0x11f   : > { %3633 = vmatprep.mubr.f32.mxu1 %v13757_v0 }
 0x12b   : > { %v3343_v57 = vpop.permute.xlu0 %3342 }
 0x156   : > { %v14260_v7 = vpop.permute.xlu0 %5177 }
 0x1e5   : > { %v3113_v60 = vpop.f32.mrb[0].mxu0 }
 0x1e6   : > { %v3115_v61 = vpop.f32.mrb[1].mxu0  ;;  %v3345_v62 = vadd.f32 %v3343_v57, %v3113_v60 }
 0x1e7   : > { %v3346_v0 = vadd.f32 %v3343_v57, %v3115_v61 }
 0x1e8   : > { %v3353_v8 = vmax.f32 %v3345_v62, 0.0 }
 0x1e9   : > { %v3354_v9 = vmax.f32 %v3346_v0, 0.0  ;;  %v3184_v10 = vpop.f32.mrb[0].mxu1  ;;  %v5856_v0 = vld [vmem:[#allocation2 + $0x2c] sm:$0xf] }
 0x1ea   : > { %v3402_v11 = vmul.f32 %v14142_v63, %v3353_v8  ;;  %v3347_v12 = vadd.f32 %v3343_v57, %v3184_v10  ;;  %v3186_v14 = vpop.f32.mrb[1].mxu1 }
 0x1eb   : > { %v3403_v20 = vmul.f32 %v14144_v6, %v3354_v9  ;;  %v3348_v21 = vadd.f32 %v3343_v57, %v3186_v14 }
 0x1ec   : > { %v3355_v24 = vmax.f32 %v3347_v12, 0.0 }
 0x1ed   : > { %v14152_v25 = vcombine.low %v3402_v11, %v3403_v20  ;;  %v3356_v26 = vmax.f32 %v3348_v21, 0.0  ;;  %v3255_v27 = vpop.f32.mrb[2].mxu0  ;;  %v14205_v54 = vcombine.low %v3403_v20, %v3403_v20 }
 0x1ee   : > { %v3404_v28 = vmul.f32 %v14147_v13, %v3355_v24  ;;  %v3349_v29 = vadd.f32 %v3343_v57, %v3255_v27  ;;  %v3257_v31 = vpop.f32.mrb[3].mxu0 }
 0x1ef   : > { %3426 = vst [vmem:[#allocation2 + $0xc] sm:$0xff] %v14152_v25  ;;  %v3405_v33 = vmul.f32 %v14150_v22, %v3356_v26  ;;  %v3350_v34 = vadd.f32 %v3343_v57, %v3257_v31  ;;  %v13181_v26 = vld [vmem:[%s15551_s2 + $0x4] sm:$0xf] }
 0x1f0   : > { %v3357_v37 = vmax.f32 %v3349_v29, 0.0 }
 0x1f1   : > { %v14161_v38 = vcombine.low %v3404_v28, %v3405_v33  ;;  %v3358_v39 = vmax.f32 %v3350_v34, 0.0  ;;  %v3326_v40 = vpop.f32.mrb[2].mxu1 }
 0x1f2   : > { %v3406_v41 = vmul.f32 %v14155_v30, %v3357_v37  ;;  %v3351_v42 = vadd.f32 %v3343_v57, %v3326_v40  ;;  %v3328_v16 = vpop.f32.mrb[3].mxu1  ;;  %v14330_v37 = vld [vmem:[%s15550_s1 + $0x28] sm:$0xf] }
 0x1f3   : > { %3427 = vst [vmem:[#allocation2 + $0x14] sm:$0xff] %v14161_v38  ;;  %v14168_v44 = vmul.f32 %v14159_v35, %v3358_v39  ;;  %v3352_v45 = vadd.f32 %v3343_v57, %v3328_v16  ;;  %v14214_v57 = vcombine.low %v3405_v33, %v3405_v33  ;;  %v6209_v39 = vld [vmem:[#allocation2 + $0x2c] sm:$0xf] }
 0x1f4   : > { %v3359_v46 = vmax.f32 %v3351_v42, 0.0  ;;  %v14340_v42 = vld [vmem:[#allocation2] sm:$0xff] }
 0x1f5   : > { %v14173_v47 = vcombine.low %v3406_v41, %v14168_v44  ;;  %v3360_v17 = vmax.f32 %v3352_v45, 0.0  ;;  %v14264_v8 = vcombine.low %v14168_v44, %v14168_v44 }
 0x1f6   : > { %v3408_v48 = vmul.f32 %v14164_v43, %v3359_v46  ;;  %v3434_v49 = vld [vmem:[#allocation2 + $0x8] sm:$0xff] }
 0x1f7   : > { %3428 = vst [vmem:[#allocation2 + $0x1c] sm:$0xff] %v14173_v47  ;;  %v14178_v19 = vmul.f32 %v14170_v18, %v3360_v17  ;;  %3452 = vrot.lane.b32.xlu0 %v3434_v49, %s13768_s29  ;;  %v4124_v53 = vcombine.high %v3434_v49, %v3434_v49 }
 0x1f9   : > { %v14182_v50 = vcombine.low %v3408_v48, %v14178_v19  ;;  %v14272_v9 = vcombine.low %v14178_v19, %v14178_v19 }
 0x1fa   : > { %v3435_v51 = vld [vmem:[#allocation2 + $0x10] sm:$0xff] }
 0x1fb   : > { %3429 = vst [vmem:[#allocation2 + $0x24] sm:$0xff] %v14182_v50  ;;  %3456 = vrot.lane.b32.xlu1 %v3435_v51, %s13768_s29  ;;  %3786 = vrot.lane.b32.xlu0 %v3435_v51, %s13769_s30  ;;  %v3449_v52 = vcombine.high %v3435_v51, %v3435_v51 }
 0x1fe   : > { %v3436_v55 = vld [vmem:[#allocation2 + $0x18] sm:$0xff] }
 0x1ff   : > { %3782 = vrot.lane.b32.xlu1 %v3434_v49, %s13769_s30  ;;  %4128 = vrot.lane.b32.xlu0 %v3434_v49, %s13770_s5  ;;  %v3450_v60 = vcombine.high %v3436_v55, %v3436_v55 }
 0x202   : > { %v3437_v56 = vld [vmem:[#allocation2 + $0x20] sm:$0xff]  ;;  %v3438_v58 = vld [vmem:[#allocation2 + $0x28] sm:$0xf] }
 0x203   : > { %4132 = vrot.lane.b32.xlu1 %v3435_v51, %s13770_s5  ;;  %4486 = vrot.lane.b32.xlu0 %v3435_v51, %s13771_s6  ;;  %v4116_v59 = vld [vmem:[#allocation2 + $0x28] sm:$0xf]  ;;  %v3451_v61 = vcombine.high %v3437_v56, %v3437_v56 }
 0x204   : > { %v4470_v62 = vld [vmem:[#allocation2 + $0x28] sm:$0xf] }
 0x207   : > { %4482 = vrot.lane.b32.xlu1 %v3434_v49, %s13771_s6  ;;  %5161 = vrot.lane.b32.xlu0 %v14152_v25, %s13767_s26 }
 0x20b   : > { %5165 = vrot.lane.b32.xlu1 %v14161_v38, %s13767_s26  ;;  %5519 = vrot.lane.b32.xlu0 %v14161_v38, %s13769_s30 }
 0x20f   : > { %5515 = vrot.lane.b32.xlu1 %v14152_v25, %s13769_s30  ;;  %3788 = vrot.lane.b32.xlu0 %v3449_v52, %s13769_s30 }
 0x213   : > { %4130 = vrot.lane.b32.xlu0 %v4124_v53, %s13770_s5  ;;  %3454 = vrot.lane.b32.xlu1 %v4124_v53, %s13768_s29 }
 0x217   : > { %4488 = vrot.lane.b32.xlu0 %v3449_v52, %s13771_s6  ;;  %3458 = vrot.lane.b32.xlu1 %v3449_v52, %s13768_s29 }
 0x21b   : > { %5163 = vrot.lane.b32.xlu0 %v14205_v54, %s13767_s26  ;;  %3784 = vrot.lane.b32.xlu1 %v4124_v53, %s13769_s30 }
 0x21f   : > { %3460 = vrot.lane.b32.xlu0 %v3436_v55, %s13768_s29  ;;  %4134 = vrot.lane.b32.xlu1 %v3449_v52, %s13770_s5 }
 0x223   : > { %3464 = vrot.lane.b32.xlu0 %v3437_v56, %s13768_s29  ;;  %4484 = vrot.lane.b32.xlu1 %v4124_v53, %s13771_s6 }
 0x227   : > { %3468 = vrot.lane.b32.xlu0 %v3438_v58, %s13768_s29  ;;  %5167 = vrot.lane.b32.xlu1 %v14214_v57, %s13767_s26 }
 0x22b   : > { %4136 = vrot.lane.b32.xlu0 %v3436_v55, %s13770_s5  ;;  %5517 = vrot.lane.b32.xlu1 %v14205_v54, %s13769_s30 }
 0x22f   : > { %4140 = vrot.lane.b32.xlu0 %v3437_v56, %s13770_s5  ;;  %3790 = vrot.lane.b32.xlu1 %v3436_v55, %s13769_s30 }
 0x233   : > { %4144 = vrot.lane.b32.xlu0 %v4116_v59, %s13770_s5  ;;  %3794 = vrot.lane.b32.xlu1 %v3437_v56, %s13769_s30 }
 0x237   : > { %5169 = vrot.lane.b32.xlu0 %v14173_v47, %s13767_s26  ;;  %3798 = vrot.lane.b32.xlu1 %v3438_v58, %s13769_s30 }
 0x23b   : > { %5173 = vrot.lane.b32.xlu0 %v14182_v50, %s13767_s26  ;;  %4490 = vrot.lane.b32.xlu1 %v3436_v55, %s13771_s6 }
 0x23f   : > { %3792 = vrot.lane.b32.xlu0 %v3450_v60, %s13769_s30  ;;  %4494 = vrot.lane.b32.xlu1 %v3437_v56, %s13771_s6 }
 0x243   : > { %3796 = vrot.lane.b32.xlu0 %v3451_v61, %s13769_s30  ;;  %4498 = vrot.lane.b32.xlu1 %v4470_v62, %s13771_s6 }
 0x247   : > { %5521 = vrot.lane.b32.xlu0 %v14214_v57, %s13769_s30  ;;  %3462 = vrot.lane.b32.xlu1 %v3450_v60, %s13768_s29 }
 0x24b   : > { %5870 = vrot.lane.b32.xlu0 %v14205_v54, %s13768_s29  ;;  %3466 = vrot.lane.b32.xlu1 %v3451_v61, %s13768_s29 }
 0x24f   : > { %4492 = vrot.lane.b32.xlu0 %v3450_v60, %s13771_s6  ;;  %5523 = vrot.lane.b32.xlu1 %v14173_v47, %s13769_s30 }
 0x253   : > { %4496 = vrot.lane.b32.xlu0 %v3451_v61, %s13771_s6  ;;  %5527 = vrot.lane.b32.xlu1 %v14182_v50, %s13769_s30 }
 0x257   : > { %5868 = vrot.lane.b32.xlu0 %v14152_v25, %s13768_s29  ;;  %4138 = vrot.lane.b32.xlu1 %v3450_v60, %s13770_s5 }
 0x25b   : > { %5876 = vrot.lane.b32.xlu0 %v14173_v47, %s13768_s29  ;;  %4142 = vrot.lane.b32.xlu1 %v3451_v61, %s13770_s5 }
 0x25f   : > { %5880 = vrot.lane.b32.xlu0 %v14182_v50, %s13768_s29  ;;  %5531 = vrot.lane.b32.xlu1 %v5503_v5, %s13769_s30 }
 0x263   : > { %5884 = vrot.lane.b32.xlu0 %v5856_v0, %s13768_s29  ;;  %5872 = vrot.lane.b32.xlu1 %v14161_v38, %s13768_s29 }
 0x267   : > { %5525 = vrot.lane.b32.xlu0 %v14264_v8, %s13769_s30  ;;  %5874 = vrot.lane.b32.xlu1 %v14214_v57, %s13768_s29 }
 0x269   : > { %v3453_v10 = vpop.permute.xlu0 %3452 }
 0x26b   : > { %5529 = vrot.lane.b32.xlu0 %v14272_v9, %s13769_s30  ;;  %6223 = vrot.lane.b32.xlu1 %v14205_v54, %s13770_s5  ;;  %s13772_s30 = smov 4  }
 0x26d   : > { %v3457_v11 = vpop.permute.xlu1 %3456  ;;  %v14278_v12 = vpop.permute.xlu0 %3786 }
 0x26f   : > { %6225 = vrot.lane.b32.xlu0 %v14161_v38, %s13770_s5  ;;  %5171 = vrot.lane.b32.xlu1 %v14264_v8, %s13767_s26 }
 0x271   : > { %v14284_v14 = vpop.permute.xlu1 %3782  ;;  %v14286_v15 = vpop.permute.xlu0 %4128 }
 0x273   : > { %6227 = vrot.lane.b32.xlu0 %v14214_v57, %s13770_s5  ;;  %5175 = vrot.lane.b32.xlu1 %v14272_v9, %s13767_s26 }
 0x275   : > { %v14292_v20 = vpop.permute.xlu1 %4132  ;;  %v14294_v21 = vpop.permute.xlu0 %4486 }
 0x277   : > { %6231 = vrot.lane.b32.xlu0 %v14264_v8, %s13770_s5  ;;  %6221 = vrot.lane.b32.xlu1 %v14152_v25, %s13770_s5 }
 0x279   : > { %v14300_v23 = vpop.permute.xlu1 %4482  ;;  %v14302_v24 = vpop.permute.xlu0 %5161 }
 0x27b   : > { %6235 = vrot.lane.b32.xlu0 %v14272_v9, %s13770_s5  ;;  %6229 = vrot.lane.b32.xlu1 %v14173_v47, %s13770_s5 }
 0x27d   : > { %v14311_v27 = vpop.permute.xlu1 %5165  ;;  %v14313_v28 = vpop.permute.xlu0 %5519 }
 0x27f   : > { %6562 = vperm.xlu0 %13705, %v13181_v26   ;;  %5878 = vrot.lane.b32.xlu1 %v14264_v8, %s13768_s29 }
 0x281   : > { %v14317_v29 = vpop.permute.xlu1 %5515  ;;  %v14319_v31 = vpop.permute.xlu0 %3788 }
 0x283   : > { %5882 = vrot.lane.b32.xlu1 %v14272_v9, %s13768_s29  ;;  %s13774_s29 = smov 8  }
 0x285   : > { %v3455_v32 = vpop.permute.xlu1 %3454  ;;  %v14323_v33 = vpop.permute.xlu0 %4130 }
 0x286   : > { %v3471_v34 = vsel %vm3470_vm10, %v3453_v10, %v3455_v32  ;;  %v3472_v36 = vsel %vm3470_vm10, %v3455_v32, %v3457_v11 }
 0x287   : > { %6233 = vrot.lane.b32.xlu1 %v14182_v50, %s13770_s5  ;;  %13066 = vmatprep.subr.msk.mxu0 %vm259_vm1, %v3472_v36 }
 0x288   : > { %13067 = vmatpush1.msk.msra.mxu0 %vm259_vm1, %v3471_v34 }
 0x289   : > { %v3459_v40 = vpop.permute.xlu1 %3458  ;;  %v14336_v41 = vpop.permute.xlu0 %4488  ;;  %13068 = vmatmul.mubr.msk.f32.vlgmr.msra.gmra.mrb[4].mxu0 %vm255_vm2, %v14330_v37 }
 0x28a   : > { %3704 = vmatprep.mubr.f32.mxu0 %v14340_v42  ;;  %v3473_v48 = vsel %vm3470_vm10, %v3457_v11, %v3459_v40 }
 0x28b   : > { %6237 = vrot.lane.b32.xlu1 %v6209_v39, %s13770_s5  ;;  %s13773_s5 = smov 124  }
 0x28d   : > { %v3785_v16 = vpop.permute.xlu1 %3784  ;;  %v14344_v44 = vpop.permute.xlu0 %5163 }
 0x291   : > { %v14346_v45 = vpop.permute.xlu1 %4134  ;;  %v3461_v46 = vpop.permute.xlu0 %3460 }
 0x292   : > { %v3474_v17 = vsel %vm3470_vm10, %v3459_v40, %v3461_v46 }
 0x293   : > { %13069 = vmatprep.subr.msk.mxu1 %vm259_vm1, %v3474_v17  ;;  %v3802_v17 = vsel %vm3800_vm11, %v3785_v16, %v14278_v12 }
 0x294   : > { %13070 = vmatpush1.msk.msra.mxu1 %vm259_vm1, %v3473_v48  ;;  %v3801_v48 = vsel %vm3800_vm11, %v14284_v14, %v3785_v16  ;;  %v13064_v14 = vld [vmem:[%s15550_s1 + $0x24] sm:$0xf] }
 0x295   : > { %v14352_v49 = vpop.permute.xlu1 %4484  ;;  %v3465_v19 = vpop.permute.xlu0 %3464  ;;  %13071 = vmatmul.mubr.msk.f32.vlgmr.msra.gmra.mrb[4].mxu1 %vm255_vm2, %v14330_v37 }
 0x296   : > { %3775 = vmatprep.mubr.f32.mxu1 %v14340_v42 }
 0x299   : > { %v14357_v51 = vpop.permute.xlu1 %5167  ;;  %v3469_v52 = vpop.permute.xlu0 %3468 }
 0x29d   : > { %v14359_v53 = vpop.permute.xlu1 %5517  ;;  %v14361_v55 = vpop.permute.xlu0 %4136 }
 0x2a1   : > { %v3791_v56 = vpop.permute.xlu1 %3790  ;;  %v14363_v58 = vpop.permute.xlu0 %4140 }
 0x2a5   : > { %v3795_v59 = vpop.permute.xlu1 %3794  ;;  %v14365_v60 = vpop.permute.xlu0 %4144 }
 0x2a9   : > { %v3799_v61 = vpop.permute.xlu1 %3798  ;;  %v14367_v62 = vpop.permute.xlu0 %5169 }
 0x2ad   : > { %v14369_v5 = vpop.permute.xlu1 %4490  ;;  %v14371_v0 = vpop.permute.xlu0 %5173 }
 0x2b1   : > { %v14373_v10 = vpop.permute.xlu1 %4494  ;;  %v3793_v11 = vpop.permute.xlu0 %3792 }
 0x2b2   : > { %v3805_v16 = vsel %vm3800_vm11, %v3791_v56, %v3793_v11 }
 0x2b5   : > { %v14375_v26 = vpop.permute.xlu1 %4498  ;;  %v3797_v32 = vpop.permute.xlu0 %3796 }
 0x2b9   : > { %v3463_v34 = vpop.permute.xlu1 %3462  ;;  %v14377_v36 = vpop.permute.xlu0 %5521 }
 0x2ba   : > { %v3475_v39 = vsel %vm3470_vm10, %v3461_v46, %v3463_v34  ;;  %v3476_v40 = vsel %vm3470_vm10, %v3463_v34, %v3465_v19 }
 0x2bb   : > { %13072 = vmatprep.subr.msk.mxu0 %vm259_vm1, %v3476_v40  ;;  %v3806_v40 = vsel %vm3800_vm11, %v3793_v11, %v3795_v59  ;;  %v4148_v11 = vsel %vm4146_vm12, %v14323_v33, %v14292_v20 }
 0x2bc   : > { %13073 = vmatpush1.msk.msra.mxu0 %vm259_vm1, %v3475_v39 }
 0x2bd   : > { %v3467_v4 = vpop.permute.xlu1 %3466  ;;  %13074 = vmatmul.mubr.msk.f32.vlgmr.msra.gmra.mrb[6].mxu0 %vm255_vm2, %v14330_v37  ;;  %13078 = vmatprep.subr.msk.mxu0 %vm259_vm1, %v3802_v17  ;;  %v14390_v46 = vpop.permute.xlu0 %5870  ;;  %v3803_v17 = vsel %vm3800_vm11, %v14278_v12, %v14319_v31  ;;  %v3807_v12 = vsel %vm3800_vm11, %v3795_v59, %v3797_v32  ;;  %v13090_v59 = vld [vmem:[%s15550_s1 + $0x2c] sm:$0xf] }
 0x2be   : > { %v3477_v34 = vsel %vm3470_vm10, %v3465_v19, %v3467_v4  ;;  %13079 = vmatpush1.msk.msra.mxu0 %vm259_vm1, %v3801_v48  ;;  %v3478_v39 = vsel %vm3470_vm10, %v3467_v4, %v3469_v52  ;;  %3892 = vmatprep.mubr.f32.mxu0 %v14340_v42  ;;  %v3804_v4 = vsel %vm3800_vm11, %v14319_v31, %v3791_v56 }
 0x2bf   : > { %13075 = vmatprep.subr.msk.mxu1 %vm259_vm1, %v3478_v39  ;;  %13084 = vmatprep.subr.msk.mxu0 %vm259_vm1, %v3806_v40  ;;  %v4147_v48 = vsel %vm4146_vm12, %v14286_v15, %v14323_v33  ;;  %v4149_v15 = vsel %vm4146_vm12, %v14292_v20, %v14346_v45  ;;  %v4502_v20 = vsel %vm4500_vm13, %v14352_v49, %v14294_v21 }
 0x2c0   : > { %13076 = vmatpush1.msk.msra.mxu1 %vm259_vm1, %v3477_v34  ;;  %v4501_v40 = vsel %vm4500_vm13, %v14300_v23, %v14352_v49  ;;  %v13103_v23 = vld [vmem:[%s15550_s1 + $0x30] sm:$0xf] }
 0x2c1   : > { %v14404_v19 = vpop.permute.xlu1 %5523  ;;  %13077 = vmatmul.mubr.msk.f32.vlgmr.msra.gmra.mrb[6].mxu1 %vm255_vm2, %v14330_v37  ;;  %13080 = vmatmul.mubr.msk.f32.vlgmr.msra.gmra.mrb[4].mxu0 %vm255_vm2, %v13064_v14  ;;  %v4493_v52 = vpop.permute.xlu0 %4492  ;;  %v3808_v37 = vsel %vm3800_vm11, %v3797_v32, %v3799_v61  ;;  %v4150_v61 = vsel %vm4146_vm12, %v14346_v45, %v14361_v55 }
 0x2c2   : > { %13081 = vmatprep.subr.msk.mxu1 %vm259_vm1, %v3804_v4  ;;  %13085 = vmatpush1.msk.msra.mxu0 %vm259_vm1, %v3805_v16  ;;  %v4506_v4 = vsel %vm4500_vm13, %v4493_v52, %v14373_v10 }
 0x2c3   : > { %13082 = vmatpush1.msk.msra.mxu1 %vm259_vm1, %v3803_v17  ;;  %13091 = vmatprep.subr.msk.mxu0 %vm259_vm1, %v4148_v11  ;;  %v4505_v17 = vsel %vm4500_vm13, %v14369_v5, %v4493_v52 }
 0x2c4   : > { %13087 = vmatprep.subr.msk.mxu1 %vm259_vm1, %v3808_v37  ;;  %3963 = vmatprep.mubr.f32.mxu1 %v14340_v42 }
 0x2c5   : > { %4034 = vmatprep.mubr.f32.mxu0 %v14340_v42  ;;  %v14426_v31 = vpop.permute.xlu1 %5527  ;;  %13083 = vmatmul.mubr.msk.f32.vlgmr.msra.gmra.mrb[4].mxu1 %vm255_vm2, %v13064_v14  ;;  %v4497_v56 = vpop.permute.xlu0 %4496 }
 0x2c6   : > { %13086 = vmatmul.mubr.msk.f32.vlgmr.msra.gmra.mrb[6].mxu0 %vm255_vm2, %v13064_v14  ;;  %13088 = vmatpush1.msk.msra.mxu1 %vm259_vm1, %v3807_v12  ;;  %v4508_v37 = vsel %vm4500_vm13, %v4497_v56, %v14375_v26  ;;  %v5180_v26 = vsel %vm5179_vm14, %v14302_v24, %v14344_v44  ;;  %v13129_v12 = vld [vmem:[%s15550_s1 + $0x38] sm:$0xf] }
 0x2c7   : > { %13092 = vmatpush1.msk.msra.mxu0 %vm259_vm1, %v4147_v48  ;;  %13094 = vmatprep.subr.msk.mxu1 %vm259_vm1, %v4150_v61  ;;  %v5533_v61 = vsel %vm3800_vm11, %v14317_v29, %v14359_v53  ;;  %v13142_v29 = vld [vmem:[%s15550_s1 + $0x3c] sm:$0xf] }
 0x2c8   : > { %4105 = vmatprep.mubr.f32.mxu1 %v14340_v42  ;;  %4238 = vmatprep.mubr.f32.mxu0 %v14340_v42 }
 0x2c9   : > { %v4139_v33 = vpop.permute.xlu1 %4138  ;;  %13089 = vmatmul.mubr.msk.f32.vlgmr.msra.gmra.mrb[6].mxu1 %vm255_vm2, %v13064_v14  ;;  %v14448_v32 = vpop.permute.xlu0 %5868 }
 0x2ca   : > { %v4151_v34 = vsel %vm4146_vm12, %v14361_v55, %v4139_v33  ;;  %13093 = vmatmul.mubr.msk.f32.vlgmr.msra.gmra.mrb[4].mxu0 %vm255_vm2, %v13090_v59  ;;  %13095 = vmatpush1.msk.msra.mxu1 %vm259_vm1, %v4149_v15  ;;  %v4152_v39 = vsel %vm4146_vm12, %v4139_v33, %v14363_v58 }
 0x2cb   : > { %13097 = vmatprep.subr.msk.mxu0 %vm259_vm1, %v4152_v39  ;;  %4309 = vmatprep.mubr.f32.mxu1 %v14340_v42 }
 0x2cc   : > { %13098 = vmatpush1.msk.msra.mxu0 %vm259_vm1, %v4151_v34  ;;  %4380 = vmatprep.mubr.f32.mxu0 %v14340_v42  ;;  %v5535_v34 = vsel %vm3800_vm11, %v14313_v28, %v14377_v36 }
 0x2cd   : > { %v4143_v45 = vpop.permute.xlu1 %4142  ;;  %13096 = vmatmul.mubr.msk.f32.vlgmr.msra.gmra.mrb[4].mxu1 %vm255_vm2, %v13090_v59  ;;  %13104 = vmatprep.subr.msk.mxu0 %vm259_vm1, %v4502_v20  ;;  %v14465_v55 = vpop.permute.xlu0 %5876 }
 0x2ce   : > { %v4153_v14 = vsel %vm4146_vm12, %v14363_v58, %v4143_v45  ;;  %13099 = vmatmul.mubr.msk.f32.vlgmr.msra.gmra.mrb[6].mxu0 %vm255_vm2, %v13090_v59  ;;  %v4154_v16 = vsel %vm4146_vm12, %v4143_v45, %v14365_v60  ;;  %4451 = vmatprep.mubr.f32.mxu1 %v14340_v42  ;;  %v4504_v58 = vsel %vm4500_vm13, %v14336_v41, %v14369_v5 }
 0x2cf   : > { %13105 = vmatpush1.msk.msra.mxu0 %vm259_vm1, %v4501_v40  ;;  %13100 = vmatprep.subr.msk.mxu1 %vm259_vm1, %v4154_v16  ;;  %v4503_v60 = vsel %vm4500_vm13, %v14294_v21, %v14336_v41  ;;  %v4507_v41 = vsel %vm4500_vm13, %v14373_v10, %v4497_v56  ;;  %v5886_v45 = vsel %vm3470_vm10, %v14448_v32, %v14390_v46 }
 0x2d0   : > { %13110 = vmatprep.subr.msk.mxu0 %vm259_vm1, %v4506_v4  ;;  %13101 = vmatpush1.msk.msra.mxu1 %vm259_vm1, %v4153_v14 }
 0x2d1   : > { %4592 = vmatprep.mubr.f32.mxu0 %v14340_v42  ;;  %v14486_v49 = vpop.permute.xlu1 %5531  ;;  %13102 = vmatmul.mubr.msk.f32.vlgmr.msra.gmra.mrb[6].mxu1 %vm255_vm2, %v13090_v59  ;;  %v14500_v11 = vpop.permute.xlu0 %5880 }
 0x2d2   : > { %13106 = vmatmul.mubr.msk.f32.vlgmr.msra.gmra.mrb[4].mxu0 %vm255_vm2, %v13103_v23  ;;  %13107 = vmatprep.subr.msk.mxu1 %vm259_vm1, %v4504_v58 }
 0x2d3   : > { %13111 = vmatpush1.msk.msra.mxu0 %vm259_vm1, %v4505_v17  ;;  %13108 = vmatpush1.msk.msra.mxu1 %vm259_vm1, %v4503_v60 }
 0x2d4   : > { %13117 = vmatprep.subr.msk.mxu0 %vm259_vm1, %v14205_v54  ;;  %13113 = vmatprep.subr.msk.mxu1 %vm259_vm1, %v4508_v37  ;;  %v13116_v54 = vld [vmem:[%s15550_s1 + $0x34] sm:$0xf] }
 0x2d5   : > { %4663 = vmatprep.mubr.f32.mxu1 %v14340_v42  ;;  %4734 = vmatprep.mubr.f32.mxu0 %v14340_v42  ;;  %v14510_v21 = vpop.permute.xlu1 %5872  ;;  %v14526_v5 = vpop.permute.xlu0 %5884 }
 0x2d6   : > { %13109 = vmatmul.mubr.msk.f32.vlgmr.msra.gmra.mrb[4].mxu1 %vm255_vm2, %v13103_v23  ;;  %13112 = vmatmul.mubr.msk.f32.vlgmr.msra.gmra.mrb[6].mxu0 %vm255_vm2, %v13103_v23  ;;  %v5887_v20 = vsel %vm3470_vm10, %v14390_v46, %v14510_v21 }
 0x2d7   : > { %13114 = vmatpush1.msk.msra.mxu1 %vm259_vm1, %v4507_v41  ;;  %13118 = vmatpush1.msk.msra.mxu0 %vm259_vm1, %v14152_v25 }
 0x2d8   : > { %13120 = vmatprep.subr.msk.mxu1 %vm259_vm1, %v14214_v57  ;;  %13123 = vmatprep.subr.msk.mxu0 %vm259_vm1, %v14264_v8  ;;  %v5181_v57 = vsel %vm5179_vm14, %v14344_v44, %v14311_v27  ;;  %v5182_v44 = vsel %vm5179_vm14, %v14311_v27, %v14357_v51  ;;  %v5534_v27 = vsel %vm3800_vm11, %v14359_v53, %v14313_v28 }
 0x2d9   : > { %4805 = vmatprep.mubr.f32.mxu1 %v14340_v42  ;;  %4917 = vmatprep.mubr.f32.mxu0 %v14340_v42  ;;  %v14530_v10 = vpop.permute.xlu1 %5874  ;;  %v5526_v52 = vpop.permute.xlu0 %5525 }
 0x2da   : > { %13115 = vmatmul.mubr.msk.f32.vlgmr.msra.gmra.mrb[6].mxu1 %vm255_vm2, %v13103_v23  ;;  %13119 = vmatmul.mubr.msk.f32.vlgmr.msra.gmra.mrb[4].mxu0 %vm255_vm2, %v13116_v54  ;;  %v5538_v33 = vsel %vm3800_vm11, %v5526_v52, %v14426_v31  ;;  %v5537_v53 = vsel %vm3800_vm11, %v14404_v19, %v5526_v52  ;;  %v5889_v40 = vsel %vm3470_vm10, %v14530_v10, %v14465_v55  ;;  %v14698_v52 = vld [vmem:[#allocation2 + $0x4] sm:$0xff] }
 0x2db   : > { %13121 = vmatpush1.msk.msra.mxu1 %vm259_vm1, %v14161_v38  ;;  %13124 = vmatpush1.msk.msra.mxu0 %vm259_vm1, %v14173_v47  ;;  %v5888_v32 = vsel %vm3470_vm10, %v14510_v21, %v14530_v10 }
 0x2dc   : > { %13126 = vmatprep.subr.msk.mxu1 %vm259_vm1, %v14272_v9  ;;  %13130 = vmatprep.subr.msk.mxu0 %vm259_vm1, %v5181_v57  ;;  %v5183_v9 = vsel %vm5179_vm14, %v14357_v51, %v14367_v62 }
 0x2dd   : > { %4988 = vmatprep.mubr.f32.mxu1 %v14340_v42  ;;  %5059 = vmatprep.mubr.f32.mxu0 %v14340_v42  ;;  %v14546_v8 = vpop.permute.xlu1 %6223  ;;  %v5530_v51 = vpop.permute.xlu0 %5529 }
 0x2de   : > { %13122 = vmatmul.mubr.msk.f32.vlgmr.msra.gmra.mrb[4].mxu1 %vm255_vm2, %v13116_v54  ;;  %13125 = vmatmul.mubr.msk.f32.vlgmr.msra.gmra.mrb[6].mxu0 %vm255_vm2, %v13116_v54 }
 0x2df   : > { %13127 = vmatpush1.msk.msra.mxu1 %vm259_vm1, %v14182_v50  ;;  %13131 = vmatpush1.msk.msra.mxu0 %vm259_vm1, %v5180_v26 }
 0x2e0   : > { %13133 = vmatprep.subr.msk.mxu1 %vm259_vm1, %v5183_v9  ;;  %5130 = vmatprep.mubr.f32.mxu1 %v14340_v42  ;;  %v14702_v9 = vcombine.high %v14698_v52, %v14698_v52 }
 0x2e1   : > { %5271 = vmatprep.mubr.f32.mxu0 %v14340_v42  ;;  %v5172_v24 = vpop.permute.xlu1 %5171  ;;  %v6226_v39 = vpop.permute.xlu0 %6225 }
 0x2e2   : > { %v5184_v56 = vsel %vm5179_vm14, %v14367_v62, %v5172_v24  ;;  %13128 = vmatmul.mubr.msk.f32.vlgmr.msra.gmra.mrb[6].mxu1 %vm255_vm2, %v13116_v54  ;;  %13132 = vmatmul.mubr.msk.f32.vlgmr.msra.gmra.mrb[4].mxu0 %vm255_vm2, %v13129_v12  ;;  %v5185_v48 = vsel %vm5179_vm14, %v5172_v24, %v14371_v0 }
 0x2e3   : > { %13134 = vmatpush1.msk.msra.mxu1 %vm259_vm1, %v5182_v44  ;;  %13136 = vmatprep.subr.msk.mxu0 %vm259_vm1, %v5185_v48 }
 0x2e4   : > { %5342 = vmatprep.mubr.f32.mxu1 %v14340_v42  ;;  %13137 = vmatpush1.msk.msra.mxu0 %vm259_vm1, %v5184_v56 }
 0x2e5   : > { %5413 = vmatprep.mubr.f32.mxu0 %v14340_v42  ;;  %v5176_v62 = vpop.permute.xlu1 %5175  ;;  %13143 = vmatprep.subr.msk.mxu0 %vm259_vm1, %v5534_v27  ;;  %v6228_v14 = vpop.permute.xlu0 %6227 }
 0x2e6   : > { %v5186_v59 = vsel %vm5179_vm14, %v14371_v0, %v5176_v62  ;;  %13135 = vmatmul.mubr.msk.f32.vlgmr.msra.gmra.mrb[4].mxu1 %vm255_vm2, %v13129_v12  ;;  %13138 = vmatmul.mubr.msk.f32.vlgmr.msra.gmra.mrb[6].mxu0 %vm255_vm2, %v13129_v12  ;;  %v5187_v15 = vsel %vm5179_vm14, %v5176_v62, %v14260_v7  ;;  %v5536_v0 = vsel %vm3800_vm11, %v14377_v36, %v14404_v19 }
 0x2e7   : > { %13144 = vmatpush1.msk.msra.mxu0 %vm259_vm1, %v5533_v61  ;;  %13139 = vmatprep.subr.msk.mxu1 %vm259_vm1, %v5187_v15  ;;  %v5540_v19 = vsel %vm3800_vm11, %v5530_v51, %v14486_v49  ;;  %v5539_v36 = vsel %vm3800_vm11, %v14426_v31, %v5530_v51  ;;  %v13155_v31 = vld [vmem:[%s15550_s1 + $0x40] sm:$0xf]  ;;  %v6241_v41 = vsel %vm4146_vm12, %v6226_v39, %v6228_v14 }
 0x2e8   : > { %13149 = vmatprep.subr.msk.mxu0 %vm259_vm1, %v5538_v33  ;;  %13140 = vmatpush1.msk.msra.mxu1 %vm259_vm1, %v5186_v59 }
 0x2e9   : > { %5484 = vmatprep.mubr.f32.mxu1 %v14340_v42  ;;  %5624 = vmatprep.mubr.f32.mxu0 %v14340_v42  ;;  %v6222_v7 = vpop.permute.xlu1 %6221  ;;  %v6232_v17 = vpop.permute.xlu0 %6231 }
 0x2ea   : > { %13141 = vmatmul.mubr.msk.f32.vlgmr.msra.gmra.mrb[6].mxu1 %vm255_vm2, %v13129_v12  ;;  %13145 = vmatmul.mubr.msk.f32.vlgmr.msra.gmra.mrb[4].mxu0 %vm255_vm2, %v13142_v29  ;;  %v6239_v60 = vsel %vm4146_vm12, %v6222_v7, %v14546_v8 }
 0x2eb   : > { %13146 = vmatprep.subr.msk.mxu1 %vm259_vm1, %v5536_v0  ;;  %13150 = vmatpush1.msk.msra.mxu0 %vm259_vm1, %v5537_v53 }
 0x2ec   : > { %13147 = vmatpush1.msk.msra.mxu1 %vm259_vm1, %v5535_v34  ;;  %13156 = vmatprep.subr.msk.mxu0 %vm259_vm1, %v5887_v20 }
 0x2ed   : > { %13152 = vmatprep.subr.msk.mxu1 %vm259_vm1, %v5540_v19  ;;  %5695 = vmatprep.mubr.f32.mxu1 %v14340_v42  ;;  %v6230_v28 = vpop.permute.xlu1 %6229  ;;  %v6236_v10 = vpop.permute.xlu0 %6235 }
 0x2ee   : > { %5766 = vmatprep.mubr.f32.mxu0 %v14340_v42  ;;  %13148 = vmatmul.mubr.msk.f32.vlgmr.msra.gmra.mrb[4].mxu1 %vm255_vm2, %v13142_v29  ;;  %v6242_v21 = vsel %vm4146_vm12, %v6228_v14, %v6230_v28 }
 0x2ef   : > { %13151 = vmatmul.mubr.msk.f32.vlgmr.msra.gmra.mrb[6].mxu0 %vm255_vm2, %v13142_v29  ;;  %13153 = vmatpush1.msk.msra.mxu1 %vm259_vm1, %v5539_v36 }
 0x2f0   : > { %13157 = vmatpush1.msk.msra.mxu0 %vm259_vm1, %v5886_v45  ;;  %13159 = vmatprep.subr.msk.mxu1 %vm259_vm1, %v5889_v40 }
 0x2f1   : > { %5837 = vmatprep.mubr.f32.mxu1 %v14340_v42  ;;  %5977 = vmatprep.mubr.f32.mxu0 %v14340_v42  ;;  %v5879_v46 = vpop.permute.xlu1 %5878 }
 0x2f2   : > { %v5890_v16 = vsel %vm3470_vm10, %v14465_v55, %v5879_v46  ;;  %13154 = vmatmul.mubr.msk.f32.vlgmr.msra.gmra.mrb[6].mxu1 %vm255_vm2, %v13142_v29  ;;  %v5891_v4 = vsel %vm3470_vm10, %v5879_v46, %v14500_v11  ;;  %v6240_v55 = vsel %vm4146_vm12, %v14546_v8, %v6226_v39  ;;  %6948 = vrot.lane.b32.xlu1 %v14702_v9, %s13772_s30 }
 0x2f3   : > { %13158 = vmatmul.mubr.msk.f32.vlgmr.msra.gmra.mrb[4].mxu0 %vm255_vm2, %v13155_v31  ;;  %13160 = vmatpush1.msk.msra.mxu1 %vm259_vm1, %v5888_v32 }
 0x2f4   : > { %13162 = vmatprep.subr.msk.mxu0 %vm259_vm1, %v5891_v4  ;;  %6048 = vmatprep.mubr.f32.mxu1 %v14340_v42 }
 0x2f5   : > { %13163 = vmatpush1.msk.msra.mxu0 %vm259_vm1, %v5890_v16  ;;  %6119 = vmatprep.mubr.f32.mxu0 %v14340_v42  ;;  %v5883_v23 = vpop.permute.xlu1 %5882 }
 0x2f6   : > { %v5892_v49 = vsel %vm3470_vm10, %v14500_v11, %v5883_v23  ;;  %13161 = vmatmul.mubr.msk.f32.vlgmr.msra.gmra.mrb[4].mxu1 %vm255_vm2, %v13155_v31  ;;  %13169 = vmatprep.subr.msk.mxu0 %vm259_vm1, %v6240_v55  ;;  %v5893_v58 = vsel %vm3470_vm10, %v5883_v23, %v14526_v5  ;;  %v13168_v11 = vld [vmem:[%s15550_s1 + $0x44] sm:$0xf]  ;;  %v6243_v5 = vsel %vm4146_vm12, %v6230_v28, %v6232_v17 }
 0x2f7   : > { %13164 = vmatmul.mubr.msk.f32.vlgmr.msra.gmra.mrb[6].mxu0 %vm255_vm2, %v13155_v31  ;;  %13165 = vmatprep.subr.msk.mxu1 %vm259_vm1, %v5893_v58 }
 0x2f8   : > { %13170 = vmatpush1.msk.msra.mxu0 %vm259_vm1, %v6239_v60  ;;  %13166 = vmatpush1.msk.msra.mxu1 %vm259_vm1, %v5892_v49 }
 0x2f9   : > { %6190 = vmatprep.mubr.f32.mxu1 %v14340_v42  ;;  %6330 = vmatprep.mubr.f32.mxu0 %v14340_v42  ;;  %v6234_v37 = vpop.permute.xlu1 %6233 }
 0x2fa   : > { %13167 = vmatmul.mubr.msk.f32.vlgmr.msra.gmra.mrb[6].mxu1 %vm255_vm2, %v13155_v31  ;;  %13172 = vmatprep.subr.msk.mxu1 %vm259_vm1, %v6242_v21  ;;  %v6244_v54 = vsel %vm4146_vm12, %v6232_v17, %v6234_v37  ;;  %v6245_v26 = vsel %vm4146_vm12, %v6234_v37, %v6236_v10 }
 0x2fb   : > { %13171 = vmatmul.mubr.msk.f32.vlgmr.msra.gmra.mrb[4].mxu0 %vm255_vm2, %v13168_v11  ;;  %13173 = vmatpush1.msk.msra.mxu1 %vm259_vm1, %v6241_v41  ;;  %v13183_v41 = vld [vmem:[%s15550_s1 + $0x4c] sm:$0xf] }
 0x2fc   : > { %13175 = vmatprep.subr.msk.mxu0 %vm259_vm1, %v6244_v54  ;;  %6401 = vmatprep.mubr.f32.mxu1 %v14340_v42 }
 0x2fd   : > { %13176 = vmatpush1.msk.msra.mxu0 %vm259_vm1, %v6243_v5  ;;  %6472 = vmatprep.mubr.f32.mxu0 %v14340_v42  ;;  %v6238_v57 = vpop.permute.xlu1 %6237 }
 0x2fe   : > { %v6246_v8 = vsel %vm4146_vm12, %v6236_v10, %v6238_v57  ;;  %13174 = vmatmul.mubr.msk.f32.vlgmr.msra.gmra.mrb[4].mxu1 %vm255_vm2, %v13168_v11  ;;  %6946 = vrot.lane.b32.xlu1 %v14698_v52, %s13772_s30  ;;  %v6563_v12 = vpop.permute.xlu0 %6562 }
 0x2ff   : > { %13177 = vmatmul.mubr.msk.f32.vlgmr.msra.gmra.mrb[6].mxu0 %vm255_vm2, %v13168_v11  ;;  %13178 = vmatprep.subr.msk.mxu1 %vm259_vm1, %v6246_v8 }
 0x300   : > { %13179 = vmatpush1.msk.msra.mxu1 %vm259_vm1, %v6245_v26  ;;  %6543 = vmatprep.mubr.f32.mxu1 %v14340_v42 }
 0x301   : > { %6717 = vmatprep.mubr.f32.mxu0 %v14340_v42 }
 0x302   : > { %13180 = vmatmul.mubr.msk.f32.vlgmr.msra.gmra.mrb[6].mxu1 %vm255_vm2, %v13168_v11 }
 0x303   : > { %6788 = vmatprep.mubr.f32.mxu1 %v14340_v42 }
 0x3ce   : > { %v6332_v24 = vpop.f32.mrb[4].mxu0 }
 0x3cf   : > { %v6565_v44 = vadd.f32 %v6563_v12, %v6332_v24  ;;  %v6334_v56 = vpop.f32.mrb[5].mxu0 }
 0x3d0   : > { %v6566_v48 = vadd.f32 %v6563_v12, %v6334_v56 }
 0x3d1   : > { %v6573_v27 = vmax.f32 %v6565_v44, 0.0  ;;  %v6403_v51 = vpop.f32.mrb[4].mxu1 }
 0x3d2   : > { %v6574_v62 = vmax.f32 %v6566_v48, 0.0  ;;  %v6567_v61 = vadd.f32 %v6563_v12, %v6403_v51  ;;  %v6474_v59 = vpop.f32.mrb[6].mxu0  ;;  %v6405_v15 = vpop.f32.mrb[5].mxu1  ;;  %v8311_v51 = vld [vmem:[#allocation2 + $0x2c] sm:$0xf] }
 0x3d3   : > { %v6581_v33 = vmul.f32 %v6573_v27, %v14142_v63  ;;  %v6569_v29 = vadd.f32 %v6563_v12, %v6474_v59  ;;  %v6568_v7 = vadd.f32 %v6563_v12, %v6405_v15  ;;  %v6476_v53 = vpop.f32.mrb[7].mxu0 }
 0x3d4   : > { %v6582_v0 = vmul.f32 %v6574_v62, %v14144_v6  ;;  %v6575_v34 = vmax.f32 %v6567_v61, 0.0  ;;  %v6570_v39 = vadd.f32 %v6563_v12, %v6476_v53  ;;  %v8664_v61 = vld [vmem:[#allocation2 + $0x2c] sm:$0xf] }
 0x3d5   : > { %v6577_v20 = vmax.f32 %v6569_v29, 0.0  ;;  %v6576_v19 = vmax.f32 %v6568_v7, 0.0  ;;  %v6545_v28 = vpop.f32.mrb[6].mxu1  ;;  %v13299_v29 = vld [vmem:[%s15551_s2 + $0x8] sm:$0xf] }
 0x3d6   : > { %v14710_v36 = vcombine.low %v6581_v33, %v6582_v0  ;;  %v6583_v45 = vmul.f32 %v6575_v34, %v14147_v13  ;;  %v6578_v40 = vmax.f32 %v6570_v39, 0.0  ;;  %v6571_v31 = vadd.f32 %v6563_v12, %v6545_v28  ;;  %v6547_v14 = vpop.f32.mrb[7].mxu1  ;;  %v6949_v33 = vpop.permute.xlu1 %6948  ;;  %v9342_v7 = vld [vmem:[#allocation2 + $0x30] sm:$0xf] }
 0x3d7   : > { %v6585_v46 = vmul.f32 %v6577_v20, %v14155_v30  ;;  %v6584_v32 = vmul.f32 %v6576_v19, %v14150_v22  ;;  %v6572_v16 = vadd.f32 %v6563_v12, %v6547_v14  ;;  %v14765_v26 = vcombine.low %v6582_v0, %v6582_v0  ;;  %v13182_v20 = vld [vmem:[%s15550_s1 + $0x48] sm:$0xf] }
 0x3d8   : > { %6605 = vst [vmem:[#allocation2 + $0xc] sm:$0xff] %v14710_v36  ;;  %v6586_v4 = vmul.f32 %v6578_v40, %v14159_v35  ;;  %v6579_v23 = vmax.f32 %v6571_v31, 0.0  ;;  %6950 = vrot.lane.b32.xlu0 %v14710_v36, %s13772_s30 }
 0x3d9   : > { %v14719_v55 = vcombine.low %v6583_v45, %v6584_v32  ;;  %v6580_v49 = vmax.f32 %v6572_v16, 0.0  ;;  %v14798_v24 = vcombine.low %v6584_v32, %v6584_v32 }
 0x3da   : > { %v14721_v58 = vcombine.low %v6585_v46, %v6586_v4  ;;  %v6587_v60 = vmul.f32 %v6579_v23, %v14164_v43  ;;  %v14811_v56 = vcombine.low %v6586_v4, %v6586_v4  ;;  %v6947_v53 = vpop.permute.xlu1 %6946 }
 0x3db   : > { %6606 = vst [vmem:[#allocation2 + $0x14] sm:$0xff] %v14719_v55  ;;  %v14726_v17 = vmul.f32 %v6580_v49, %v14170_v18  ;;  %v6964_v0 = vsel %vm255_vm2, %v6947_v53, %v6949_v33 }
 0x3dc   : > { %6607 = vst [vmem:[#allocation2 + $0x1c] sm:$0xff] %v14721_v58 }
 0x3dd   : > { %v14730_v11 = vcombine.low %v6587_v60, %v14726_v17  ;;  %v14848_v62 = vcombine.low %v14726_v17, %v14726_v17 }
 0x3df   : > { %6608 = vst [vmem:[#allocation2 + $0x24] sm:$0xff] %v14730_v11  ;;  %v7629_v37 = vld [vmem:[#allocation2 + $0x8] sm:$0xff] }
 0x3e0   : > { %7645 = vrot.lane.b32.xlu1 %v7629_v37, %s13772_s30  ;;  %v6630_v21 = vcombine.high %v7629_v37, %v7629_v37  ;;  %7291 = vrot.lane.b32.xlu0 %v7629_v37, %s13773_s5 }
 0x3e2   : > { %13184 = vmatprep.subr.msk.mxu0 %vm259_vm1, %v6630_v21  ;;  %v14739_v54 = vld [vmem:[#allocation2 + $0x10] sm:$0xff] }
 0x3e3   : > { %13185 = vmatpush1.msk.msra.mxu0 %vm259_vm1, %v7629_v37  ;;  %v14744_v5 = vcombine.high %v14739_v54, %v14739_v54  ;;  %v14746_v10 = vld [vmem:[#allocation2 + $0x18] sm:$0xff] }
 0x3e4   : > { %6954 = vrot.lane.b32.xlu1 %v14719_v55, %s13772_s30  ;;  %v14752_v57 = vcombine.high %v14746_v10, %v14746_v10  ;;  %13186 = vmatmul.mubr.msk.f32.vlgmr.msra.gmra.mrb[8].mxu0 %vm255_vm2, %v13183_v41 }
 0x3e5   : > { %13187 = vmatprep.subr.msk.mxu1 %vm259_vm1, %v14744_v5  ;;  %8323 = vrot.lane.b32.xlu0 %v14710_v36, %s13773_s5 }
 0x3e6   : > { %13190 = vmatprep.subr.msk.mxu0 %vm259_vm1, %v14752_v57  ;;  %13188 = vmatpush1.msk.msra.mxu1 %vm259_vm1, %v14739_v54  ;;  %v14763_v8 = vld [vmem:[#allocation2 + $0x20] sm:$0xff]  ;;  %v7633_v48 = vld [vmem:[#allocation2 + $0x28] sm:$0xf] }
 0x3e7   : > { %13191 = vmatpush1.msk.msra.mxu0 %vm259_vm1, %v14746_v10  ;;  %v14771_v12 = vcombine.high %v14763_v8, %v14763_v8  ;;  %13189 = vmatmul.mubr.msk.f32.vlgmr.msra.gmra.mrb[8].mxu1 %vm255_vm2, %v13183_v41  ;;  %v6617_v44 = vld [vmem:[#allocation2 + $0x24] sm:$0xf]  ;;  %v7279_v27 = vld [vmem:[#allocation2 + $0x28] sm:$0xf] }
 0x3e8   : > { %7295 = vrot.lane.b32.xlu1 %v14739_v54, %s13773_s5  ;;  %6859 = vmatprep.mubr.f32.mxu0 %v14340_v42  ;;  %v14869_v59 = vld [vmem:[#allocation2 + $0x28] sm:$0xff] }
 0x3e9   : > { %13193 = vmatprep.subr.msk.mxu1 %vm259_vm1, %v14771_v12  ;;  %6952 = vrot.lane.b32.xlu0 %v14765_v26, %s13772_s30  ;;  %v14877_v15 = vcombine.high %v14869_v59, %v14869_v59 }
 0x3ea   : > { %13194 = vmatpush1.msk.msra.mxu1 %vm259_vm1, %v14763_v8  ;;  %13192 = vmatmul.mubr.msk.f32.vlgmr.msra.gmra.mrb[10].mxu0 %vm255_vm2, %v13183_v41 }
 0x3eb   : > { %6930 = vmatprep.mubr.f32.mxu1 %v14340_v42  ;;  %7055 = vmatprep.mubr.f32.mxu0 %v14340_v42 }
 0x3ec   : > { %7647 = vrot.lane.b32.xlu1 %v6630_v21, %s13772_s30  ;;  %13195 = vmatmul.mubr.msk.f32.vlgmr.msra.gmra.mrb[10].mxu1 %vm255_vm2, %v13183_v41 }
 0x3ed   : > { %7293 = vrot.lane.b32.xlu0 %v6630_v21, %s13773_s5  ;;  %7126 = vmatprep.mubr.f32.mxu1 %v14340_v42 }
 0x3f0   : > { %8327 = vrot.lane.b32.xlu1 %v14719_v55, %s13773_s5 }
 0x3f1   : > { %7649 = vrot.lane.b32.xlu0 %v14739_v54, %s13772_s30 }
 0x3f4   : > { %6958 = vrot.lane.b32.xlu1 %v14721_v58, %s13772_s30 }
 0x3f5   : > { %8325 = vrot.lane.b32.xlu0 %v14765_v26, %s13773_s5 }
 0x3f8   : > { %7297 = vrot.lane.b32.xlu1 %v14744_v5, %s13773_s5 }
 0x3f9   : > { %6956 = vrot.lane.b32.xlu0 %v14798_v24, %s13772_s30 }
 0x3fc   : > { %7653 = vrot.lane.b32.xlu1 %v14746_v10, %s13772_s30 }
 0x3fd   : > { %7299 = vrot.lane.b32.xlu0 %v14746_v10, %s13773_s5 }
 0x400   : > { %6962 = vrot.lane.b32.xlu1 %v6617_v44, %s13772_s30 }
 0x401   : > { %7651 = vrot.lane.b32.xlu0 %v14744_v5, %s13772_s30 }
 0x404   : > { %7301 = vrot.lane.b32.xlu1 %v14752_v57, %s13773_s5 }
 0x405   : > { %6960 = vrot.lane.b32.xlu0 %v14811_v56, %s13772_s30 }
 0x408   : > { %7657 = vrot.lane.b32.xlu1 %v14763_v8, %s13772_s30 }
 0x409   : > { %7303 = vrot.lane.b32.xlu0 %v14763_v8, %s13773_s5 }
 0x40c   : > { %7661 = vrot.lane.b32.xlu1 %v7633_v48, %s13772_s30 }
 0x40d   : > { %7307 = vrot.lane.b32.xlu0 %v7279_v27, %s13773_s5 }
 0x410   : > { %7305 = vrot.lane.b32.xlu1 %v14771_v12, %s13773_s5 }
 0x411   : > { %7655 = vrot.lane.b32.xlu0 %v14752_v57, %s13772_s30 }
 0x414   : > { %8329 = vrot.lane.b32.xlu1 %v14798_v24, %s13773_s5 }
 0x415   : > { %8331 = vrot.lane.b32.xlu0 %v14721_v58, %s13773_s5 }
 0x418   : > { %8333 = vrot.lane.b32.xlu1 %v14811_v56, %s13773_s5 }
 0x419   : > { %7659 = vrot.lane.b32.xlu0 %v14771_v12, %s13772_s30 }
 0x41c   : > { %8678 = vrot.lane.b32.xlu1 %v14765_v26, %s13772_s30 }
 0x41d   : > { %8335 = vrot.lane.b32.xlu0 %v14730_v11, %s13773_s5 }
 0x420   : > { %8676 = vrot.lane.b32.xlu1 %v14710_v36, %s13772_s30 }
 0x421   : > { %8339 = vrot.lane.b32.xlu0 %v8311_v51, %s13773_s5 }
 0x424   : > { %8684 = vrot.lane.b32.xlu1 %v14721_v58, %s13772_s30 }
 0x425   : > { %8680 = vrot.lane.b32.xlu0 %v14719_v55, %s13772_s30 }
 0x428   : > { %8337 = vrot.lane.b32.xlu1 %v14848_v62, %s13773_s5 }
 0x429   : > { %8682 = vrot.lane.b32.xlu0 %v14798_v24, %s13772_s30 }
 0x42c   : > { %8688 = vrot.lane.b32.xlu1 %v14730_v11, %s13772_s30 }
 0x42d   : > { %8686 = vrot.lane.b32.xlu0 %v14811_v56, %s13772_s30 }
 0x430   : > { %8692 = vrot.lane.b32.xlu1 %v8664_v61, %s13772_s30 }
 0x431   : > { %8690 = vrot.lane.b32.xlu0 %v14848_v62, %s13772_s30  ;;  %s13775_s30 = smov 120  }
 0x434   : > { %9358 = vrot.lane.b32.xlu1 %v14746_v10, %s13773_s5 }
 0x435   : > { %9356 = vrot.lane.b32.xlu0 %v14744_v5, %s13773_s5 }
 0x438   : > { %9360 = vrot.lane.b32.xlu1 %v14752_v57, %s13773_s5 }
 0x439   : > { %9354 = vrot.lane.b32.xlu0 %v14739_v54, %s13773_s5 }
 0x43c   : > { %9364 = vrot.lane.b32.xlu1 %v14771_v12, %s13773_s5 }
 0x43d   : > { %9362 = vrot.lane.b32.xlu0 %v14763_v8, %s13773_s5 }
 0x440   : > { %9368 = vrot.lane.b32.xlu1 %v14877_v15, %s13773_s5 }
 0x441   : > { %9366 = vrot.lane.b32.xlu0 %v14869_v59, %s13773_s5 }
 0x444   : > { %9695 = vperm.xlu1 %13706, %v13299_v29  }
 0x445   : > { %9370 = vrot.lane.b32.xlu0 %v9342_v7, %s13773_s5 }
 0x448   : > { %10427 = vrot.lane.b32.xlu1 %v14702_v9, %s13775_s30 }
 0x44a   : > { %v6951_v34 = vpop.permute.xlu0 %6950 }
 0x44b   : > { %v6965_v39 = vsel %vm255_vm2, %v6949_v33, %v6951_v34  ;;  %v13208_v33 = vld [vmem:[%s15550_s1 + $0x50] sm:$0xf] }
 0x44c   : > { %13196 = vmatprep.subr.msk.mxu0 %vm259_vm1, %v6965_v39  ;;  %10425 = vrot.lane.b32.xlu1 %v14698_v52, %s13775_s30 }
 0x44d   : > { %13197 = vmatpush1.msk.msra.mxu0 %vm259_vm1, %v6964_v0 }
 0x44e   : > { %13198 = vmatmul.mubr.msk.f32.vlgmr.msra.gmra.mrb[8].mxu0 %vm255_vm2, %v13182_v20 }
 0x44f   : > { %7197 = vmatprep.mubr.f32.mxu0 %v14340_v42 }
 0x452   : > { %v7646_v19 = vpop.permute.xlu1 %7645  ;;  %v7292_v28 = vpop.permute.xlu0 %7291 }
 0x456   : > { %v6955_v45 = vpop.permute.xlu1 %6954 }
 0x457   : > { %v14896_v40 = vpop.permute.xlu0 %8323 }
 0x45a   : > { %v7296_v31 = vpop.permute.xlu1 %7295 }
 0x45b   : > { %v6953_v14 = vpop.permute.xlu0 %6952 }
 0x45c   : > { %v6966_v46 = vsel %vm255_vm2, %v6951_v34, %v6953_v14  ;;  %v6967_v32 = vsel %vm255_vm2, %v6953_v14, %v6955_v45 }
 0x45d   : > { %13199 = vmatprep.subr.msk.mxu1 %vm259_vm1, %v6967_v32 }
 0x45e   : > { %v7648_v16 = vpop.permute.xlu1 %7647  ;;  %13200 = vmatpush1.msk.msra.mxu1 %vm259_vm1, %v6966_v46 }
 0x45f   : > { %v7294_v4 = vpop.permute.xlu0 %7293  ;;  %13201 = vmatmul.mubr.msk.f32.vlgmr.msra.gmra.mrb[8].mxu1 %vm255_vm2, %v13182_v20 }
 0x460   : > { %7268 = vmatprep.mubr.f32.mxu1 %v14340_v42  ;;  %v7311_v27 = vsel %vm7309_vm15, %v7294_v4, %v7296_v31  ;;  %v7310_v51 = vsel %vm7309_vm15, %v7292_v28, %v7294_v4 }
 0x462   : > { %v14904_v23 = vpop.permute.xlu1 %8327 }
 0x463   : > { %v14906_v49 = vpop.permute.xlu0 %7649 }
 0x466   : > { %v6959_v60 = vpop.permute.xlu1 %6958 }
 0x467   : > { %v14908_v17 = vpop.permute.xlu0 %8325 }
 0x46a   : > { %v7298_v37 = vpop.permute.xlu1 %7297 }
 0x46b   : > { %v6957_v21 = vpop.permute.xlu0 %6956  ;;  %v7312_v14 = vsel %vm7309_vm15, %v7296_v31, %v7298_v37  ;;  %v7663_v31 = vsel %vm255_vm2, %v7646_v19, %v7648_v16 }
 0x46c   : > { %v6968_v41 = vsel %vm255_vm2, %v6955_v45, %v6957_v21  ;;  %v6969_v44 = vsel %vm255_vm2, %v6957_v21, %v6959_v60 }
 0x46d   : > { %13202 = vmatprep.subr.msk.mxu0 %vm259_vm1, %v6969_v44 }
 0x46e   : > { %v7654_v48 = vpop.permute.xlu1 %7653  ;;  %13203 = vmatpush1.msk.msra.mxu0 %vm259_vm1, %v6968_v41 }
 0x46f   : > { %13209 = vmatprep.subr.msk.mxu0 %vm259_vm1, %v7311_v27  ;;  %v7300_v61 = vpop.permute.xlu0 %7299  ;;  %13204 = vmatmul.mubr.msk.f32.vlgmr.msra.gmra.mrb[10].mxu0 %vm255_vm2, %v13182_v20 }
 0x470   : > { %13210 = vmatpush1.msk.msra.mxu0 %vm259_vm1, %v7310_v51  ;;  %7401 = vmatprep.mubr.f32.mxu0 %v14340_v42  ;;  %v7313_v28 = vsel %vm7309_vm15, %v7298_v37, %v7300_v61  ;;  %v13221_v37 = vld [vmem:[%s15550_s1 + $0x54] sm:$0xf] }
 0x472   : > { %v6963_v29 = vpop.permute.xlu1 %6962 }
 0x473   : > { %v7652_v7 = vpop.permute.xlu0 %7651  ;;  %13211 = vmatmul.mubr.msk.f32.vlgmr.msra.gmra.mrb[8].mxu0 %vm255_vm2, %v13208_v33 }
 0x474   : > { %7543 = vmatprep.mubr.f32.mxu0 %v14340_v42 }
 0x476   : > { %v7302_v53 = vpop.permute.xlu1 %7301 }
 0x477   : > { %v6961_v0 = vpop.permute.xlu0 %6960  ;;  %v7314_v4 = vsel %vm7309_vm15, %v7300_v61, %v7302_v53  ;;  %v7666_v61 = vsel %vm255_vm2, %v7652_v7, %v7654_v48 }
 0x478   : > { %v6970_v34 = vsel %vm255_vm2, %v6959_v60, %v6961_v0  ;;  %v6971_v39 = vsel %vm255_vm2, %v6961_v0, %v6963_v29  ;;  %v7664_v60 = vsel %vm255_vm2, %v7648_v16, %v14906_v49  ;;  %v7665_v29 = vsel %vm255_vm2, %v14906_v49, %v7652_v7  ;;  %v13234_v49 = vld [vmem:[%s15550_s1 + $0x58] sm:$0xf] }
 0x479   : > { %13205 = vmatprep.subr.msk.mxu1 %vm259_vm1, %v6971_v39  ;;  %v8342_v39 = vsel %vm7309_vm15, %v14908_v17, %v14904_v23 }
 0x47a   : > { %v7658_v45 = vpop.permute.xlu1 %7657  ;;  %13206 = vmatpush1.msk.msra.mxu1 %vm259_vm1, %v6970_v34  ;;  %v14983_v34 = vld [vmem:[#allocation2] sm:$0xff] }
 0x47b   : > { %13212 = vmatprep.subr.msk.mxu1 %vm259_vm1, %v7313_v28  ;;  %v7304_v46 = vpop.permute.xlu0 %7303  ;;  %13207 = vmatmul.mubr.msk.f32.vlgmr.msra.gmra.mrb[10].mxu1 %vm255_vm2, %v13182_v20  ;;  %v8341_v28 = vsel %vm7309_vm15, %v14896_v40, %v14908_v17 }
 0x47c   : > { %v7315_v32 = vsel %vm7309_vm15, %v7302_v53, %v7304_v46  ;;  %13213 = vmatpush1.msk.msra.mxu1 %vm259_vm1, %v7312_v14  ;;  %7472 = vmatprep.mubr.f32.mxu1 %v14340_v42  ;;  %v13247_v14 = vld [vmem:[%s15550_s1 + $0x5c] sm:$0xf] }
 0x47d   : > { %13215 = vmatprep.subr.msk.mxu0 %vm259_vm1, %v7315_v32 }
 0x47e   : > { %v7662_v21 = vpop.permute.xlu1 %7661  ;;  %13216 = vmatpush1.msk.msra.mxu0 %vm259_vm1, %v7314_v4 }
 0x47f   : > { %13217 = vmatmul.mubr.msk.f32.vlgmr.msra.gmra.mrb[10].mxu0 %vm255_vm2, %v13208_v33  ;;  %13222 = vmatprep.subr.msk.mxu0 %vm259_vm1, %v7664_v60  ;;  %v7308_v20 = vpop.permute.xlu0 %7307 }
 0x480   : > { %13214 = vmatmul.mubr.msk.f32.vlgmr.msra.gmra.mrb[8].mxu1 %vm255_vm2, %v13208_v33  ;;  %13223 = vmatpush1.msk.msra.mxu0 %vm259_vm1, %v7663_v31 }
 0x481   : > { %7754 = vmatprep.mubr.f32.mxu0 %v14340_v42  ;;  %7614 = vmatprep.mubr.f32.mxu1 %v14340_v42 }
 0x482   : > { %v7306_v41 = vpop.permute.xlu1 %7305 }
 0x483   : > { %v7316_v19 = vsel %vm7309_vm15, %v7304_v46, %v7306_v41  ;;  %v7317_v16 = vsel %vm7309_vm15, %v7306_v41, %v7308_v20  ;;  %13224 = vmatmul.mubr.msk.f32.vlgmr.msra.gmra.mrb[8].mxu0 %vm255_vm2, %v13221_v37  ;;  %v7656_v44 = vpop.permute.xlu0 %7655  ;;  %v13260_v41 = vld [vmem:[%s15550_s1 + $0x60] sm:$0xf] }
 0x484   : > { %13218 = vmatprep.subr.msk.mxu1 %vm259_vm1, %v7317_v16  ;;  %v7667_v27 = vsel %vm255_vm2, %v7654_v48, %v7656_v44  ;;  %v7668_v51 = vsel %vm255_vm2, %v7656_v44, %v7658_v45  ;;  %7896 = vmatprep.mubr.f32.mxu0 %v14340_v42 }
 0x485   : > { %13219 = vmatpush1.msk.msra.mxu1 %vm259_vm1, %v7316_v19  ;;  %13228 = vmatprep.subr.msk.mxu0 %vm259_vm1, %v7668_v51 }
 0x486   : > { %v8330_v53 = vpop.permute.xlu1 %8329  ;;  %13225 = vmatprep.subr.msk.mxu1 %vm259_vm1, %v7666_v61  ;;  %13220 = vmatmul.mubr.msk.f32.vlgmr.msra.gmra.mrb[10].mxu1 %vm255_vm2, %v13208_v33 }
 0x487   : > { %13226 = vmatpush1.msk.msra.mxu1 %vm259_vm1, %v7665_v29  ;;  %13229 = vmatpush1.msk.msra.mxu0 %vm259_vm1, %v7667_v27  ;;  %v8332_v0 = vpop.permute.xlu0 %8331  ;;  %v8343_v4 = vsel %vm7309_vm15, %v14904_v23, %v8330_v53 }
 0x488   : > { %13230 = vmatmul.mubr.msk.f32.vlgmr.msra.gmra.mrb[10].mxu0 %vm255_vm2, %v13221_v37  ;;  %13235 = vmatprep.subr.msk.mxu0 %vm259_vm1, %v14765_v26  ;;  %v8344_v17 = vsel %vm7309_vm15, %v8330_v53, %v8332_v0 }
 0x489   : > { %13236 = vmatpush1.msk.msra.mxu0 %vm259_vm1, %v14710_v36  ;;  %7825 = vmatprep.mubr.f32.mxu1 %v14340_v42 }
 0x48a   : > { %v8334_v48 = vpop.permute.xlu1 %8333  ;;  %13241 = vmatprep.subr.msk.mxu0 %vm259_vm1, %v14811_v56  ;;  %8079 = vmatprep.mubr.f32.mxu0 %v14340_v42 }
 0x48b   : > { %13227 = vmatmul.mubr.msk.f32.vlgmr.msra.gmra.mrb[8].mxu1 %vm255_vm2, %v13221_v37  ;;  %v7660_v33 = vpop.permute.xlu0 %7659  ;;  %v8345_v40 = vsel %vm7309_vm15, %v8332_v0, %v8334_v48 }
 0x48c   : > { %13237 = vmatmul.mubr.msk.f32.vlgmr.msra.gmra.mrb[8].mxu0 %vm255_vm2, %v13234_v49  ;;  %v7669_v26 = vsel %vm255_vm2, %v7658_v45, %v7660_v33  ;;  %v7670_v7 = vsel %vm255_vm2, %v7660_v33, %v7662_v21  ;;  %7967 = vmatprep.mubr.f32.mxu1 %v14983_v34 }
 0x48d   : > { %13242 = vmatpush1.msk.msra.mxu0 %vm259_vm1, %v14721_v58  ;;  %13231 = vmatprep.subr.msk.mxu1 %vm259_vm1, %v7670_v7 }
 0x48e   : > { %v8679_v42 = vpop.permute.xlu1 %8678  ;;  %13248 = vmatprep.subr.msk.mxu0 %vm259_vm1, %v8342_v39  ;;  %13232 = vmatpush1.msk.msra.mxu1 %vm259_vm1, %v7669_v26 }
 0x48f   : > { %8221 = vmatprep.mubr.f32.mxu0 %v14983_v34  ;;  %13233 = vmatmul.mubr.msk.f32.vlgmr.msra.gmra.mrb[10].mxu1 %vm255_vm2, %v13221_v37  ;;  %v8336_v56 = vpop.permute.xlu0 %8335 }
 0x490   : > { %13238 = vmatprep.subr.msk.mxu1 %vm259_vm1, %v14798_v24  ;;  %13243 = vmatmul.mubr.msk.f32.vlgmr.msra.gmra.mrb[10].mxu0 %vm255_vm2, %v13234_v49  ;;  %v8346_v45 = vsel %vm7309_vm15, %v8334_v48, %v8336_v56  ;;  %v13273_v48 = vld [vmem:[%s15550_s1 + $0x64] sm:$0xf] }
 0x491   : > { %13249 = vmatpush1.msk.msra.mxu0 %vm259_vm1, %v8341_v28  ;;  %13239 = vmatpush1.msk.msra.mxu1 %vm259_vm1, %v14719_v55 }
 0x492   : > { %v8677_v46 = vpop.permute.xlu1 %8676  ;;  %13244 = vmatprep.subr.msk.mxu1 %vm259_vm1, %v14848_v62  ;;  %13254 = vmatprep.subr.msk.mxu0 %vm259_vm1, %v8346_v45 }
 0x493   : > { %8150 = vmatprep.mubr.f32.mxu1 %v14983_v34  ;;  %8432 = vmatprep.mubr.f32.mxu0 %v14983_v34  ;;  %v8340_v24 = vpop.permute.xlu0 %8339  ;;  %v8694_v21 = vsel %vm255_vm2, %v8677_v46, %v8679_v42 }
 0x494   : > { %13240 = vmatmul.mubr.msk.f32.vlgmr.msra.gmra.mrb[8].mxu1 %vm255_vm2, %v13234_v49  ;;  %13250 = vmatmul.mubr.msk.f32.vlgmr.msra.gmra.mrb[8].mxu0 %vm255_vm2, %v13247_v14 }
 0x495   : > { %13245 = vmatpush1.msk.msra.mxu1 %vm259_vm1, %v14730_v11  ;;  %13255 = vmatpush1.msk.msra.mxu0 %vm259_vm1, %v8345_v40  ;;  %v15139_v40 = vld [vmem:[%s15550_s1 + $0x70] sm:$0xf] }
 0x496   : > { %v8685_v62 = vpop.permute.xlu1 %8684  ;;  %13251 = vmatprep.subr.msk.mxu1 %vm259_vm1, %v8344_v17  ;;  %8292 = vmatprep.mubr.f32.mxu1 %v14983_v34 }
 0x497   : > { %v8681_v32 = vpop.permute.xlu0 %8680  ;;  %8574 = vmatprep.mubr.f32.mxu0 %v14983_v34 }
 0x498   : > { %13246 = vmatmul.mubr.msk.f32.vlgmr.msra.gmra.mrb[10].mxu1 %vm255_vm2, %v13234_v49  ;;  %v8695_v60 = vsel %vm255_vm2, %v8679_v42, %v8681_v32  ;;  %13256 = vmatmul.mubr.msk.f32.vlgmr.msra.gmra.mrb[10].mxu0 %vm255_vm2, %v13247_v14 }
 0x499   : > { %13252 = vmatpush1.msk.msra.mxu1 %vm259_vm1, %v8343_v4  ;;  %13261 = vmatprep.subr.msk.mxu0 %vm259_vm1, %v8695_v60 }
 0x49a   : > { %v8338_v31 = vpop.permute.xlu1 %8337  ;;  %8503 = vmatprep.mubr.f32.mxu1 %v14983_v34  ;;  %13262 = vmatpush1.msk.msra.mxu0 %vm259_vm1, %v8694_v21 }
 0x49b   : > { %v8347_v20 = vsel %vm7309_vm15, %v8336_v56, %v8338_v31  ;;  %v8348_v23 = vsel %vm7309_vm15, %v8338_v31, %v8340_v24  ;;  %v8683_v37 = vpop.permute.xlu0 %8682  ;;  %8785 = vmatprep.mubr.f32.mxu0 %v14983_v34  ;;  %v15126_v24 = vcombine.high %v14983_v34, %v14983_v34 }
 0x49c   : > { %13257 = vmatprep.subr.msk.mxu1 %vm259_vm1, %v8348_v23  ;;  %13253 = vmatmul.mubr.msk.f32.vlgmr.msra.gmra.mrb[8].mxu1 %vm255_vm2, %v13247_v14  ;;  %v8697_v19 = vsel %vm255_vm2, %v8683_v37, %v8685_v62  ;;  %v8696_v27 = vsel %vm255_vm2, %v8681_v32, %v8683_v37 }
 0x49d   : > { %13258 = vmatpush1.msk.msra.mxu1 %vm259_vm1, %v8347_v20  ;;  %8645 = vmatprep.mubr.f32.mxu1 %v14983_v34 }
 0x49e   : > { %v8689_v16 = vpop.permute.xlu1 %8688  ;;  %13264 = vmatprep.subr.msk.mxu1 %vm259_vm1, %v8697_v19  ;;  %13263 = vmatmul.mubr.msk.f32.vlgmr.msra.gmra.mrb[8].mxu0 %vm255_vm2, %v13260_v41 }
 0x49f   : > { %v8687_v44 = vpop.permute.xlu0 %8686  ;;  %8927 = vmatprep.mubr.f32.mxu0 %v14983_v34  ;;  %10081 = vrot.lane.b32.xlu0 %v15126_v24, %s13774_s29 }
 0x4a0   : > { %13259 = vmatmul.mubr.msk.f32.vlgmr.msra.gmra.mrb[10].mxu1 %vm255_vm2, %v13247_v14  ;;  %v8698_v51 = vsel %vm255_vm2, %v8685_v62, %v8687_v44  ;;  %v8699_v61 = vsel %vm255_vm2, %v8687_v44, %v8689_v16 }
 0x4a1   : > { %13265 = vmatpush1.msk.msra.mxu1 %vm259_vm1, %v8696_v27  ;;  %13267 = vmatprep.subr.msk.mxu0 %vm259_vm1, %v8699_v61 }
 0x4a2   : > { %v8693_v29 = vpop.permute.xlu1 %8692  ;;  %8856 = vmatprep.mubr.f32.mxu1 %v14983_v34  ;;  %13268 = vmatpush1.msk.msra.mxu0 %vm259_vm1, %v8698_v51 }
 0x4a3   : > { %13269 = vmatmul.mubr.msk.f32.vlgmr.msra.gmra.mrb[10].mxu0 %vm255_vm2, %v13260_v41  ;;  %13274 = vmatprep.subr.msk.mxu0 %vm259_vm1, %v14744_v5  ;;  %v8691_v53 = vpop.permute.xlu0 %8690 }
 0x4a4   : > { %13266 = vmatmul.mubr.msk.f32.vlgmr.msra.gmra.mrb[8].mxu1 %vm255_vm2, %v13260_v41  ;;  %v8700_v0 = vsel %vm255_vm2, %v8689_v16, %v8691_v53  ;;  %v8701_v49 = vsel %vm255_vm2, %v8691_v53, %v8693_v29  ;;  %13275 = vmatpush1.msk.msra.mxu0 %vm259_vm1, %v14739_v54 }
 0x4a5   : > { %13270 = vmatprep.subr.msk.mxu1 %vm259_vm1, %v8701_v49  ;;  %13280 = vmatprep.subr.msk.mxu0 %vm259_vm1, %v14771_v12 }
 0x4a6   : > { %v9359_v5 = vpop.permute.xlu1 %9358  ;;  %13271 = vmatpush1.msk.msra.mxu1 %vm259_vm1, %v8700_v0  ;;  %8998 = vmatprep.mubr.f32.mxu1 %v14983_v34 }
 0x4a7   : > { %9110 = vmatprep.mubr.f32.mxu0 %v14983_v34  ;;  %13277 = vmatprep.subr.msk.mxu1 %vm259_vm1, %v14752_v57  ;;  %v9357_v54 = vpop.permute.xlu0 %9356 }
 0x4a8   : > { %13272 = vmatmul.mubr.msk.f32.vlgmr.msra.gmra.mrb[10].mxu1 %vm255_vm2, %v13260_v41  ;;  %13276 = vmatmul.mubr.msk.f32.vlgmr.msra.gmra.mrb[8].mxu0 %vm255_vm2, %v13273_v48  ;;  %v9373_v12 = vsel %vm7309_vm15, %v9357_v54, %v9359_v5 }
 0x4a9   : > { %13281 = vmatpush1.msk.msra.mxu0 %vm259_vm1, %v14763_v8  ;;  %13278 = vmatpush1.msk.msra.mxu1 %vm259_vm1, %v14746_v10  ;;  %v13286_v10 = vld [vmem:[%s15550_s1 + $0x68] sm:$0xf] }
 0x4aa   : > { %v9361_v33 = vpop.permute.xlu1 %9360  ;;  %13283 = vmatprep.subr.msk.mxu1 %vm259_vm1, %v14877_v15  ;;  %13287 = vmatprep.subr.msk.mxu0 %vm259_vm1, %v9373_v12 }
 0x4ab   : > { %9181 = vmatprep.mubr.f32.mxu1 %v14983_v34  ;;  %9252 = vmatprep.mubr.f32.mxu0 %v14983_v34  ;;  %v9355_v57 = vpop.permute.xlu0 %9354 }
 0x4ac   : > { %13279 = vmatmul.mubr.msk.f32.vlgmr.msra.gmra.mrb[8].mxu1 %vm255_vm2, %v13273_v48  ;;  %13282 = vmatmul.mubr.msk.f32.vlgmr.msra.gmra.mrb[10].mxu0 %vm255_vm2, %v13273_v48  ;;  %v9372_v8 = vsel %vm7309_vm15, %v9355_v57, %v9357_v54 }
 0x4ad   : > { %13284 = vmatpush1.msk.msra.mxu1 %vm259_vm1, %v14869_v59  ;;  %13288 = vmatpush1.msk.msra.mxu0 %vm259_vm1, %v9372_v8  ;;  %v9374_v59 = vsel %vm7309_vm15, %v9359_v5, %v9361_v33 }
 0x4ae   : > { %9323 = vmatprep.mubr.f32.mxu1 %v14983_v34  ;;  %9463 = vmatprep.mubr.f32.mxu0 %v14983_v34  ;;  %v9365_v26 = vpop.permute.xlu1 %9364 }
 0x4af   : > { %v9363_v15 = vpop.permute.xlu0 %9362  ;;  %10079 = vrot.lane.b32.xlu0 %v14983_v34, %s13774_s29 }
 0x4b0   : > { %13285 = vmatmul.mubr.msk.f32.vlgmr.msra.gmra.mrb[10].mxu1 %vm255_vm2, %v13273_v48  ;;  %13289 = vmatmul.mubr.msk.f32.vlgmr.msra.gmra.mrb[8].mxu0 %vm255_vm2, %v13286_v10  ;;  %v9375_v7 = vsel %vm7309_vm15, %v9361_v33, %v9363_v15  ;;  %v9376_v56 = vsel %vm7309_vm15, %v9363_v15, %v9365_v26 }
 0x4b1   : > { %13290 = vmatprep.subr.msk.mxu1 %vm259_vm1, %v9375_v7  ;;  %9534 = vmatprep.mubr.f32.mxu1 %v14983_v34 }
 0x4b2   : > { %13291 = vmatpush1.msk.msra.mxu1 %vm259_vm1, %v9374_v59  ;;  %9605 = vmatprep.mubr.f32.mxu0 %v14983_v34  ;;  %v9369_v28 = vpop.permute.xlu1 %9368 }
 0x4b3   : > { %v9367_v39 = vpop.permute.xlu0 %9366 }
 0x4b4   : > { %13292 = vmatmul.mubr.msk.f32.vlgmr.msra.gmra.mrb[8].mxu1 %vm255_vm2, %v13286_v10  ;;  %v9377_v42 = vsel %vm7309_vm15, %v9365_v26, %v9367_v39  ;;  %v9378_v46 = vsel %vm7309_vm15, %v9367_v39, %v9369_v28 }
 0x4b5   : > { %13293 = vmatprep.subr.msk.mxu0 %vm259_vm1, %v9377_v42  ;;  %9676 = vmatprep.mubr.f32.mxu1 %v14983_v34 }
 0x4b6   : > { %13294 = vmatpush1.msk.msra.mxu0 %vm259_vm1, %v9376_v56 }
 0x4b7   : > { %13295 = vmatmul.mubr.msk.f32.vlgmr.msra.gmra.mrb[10].mxu0 %vm255_vm2, %v13286_v10  ;;  %v9371_v45 = vpop.permute.xlu0 %9370  ;;  %13302 = vmatprep.subr.msk.mxu0 %vm259_vm1, %v14702_v9 }
 0x4b8   : > { %v9379_v14 = vsel %vm7309_vm15, %v9369_v28, %v9371_v45  ;;  %13303 = vmatpush1.msk.msra.mxu0 %vm259_vm1, %v14698_v52  ;;  %9850 = vmatprep.mubr.f32.mxu0 %v14983_v34 }
 0x4b9   : > { %13296 = vmatprep.subr.msk.mxu1 %vm259_vm1, %v9379_v14 }
 0x4ba   : > { %13297 = vmatpush1.msk.msra.mxu1 %vm259_vm1, %v9378_v46 }
 0x4bb   : > { %13298 = vmatmul.mubr.msk.f32.vlgmr.msra.gmra.mrb[10].mxu1 %vm255_vm2, %v13286_v10  ;;  %13304 = vmatmul.mubr.msk.f32.vlgmr.msra.gmra.mrb[12].mxu0 %vm255_vm2, %v15139_v40 }
 0x4bc   : > { %9921 = vmatprep.mubr.f32.mxu1 %v14983_v34  ;;  %9992 = vmatprep.mubr.f32.mxu0 %v14983_v34 }
 0x4c3   : > { %v9696_v17 = vpop.permute.xlu1 %9695 }
 0x583   : > { %v9465_v62 = vpop.f32.mrb[8].mxu0 }
 0x584   : > { %v9698_v32 = vadd.f32 %v9696_v17, %v9465_v62  ;;  %v9467_v9 = vpop.f32.mrb[9].mxu0 }
 0x585   : > { %v9699_v4 = vadd.f32 %v9696_v17, %v9467_v9 }
 0x586   : > { %v9706_v60 = vmax.f32 %v9698_v32, 0.0 }
 0x587   : > { %v9707_v21 = vmax.f32 %v9699_v4, 0.0  ;;  %v9536_v31 = vpop.f32.mrb[8].mxu1 }
 0x588   : > { %v9714_v52 = vmul.f32 %v9706_v60, %v14142_v63  ;;  %v9700_v20 = vadd.f32 %v9696_v17, %v9536_v31  ;;  %v9538_v23 = vpop.f32.mrb[9].mxu1 }
 0x589   : > { %v9715_v37 = vmul.f32 %v9707_v21, %v14144_v6  ;;  %v9701_v41 = vadd.f32 %v9696_v17, %v9538_v23 }
 0x58a   : > { %v9708_v19 = vmax.f32 %v9700_v20, 0.0  ;;  %v9607_v16 = vpop.f32.mrb[10].mxu0 }
 0x58b   : > { %v15146_v44 = vcombine.low %v9714_v52, %v9715_v37  ;;  %v9709_v27 = vmax.f32 %v9701_v41, 0.0  ;;  %v9702_v51 = vadd.f32 %v9696_v17, %v9607_v16  ;;  %v9609_v61 = vpop.f32.mrb[11].mxu0  ;;  %v15153_v48 = vcombine.low %v9715_v37, %v9715_v37  ;;  %v11445_v52 = vld [vmem:[#allocation2 + $0x2c] sm:$0xf]  ;;  %v11798_v37 = vld [vmem:[#allocation2 + $0x30] sm:$0xf] }
 0x58c   : > { %v9716_v29 = vmul.f32 %v9708_v19, %v14147_v13  ;;  %v9703_v53 = vadd.f32 %v9696_v17, %v9609_v61  ;;  %v12476_v19 = vld [vmem:[#allocation2 + $0x34] sm:$0xf]  ;;  %v10428_v61 = vpop.permute.xlu1 %10427 }
 0x58d   : > { %9738 = vst [vmem:[#allocation2 + $0xc] sm:$0xff] %v15146_v44  ;;  %v9717_v0 = vmul.f32 %v9709_v27, %v14150_v22  ;;  %v9710_v49 = vmax.f32 %v9702_v51, 0.0  ;;  %10429 = vrot.lane.b32.xlu0 %v15146_v44, %s13775_s30  ;;  %13305 = vmatprep.subr.msk.mxu1 %vm259_vm1, %v15153_v48  ;;  %v13707_v16 = vpack.i.bf16 %v12476_v19, %v14983_v34  ;;  %v13417_v27 = vld [vmem:[%s15551_s2 + $0xc] sm:$0xf]  ;;  %v10082_v51 = vpop.permute.xlu0 %10081 }
 0x58e   : > { %v9711_v5 = vmax.f32 %v9703_v53, 0.0  ;;  %v9678_v54 = vpop.f32.mrb[10].mxu1  ;;  %13306 = vmatpush1.msk.msra.mxu1 %vm259_vm1, %v15146_v44 }
 0x58f   : > { %v15155_v12 = vcombine.low %v9716_v29, %v9717_v0  ;;  %v9718_v33 = vmul.f32 %v9710_v49, %v14155_v30  ;;  %v9704_v57 = vadd.f32 %v9696_v17, %v9678_v54  ;;  %v9680_v8 = vpop.f32.mrb[11].mxu1  ;;  %v15164_v7 = vcombine.low %v9717_v0, %v9717_v0  ;;  %13307 = vmatmul.mubr.msk.f32.vlgmr.msra.gmra.mrb[12].mxu1 %vm255_vm2, %v15139_v40 }
 0x590   : > { %v9719_v10 = vmul.f32 %v9711_v5, %v14159_v35  ;;  %v9705_v15 = vadd.f32 %v9696_v17, %v9680_v8  ;;  %10063 = vmatprep.mubr.f32.mxu1 %v14983_v34  ;;  %v10426_v53 = vpop.permute.xlu1 %10425 }
 0x591   : > { %9739 = vst [vmem:[#allocation2 + $0x14] sm:$0xff] %v15155_v12  ;;  %v9712_v26 = vmax.f32 %v9704_v57, 0.0  ;;  %13308 = vmatprep.subr.msk.mxu0 %vm259_vm1, %v15164_v7  ;;  %v10080_v29 = vpop.permute.xlu0 %10079 }
 0x592   : > { %v15168_v59 = vcombine.low %v9718_v33, %v9719_v10  ;;  %v9713_v39 = vmax.f32 %v9705_v15, 0.0  ;;  %13309 = vmatpush1.msk.msra.mxu0 %vm259_vm1, %v15155_v12  ;;  %v15178_v45 = vcombine.low %v9719_v10, %v9719_v10  ;;  %v15273_v33 = vld [vmem:[%s15550_s1 + $0x6c] sm:$0xf]  ;;  %v10098_v57 = vsel %vm10097_vm0, %v10080_v29, %v10082_v51  ;;  %v13339_v29 = vld [vmem:[%s15550_s1 + $0x78] sm:$0xf] }
 0x593   : > { %v9720_v42 = vmul.f32 %v9712_v26, %v14164_v43  ;;  %13310 = vmatmul.mubr.msk.f32.vlgmr.msra.gmra.mrb[14].mxu0 %vm255_vm2, %v15139_v40 }
 0x594   : > { %9740 = vst [vmem:[#allocation2 + $0x1c] sm:$0xff] %v15168_v59  ;;  %v9721_v56 = vmul.f32 %v9713_v39, %v14170_v18  ;;  %v9747_v28 = vld [vmem:[#allocation2 + $0x8] sm:$0xff]  ;;  %13311 = vmatprep.subr.msk.mxu1 %vm259_vm1, %v15178_v45  ;;  %10189 = vmatprep.mubr.f32.mxu0 %v14983_v34 }
 0x595   : > { %10083 = vrot.lane.b32.xlu1 %v9747_v28, %s13774_s29  ;;  %10779 = vrot.lane.b32.xlu0 %v9747_v28, %s13774_s29  ;;  %v10076_v46 = vcombine.high %v9747_v28, %v9747_v28 }
 0x596   : > { %v15182_v14 = vcombine.low %v9720_v42, %v9721_v56  ;;  %13312 = vmatpush1.msk.msra.mxu1 %vm259_vm1, %v15168_v59  ;;  %v15239_v20 = vcombine.low %v9721_v56, %v9721_v56 }
 0x597   : > { %13313 = vmatmul.mubr.msk.f32.vlgmr.msra.gmra.mrb[14].mxu1 %vm255_vm2, %v15139_v40 }
 0x598   : > { %9741 = vst [vmem:[#allocation2 + $0x24] sm:$0xff] %v15182_v14  ;;  %v9748_v17 = vld [vmem:[#allocation2 + $0x10] sm:$0xff]  ;;  %10260 = vmatprep.mubr.f32.mxu1 %v14983_v34 }
 0x599   : > { %10087 = vrot.lane.b32.xlu1 %v9748_v17, %s13774_s29  ;;  %10085 = vrot.lane.b32.xlu0 %v10076_v46, %s13774_s29  ;;  %v10077_v40 = vcombine.high %v9748_v17, %v9748_v17 }
 0x59b   : > { %v9749_v62 = vld [vmem:[#allocation2 + $0x18] sm:$0xff]  ;;  %v9750_v32 = vld [vmem:[#allocation2 + $0x20] sm:$0xf] }
 0x59c   : > { %v10078_v9 = vcombine.high %v9749_v62, %v9749_v62 }
 0x59d   : > { %10431 = vrot.lane.b32.xlu1 %v15153_v48, %s13775_s30  ;;  %10433 = vrot.lane.b32.xlu0 %v15155_v12, %s13775_s30 }
 0x59f   : > { %v10413_v4 = vld [vmem:[#allocation2 + $0x24] sm:$0xf]  ;;  %v10767_v21 = vld [vmem:[#allocation2 + $0x28] sm:$0xf] }
 0x5a0   : > { %v10766_v60 = vld [vmem:[#allocation2 + $0x20] sm:$0xff]  ;;  %v11797_v23 = vld [vmem:[#allocation2 + $0x28] sm:$0xff] }
 0x5a1   : > { %10783 = vrot.lane.b32.xlu1 %v9748_v17, %s13774_s29  ;;  %10781 = vrot.lane.b32.xlu0 %v10076_v46, %s13774_s29  ;;  %v10778_v31 = vcombine.high %v10766_v60, %v10766_v60  ;;  %v11809_v41 = vcombine.high %v11797_v23, %v11797_v23 }
 0x5a5   : > { %11459 = vrot.lane.b32.xlu1 %v15153_v48, %s13775_s30  ;;  %11461 = vrot.lane.b32.xlu0 %v15155_v12, %s13775_s30 }
 0x5a9   : > { %10089 = vrot.lane.b32.xlu1 %v10077_v40, %s13774_s29  ;;  %10091 = vrot.lane.b32.xlu0 %v9749_v62, %s13774_s29 }
 0x5ad   : > { %10437 = vrot.lane.b32.xlu1 %v15168_v59, %s13775_s30  ;;  %10095 = vrot.lane.b32.xlu0 %v9750_v32, %s13774_s29 }
 0x5b1   : > { %10787 = vrot.lane.b32.xlu1 %v9749_v62, %s13774_s29  ;;  %10435 = vrot.lane.b32.xlu0 %v15164_v7, %s13775_s30 }
 0x5b5   : > { %11463 = vrot.lane.b32.xlu1 %v15164_v7, %s13775_s30  ;;  %10785 = vrot.lane.b32.xlu0 %v10077_v40, %s13774_s29 }
 0x5b9   : > { %10093 = vrot.lane.b32.xlu1 %v10078_v9, %s13774_s29  ;;  %11465 = vrot.lane.b32.xlu0 %v15168_v59, %s13775_s30 }
 0x5bd   : > { %11457 = vrot.lane.b32.xlu1 %v15146_v44, %s13775_s30  ;;  %10439 = vrot.lane.b32.xlu0 %v15178_v45, %s13775_s30 }
 0x5c1   : > { %10441 = vrot.lane.b32.xlu1 %v10413_v4, %s13775_s30  ;;  %10791 = vrot.lane.b32.xlu0 %v10766_v60, %s13774_s29 }
 0x5c5   : > { %10789 = vrot.lane.b32.xlu1 %v10078_v9, %s13774_s29  ;;  %10795 = vrot.lane.b32.xlu0 %v10767_v21, %s13774_s29 }
 0x5c9   : > { %10793 = vrot.lane.b32.xlu1 %v10778_v31, %s13774_s29  ;;  %11467 = vrot.lane.b32.xlu0 %v15178_v45, %s13775_s30 }
 0x5cd   : > { %11469 = vrot.lane.b32.xlu1 %v15182_v14, %s13775_s30  ;;  %11812 = vrot.lane.b32.xlu0 %v10077_v40, %s13774_s29 }
 0x5d1   : > { %11473 = vrot.lane.b32.xlu1 %v11445_v52, %s13775_s30  ;;  %11816 = vrot.lane.b32.xlu0 %v10078_v9, %s13774_s29  ;;  %v13326_v52 = vld [vmem:[%s15550_s1 + $0x74] sm:$0xf] }
 0x5d5   : > { %11814 = vrot.lane.b32.xlu1 %v9749_v62, %s13774_s29  ;;  %11810 = vrot.lane.b32.xlu0 %v9748_v17, %s13774_s29 }
 0x5d9   : > { %11818 = vrot.lane.b32.xlu1 %v10766_v60, %s13774_s29  ;;  %11471 = vrot.lane.b32.xlu0 %v15239_v20, %s13775_s30  ;;  %v10444_v60 = vsel %vm10443_vm3, %v10426_v53, %v10428_v61 }
 0x5dd   : > { %11820 = vrot.lane.b32.xlu1 %v10778_v31, %s13774_s29  ;;  %11822 = vrot.lane.b32.xlu0 %v11797_v23, %s13774_s29 }
 0x5e1   : > { %11824 = vrot.lane.b32.xlu1 %v11809_v41, %s13774_s29  ;;  %11826 = vrot.lane.b32.xlu0 %v11798_v37, %s13774_s29 }
 0x5e5   : > { %12490 = vrot.lane.b32.xlu1 %v15164_v7, %s13775_s30  ;;  %12492 = vrot.lane.b32.xlu0 %v15168_v59, %s13775_s30 }
 0x5e9   : > { %12494 = vrot.lane.b32.xlu1 %v15178_v45, %s13775_s30  ;;  %12496 = vrot.lane.b32.xlu0 %v15182_v14, %s13775_s30 }
 0x5ed   : > { %12488 = vrot.lane.b32.xlu1 %v15155_v12, %s13775_s30  ;;  %12498 = vrot.lane.b32.xlu0 %v15239_v20, %s13775_s30 }
 0x5f1   : > { %13708 = vrot.lane.b32.xlu1 %v13707_v16, %s13775_s30  ;;  %12502 = vrot.lane.b32.xlu0 %v15126_v24, %s13775_s30  ;;  %s15528_s30 = scalar_lea.vmem %s15553_s4, %s13420_s17 }
 0x5f5   : > { %12829 = vperm.xlu1 %13706, %v13417_v27  }
 0x5ff   : > { %v15267_v0 = vpop.permute.xlu0 %10429 }
 0x600   : > { %v10445_v4 = vsel %vm10443_vm3, %v10428_v61, %v15267_v0 }
 0x607   : > { %v10084_v49 = vpop.permute.xlu1 %10083  ;;  %v10780_v5 = vpop.permute.xlu0 %10779 }
 0x608   : > { %v10099_v54 = vsel %vm10097_vm0, %v10082_v51, %v10084_v49 }
 0x609   : > { %13314 = vmatprep.subr.msk.mxu0 %vm259_vm1, %v10099_v54 }
 0x60a   : > { %13315 = vmatpush1.msk.msra.mxu0 %vm259_vm1, %v10098_v57 }
 0x60b   : > { %v10088_v8 = vpop.permute.xlu1 %10087  ;;  %v10086_v10 = vpop.permute.xlu0 %10085  ;;  %13316 = vmatmul.mubr.msk.f32.vlgmr.msra.gmra.mrb[12].mxu0 %vm255_vm2, %v15273_v33 }
 0x60c   : > { %v10100_v15 = vsel %vm10097_vm0, %v10084_v49, %v10086_v10  ;;  %v10101_v26 = vsel %vm10097_vm0, %v10086_v10, %v10088_v8  ;;  %10331 = vmatprep.mubr.f32.mxu0 %v14983_v34 }
 0x60d   : > { %13317 = vmatprep.subr.msk.mxu1 %vm259_vm1, %v10101_v26 }
 0x60e   : > { %13318 = vmatpush1.msk.msra.mxu1 %vm259_vm1, %v10100_v15 }
 0x60f   : > { %v10432_v39 = vpop.permute.xlu1 %10431  ;;  %v10434_v42 = vpop.permute.xlu0 %10433  ;;  %13319 = vmatmul.mubr.msk.f32.vlgmr.msra.gmra.mrb[12].mxu1 %vm255_vm2, %v15273_v33 }
 0x610   : > { %10402 = vmatprep.mubr.f32.mxu1 %v14983_v34  ;;  %v10447_v57 = vsel %vm10443_vm3, %v10432_v39, %v10434_v42 }
 0x613   : > { %v15288_v56 = vpop.permute.xlu1 %10783  ;;  %v10782_v28 = vpop.permute.xlu0 %10781 }
 0x614   : > { %v10798_v16 = vsel %vm10097_vm0, %v10782_v28, %v15288_v56  ;;  %v10797_v27 = vsel %vm10097_vm0, %v10780_v5, %v10782_v28 }
 0x617   : > { %v15290_v46 = vpop.permute.xlu1 %11459  ;;  %v15292_v17 = vpop.permute.xlu0 %11461 }
 0x61b   : > { %v10090_v40 = vpop.permute.xlu1 %10089  ;;  %v10092_v62 = vpop.permute.xlu0 %10091 }
 0x61c   : > { %v10102_v32 = vsel %vm10097_vm0, %v10088_v8, %v10090_v40  ;;  %v10103_v9 = vsel %vm10097_vm0, %v10090_v40, %v10092_v62  ;;  %v10446_v8 = vsel %vm10443_vm3, %v15267_v0, %v10432_v39 }
 0x61d   : > { %13320 = vmatprep.subr.msk.mxu0 %vm259_vm1, %v10103_v9 }
 0x61e   : > { %13321 = vmatpush1.msk.msra.mxu0 %vm259_vm1, %v10102_v32 }
 0x61f   : > { %v10438_v21 = vpop.permute.xlu1 %10437  ;;  %13327 = vmatprep.subr.msk.mxu0 %vm259_vm1, %v10445_v4  ;;  %v10096_v31 = vpop.permute.xlu0 %10095  ;;  %13322 = vmatmul.mubr.msk.f32.vlgmr.msra.gmra.mrb[14].mxu0 %vm255_vm2, %v15273_v33 }
 0x620   : > { %13328 = vmatpush1.msk.msra.mxu0 %vm259_vm1, %v10444_v60  ;;  %10535 = vmatprep.mubr.f32.mxu0 %v14983_v34 }
 0x623   : > { %v10788_v23 = vpop.permute.xlu1 %10787  ;;  %v10436_v37 = vpop.permute.xlu0 %10435  ;;  %13329 = vmatmul.mubr.msk.f32.vlgmr.msra.gmra.mrb[12].mxu0 %vm255_vm2, %v13326_v52 }
 0x624   : > { %v10448_v41 = vsel %vm10443_vm3, %v10434_v42, %v10436_v37  ;;  %v10449_v19 = vsel %vm10443_vm3, %v10436_v37, %v10438_v21  ;;  %10677 = vmatprep.mubr.f32.mxu0 %v14983_v34 }
 0x625   : > { %13333 = vmatprep.subr.msk.mxu0 %vm259_vm1, %v10449_v19 }
 0x626   : > { %13334 = vmatpush1.msk.msra.mxu0 %vm259_vm1, %v10448_v41 }
 0x627   : > { %v15318_v51 = vpop.permute.xlu1 %11463  ;;  %13340 = vmatprep.subr.msk.mxu0 %vm259_vm1, %v10798_v16  ;;  %v10786_v61 = vpop.permute.xlu0 %10785  ;;  %13335 = vmatmul.mubr.msk.f32.vlgmr.msra.gmra.mrb[14].mxu0 %vm255_vm2, %v13326_v52 }
 0x628   : > { %13341 = vmatpush1.msk.msra.mxu0 %vm259_vm1, %v10797_v27  ;;  %10888 = vmatprep.mubr.f32.mxu0 %v14983_v34  ;;  %v10799_v39 = vsel %vm10097_vm0, %v15288_v56, %v10786_v61 }
 0x62b   : > { %v10094_v53 = vpop.permute.xlu1 %10093  ;;  %v15327_v49 = vpop.permute.xlu0 %11465  ;;  %13342 = vmatmul.mubr.msk.f32.vlgmr.msra.gmra.mrb[12].mxu0 %vm255_vm2, %v13339_v29 }
 0x62c   : > { %v10104_v5 = vsel %vm10097_vm0, %v10092_v62, %v10094_v53  ;;  %v10105_v54 = vsel %vm10097_vm0, %v10094_v53, %v10096_v31  ;;  %11030 = vmatprep.mubr.f32.mxu0 %v14983_v34  ;;  %v13352_v31 = vld [vmem:[%s15550_s1 + $0x7c] sm:$0xf]  ;;  %v11478_v16 = vsel %vm10443_vm3, %v15318_v51, %v15327_v49  ;;  %v11477_v53 = vsel %vm10443_vm3, %v15292_v17, %v15318_v51 }
 0x62d   : > { %13323 = vmatprep.subr.msk.mxu1 %vm259_vm1, %v10105_v54 }
 0x62e   : > { %13324 = vmatpush1.msk.msra.mxu1 %vm259_vm1, %v10104_v5 }
 0x62f   : > { %v11458_v10 = vpop.permute.xlu1 %11457  ;;  %13325 = vmatmul.mubr.msk.f32.vlgmr.msra.gmra.mrb[14].mxu1 %vm255_vm2, %v15273_v33  ;;  %13330 = vmatprep.subr.msk.mxu1 %vm259_vm1, %v10447_v57  ;;  %v10440_v15 = vpop.permute.xlu0 %10439  ;;  %v10800_v33 = vsel %vm10097_vm0, %v10786_v61, %v10788_v23  ;;  %v13365_v61 = vld [vmem:[%s15550_s1 + $0x80] sm:$0xf] }
 0x630   : > { %13331 = vmatpush1.msk.msra.mxu1 %vm259_vm1, %v10446_v8  ;;  %10606 = vmatprep.mubr.f32.mxu1 %v14983_v34  ;;  %v10450_v0 = vsel %vm10443_vm3, %v10438_v21, %v10440_v15  ;;  %v11475_v19 = vsel %vm10443_vm3, %v11458_v10, %v15290_v46  ;;  %v13378_v10 = vld [vmem:[%s15550_s1 + $0x84] sm:$0xf] }
 0x633   : > { %v10442_v26 = vpop.permute.xlu1 %10441  ;;  %13332 = vmatmul.mubr.msk.f32.vlgmr.msra.gmra.mrb[12].mxu1 %vm255_vm2, %v13326_v52  ;;  %v10792_v42 = vpop.permute.xlu0 %10791 }
 0x634   : > { %v10451_v28 = vsel %vm10443_vm3, %v10440_v15, %v10442_v26  ;;  %10748 = vmatprep.mubr.f32.mxu1 %v14983_v34 }
 0x635   : > { %13336 = vmatprep.subr.msk.mxu1 %vm259_vm1, %v10451_v28 }
 0x636   : > { %13337 = vmatpush1.msk.msra.mxu1 %vm259_vm1, %v10450_v0 }
 0x637   : > { %v10790_v40 = vpop.permute.xlu1 %10789  ;;  %13338 = vmatmul.mubr.msk.f32.vlgmr.msra.gmra.mrb[14].mxu1 %vm255_vm2, %v13326_v52  ;;  %13343 = vmatprep.subr.msk.mxu1 %vm259_vm1, %v10800_v33  ;;  %v10796_v62 = vpop.permute.xlu0 %10795 }
 0x638   : > { %v10801_v32 = vsel %vm10097_vm0, %v10788_v23, %v10790_v40  ;;  %v10802_v9 = vsel %vm10097_vm0, %v10790_v40, %v10792_v42  ;;  %13344 = vmatpush1.msk.msra.mxu1 %vm259_vm1, %v10799_v39  ;;  %10959 = vmatprep.mubr.f32.mxu1 %v14983_v34  ;;  %v11476_v23 = vsel %vm10443_vm3, %v15290_v46, %v15292_v17 }
 0x639   : > { %13346 = vmatprep.subr.msk.mxu0 %vm259_vm1, %v10802_v9  ;;  %v13391_v9 = vld [vmem:[%s15550_s1 + $0x88] sm:$0xf] }
 0x63a   : > { %13347 = vmatpush1.msk.msra.mxu0 %vm259_vm1, %v10801_v32 }
 0x63b   : > { %v10794_v4 = vpop.permute.xlu1 %10793  ;;  %13345 = vmatmul.mubr.msk.f32.vlgmr.msra.gmra.mrb[12].mxu1 %vm255_vm2, %v13339_v29  ;;  %13348 = vmatmul.mubr.msk.f32.vlgmr.msra.gmra.mrb[14].mxu0 %vm255_vm2, %v13339_v29  ;;  %v11468_v56 = vpop.permute.xlu0 %11467 }
 0x63c   : > { %v10803_v60 = vsel %vm10097_vm0, %v10792_v42, %v10794_v4  ;;  %13353 = vmatprep.subr.msk.mxu0 %vm259_vm1, %v15153_v48  ;;  %v10804_v21 = vsel %vm10097_vm0, %v10794_v4, %v10796_v62  ;;  %11101 = vmatprep.mubr.f32.mxu1 %v14983_v34  ;;  %v11479_v5 = vsel %vm10443_vm3, %v15327_v49, %v11468_v56 }
 0x63d   : > { %13354 = vmatpush1.msk.msra.mxu0 %vm259_vm1, %v15146_v44  ;;  %13349 = vmatprep.subr.msk.mxu1 %vm259_vm1, %v10804_v21 }
 0x63e   : > { %13359 = vmatprep.subr.msk.mxu0 %vm259_vm1, %v15178_v45  ;;  %13350 = vmatpush1.msk.msra.mxu1 %vm259_vm1, %v10803_v60 }
 0x63f   : > { %11213 = vmatprep.mubr.f32.mxu0 %v14983_v34  ;;  %v11470_v48 = vpop.permute.xlu1 %11469  ;;  %13351 = vmatmul.mubr.msk.f32.vlgmr.msra.gmra.mrb[14].mxu1 %vm255_vm2, %v13339_v29  ;;  %v11813_v52 = vpop.permute.xlu0 %11812 }
 0x640   : > { %13355 = vmatmul.mubr.msk.f32.vlgmr.msra.gmra.mrb[12].mxu0 %vm255_vm2, %v13352_v31  ;;  %13356 = vmatprep.subr.msk.mxu1 %vm259_vm1, %v15164_v7  ;;  %v11480_v27 = vsel %vm10443_vm3, %v11468_v56, %v11470_v48 }
 0x641   : > { %13360 = vmatpush1.msk.msra.mxu0 %vm259_vm1, %v15168_v59  ;;  %13357 = vmatpush1.msk.msra.mxu1 %vm259_vm1, %v15155_v12 }
 0x642   : > { %13366 = vmatprep.subr.msk.mxu0 %vm259_vm1, %v11476_v23  ;;  %13362 = vmatprep.subr.msk.mxu1 %vm259_vm1, %v15239_v20 }
 0x643   : > { %11284 = vmatprep.mubr.f32.mxu1 %v14983_v34  ;;  %11355 = vmatprep.mubr.f32.mxu0 %v14983_v34  ;;  %v11474_v37 = vpop.permute.xlu1 %11473  ;;  %v11817_v41 = vpop.permute.xlu0 %11816 }
 0x644   : > { %13358 = vmatmul.mubr.msk.f32.vlgmr.msra.gmra.mrb[12].mxu1 %vm255_vm2, %v13352_v31  ;;  %13361 = vmatmul.mubr.msk.f32.vlgmr.msra.gmra.mrb[14].mxu0 %vm255_vm2, %v13352_v31 }
 0x645   : > { %13363 = vmatpush1.msk.msra.mxu1 %vm259_vm1, %v15182_v14  ;;  %13367 = vmatpush1.msk.msra.mxu0 %vm259_vm1, %v11475_v19 }
 0x646   : > { %13369 = vmatprep.subr.msk.mxu1 %vm259_vm1, %v11478_v16  ;;  %13372 = vmatprep.subr.msk.mxu0 %vm259_vm1, %v11480_v27 }
 0x647   : > { %11426 = vmatprep.mubr.f32.mxu1 %v14983_v34  ;;  %11566 = vmatprep.mubr.f32.mxu0 %v14983_v34  ;;  %v11815_v46 = vpop.permute.xlu1 %11814  ;;  %v11811_v29 = vpop.permute.xlu0 %11810 }
 0x648   : > { %v11829_v54 = vsel %vm10097_vm0, %v11813_v52, %v11815_v46  ;;  %13364 = vmatmul.mubr.msk.f32.vlgmr.msra.gmra.mrb[14].mxu1 %vm255_vm2, %v13352_v31  ;;  %13368 = vmatmul.mubr.msk.f32.vlgmr.msra.gmra.mrb[12].mxu0 %vm255_vm2, %v13365_v61  ;;  %v11828_v51 = vsel %vm10097_vm0, %v11811_v29, %v11813_v52  ;;  %v11830_v28 = vsel %vm10097_vm0, %v11815_v46, %v11817_v41  ;;  %v13404_v31 = vld [vmem:[%s15550_s1 + $0x8c] sm:$0xf] }
 0x649   : > { %13370 = vmatpush1.msk.msra.mxu1 %vm259_vm1, %v11477_v53  ;;  %13373 = vmatpush1.msk.msra.mxu0 %vm259_vm1, %v11479_v5 }
 0x64a   : > { %13379 = vmatprep.subr.msk.mxu0 %vm259_vm1, %v11829_v54  ;;  %11708 = vmatprep.mubr.f32.mxu0 %v14983_v34 }
 0x64b   : > { %v11819_v57 = vpop.permute.xlu1 %11818  ;;  %11637 = vmatprep.mubr.f32.mxu1 %v14983_v34  ;;  %v11472_v17 = vpop.permute.xlu0 %11471 }
 0x64c   : > { %13374 = vmatmul.mubr.msk.f32.vlgmr.msra.gmra.mrb[14].mxu0 %vm255_vm2, %v13365_v61  ;;  %13371 = vmatmul.mubr.msk.f32.vlgmr.msra.gmra.mrb[12].mxu1 %vm255_vm2, %v13365_v61  ;;  %v11481_v49 = vsel %vm10443_vm3, %v11470_v48, %v11472_v17  ;;  %v11482_v8 = vsel %vm10443_vm3, %v11472_v17, %v11474_v37  ;;  %v11831_v15 = vsel %vm10097_vm0, %v11817_v41, %v11819_v57 }
 0x64d   : > { %13380 = vmatpush1.msk.msra.mxu0 %vm259_vm1, %v11828_v51  ;;  %13375 = vmatprep.subr.msk.mxu1 %vm259_vm1, %v11482_v8  ;;  %v3430_v17 = vadd.f32 %v14152_v25, %v13823_v1 }
 0x64e   : > { %13376 = vmatpush1.msk.msra.mxu1 %vm259_vm1, %v11481_v49  ;;  %11779 = vmatprep.mubr.f32.mxu1 %v14983_v34 }
 0x64f   : > { %v11821_v26 = vpop.permute.xlu1 %11820  ;;  %11919 = vmatprep.mubr.f32.mxu0 %v14983_v34  ;;  %13382 = vmatprep.subr.msk.mxu1 %vm259_vm1, %v11831_v15  ;;  %v11823_v42 = vpop.permute.xlu0 %11822 }
 0x650   : > { %v11832_v0 = vsel %vm10097_vm0, %v11819_v57, %v11821_v26  ;;  %13377 = vmatmul.mubr.msk.f32.vlgmr.msra.gmra.mrb[14].mxu1 %vm255_vm2, %v13365_v61  ;;  %13381 = vmatmul.mubr.msk.f32.vlgmr.msra.gmra.mrb[12].mxu0 %vm255_vm2, %v13378_v10  ;;  %v11833_v33 = vsel %vm10097_vm0, %v11821_v26, %v11823_v42  ;;  %v3431_v26 = vadd.f32 %v14161_v38, %v13825_v2 }
 0x651   : > { %13383 = vmatpush1.msk.msra.mxu1 %vm259_vm1, %v11830_v28  ;;  %13385 = vmatprep.subr.msk.mxu0 %vm259_vm1, %v11833_v33 }
 0x652   : > { %11990 = vmatprep.mubr.f32.mxu1 %v14983_v34  ;;  %13386 = vmatpush1.msk.msra.mxu0 %vm259_vm1, %v11832_v0 }
 0x653   : > { %v11825_v39 = vpop.permute.xlu1 %11824  ;;  %12061 = vmatprep.mubr.f32.mxu0 %v14983_v34  ;;  %13392 = vmatprep.subr.msk.mxu0 %vm259_vm1, %v15164_v7  ;;  %v11827_v40 = vpop.permute.xlu0 %11826 }
 0x654   : > { %v11834_v62 = vsel %vm10097_vm0, %v11823_v42, %v11825_v39  ;;  %13384 = vmatmul.mubr.msk.f32.vlgmr.msra.gmra.mrb[12].mxu1 %vm255_vm2, %v13378_v10  ;;  %13387 = vmatmul.mubr.msk.f32.vlgmr.msra.gmra.mrb[14].mxu0 %vm255_vm2, %v13378_v10  ;;  %v11835_v32 = vsel %vm10097_vm0, %v11825_v39, %v11827_v40  ;;  %v6609_v42 = vadd.f32 %v14710_v36, %v3430_v17 }
 0x655   : > { %13393 = vmatpush1.msk.msra.mxu0 %vm259_vm1, %v15155_v12  ;;  %13388 = vmatprep.subr.msk.mxu1 %vm259_vm1, %v11835_v32  ;;  %v6610_v40 = vadd.f32 %v14719_v55, %v3431_v26 }
 0x656   : > { %13398 = vmatprep.subr.msk.mxu0 %vm259_vm1, %v15239_v20  ;;  %13389 = vmatpush1.msk.msra.mxu1 %vm259_vm1, %v11834_v62  ;;  %v9742_v1 = vadd.f32 %v15146_v44, %v6609_v42 }
 0x657   : > { %v12491_v7 = vpop.permute.xlu1 %12490  ;;  %12132 = vmatprep.mubr.f32.mxu1 %v14983_v34  ;;  %12244 = vmatprep.mubr.f32.mxu0 %v14983_v34  ;;  %v12493_v4 = vpop.permute.xlu0 %12492 }
 0x658   : > { %13390 = vmatmul.mubr.msk.f32.vlgmr.msra.gmra.mrb[14].mxu1 %vm255_vm2, %v13378_v10  ;;  %13394 = vmatmul.mubr.msk.f32.vlgmr.msra.gmra.mrb[12].mxu0 %vm255_vm2, %v13391_v9  ;;  %v12507_v56 = vsel %vm10443_vm3, %v12491_v7, %v12493_v4 }
 0x659   : > { %13395 = vmatprep.subr.msk.mxu1 %vm259_vm1, %v15178_v45  ;;  %13399 = vmatpush1.msk.msra.mxu0 %vm259_vm1, %v15182_v14 }
 0x65a   : > { %13396 = vmatpush1.msk.msra.mxu1 %vm259_vm1, %v15168_v59  ;;  %13405 = vmatprep.subr.msk.mxu0 %vm259_vm1, %v12507_v56 }
 0x65b   : > { %v12495_v20 = vpop.permute.xlu1 %12494  ;;  %12315 = vmatprep.mubr.f32.mxu1 %v14983_v34  ;;  %12386 = vmatprep.mubr.f32.mxu0 %v14983_v34  ;;  %v12497_v60 = vpop.permute.xlu0 %12496 }
 0x65c   : > { %13397 = vmatmul.mubr.msk.f32.vlgmr.msra.gmra.mrb[12].mxu1 %vm255_vm2, %v13391_v9  ;;  %13400 = vmatmul.mubr.msk.f32.vlgmr.msra.gmra.mrb[14].mxu0 %vm255_vm2, %v13391_v9  ;;  %v12509_v45 = vsel %vm10443_vm3, %v12495_v20, %v12497_v60  ;;  %v12508_v52 = vsel %vm10443_vm3, %v12493_v4, %v12495_v20  ;;  %v9743_v4 = vadd.f32 %v15155_v12, %v6610_v40 }
 0x65d   : > { %13401 = vmatprep.subr.msk.mxu1 %vm259_vm1, %v15126_v24  ;;  %12457 = vmatprep.mubr.f32.mxu1 %v14983_v34  ;;  %v3432_v20 = vadd.f32 %v14173_v47, %v13827_v3 }
 0x65e   : > { %13402 = vmatpush1.msk.msra.mxu1 %vm259_vm1, %v14983_v34  ;;  %12597 = vmatprep.mubr.f32.mxu0 %v14983_v34 }
 0x65f   : > { %v12489_v21 = vpop.permute.xlu1 %12488  ;;  %13408 = vmatprep.subr.msk.mxu1 %vm259_vm1, %v12509_v45  ;;  %v12499_v48 = vpop.permute.xlu0 %12498 }
 0x660   : > { %v12506_v23 = vsel %vm10443_vm3, %v12489_v21, %v12491_v7  ;;  %13403 = vmatmul.mubr.msk.f32.vlgmr.msra.gmra.mrb[14].mxu1 %vm255_vm2, %v13391_v9  ;;  %v12510_v46 = vsel %vm10443_vm3, %v12497_v60, %v12499_v48  ;;  %v15556_v60 = vld [vmem:[#allocation3_spill] sm:$0xff] }
 0x661   : > { %13406 = vmatpush1.msk.msra.mxu0 %vm259_vm1, %v12506_v23  ;;  %13409 = vmatpush1.msk.msra.mxu1 %vm259_vm1, %v12508_v52  ;;  %v3433_v12 = vadd.f32 %v14182_v50, %v15556_v60  ;;  %v6611_v23 = vadd.f32 %v14721_v58, %v3432_v20 }
 0x662   : > { %13407 = vmatmul.mubr.msk.f32.vlgmr.msra.gmra.mrb[12].mxu0 %vm255_vm2, %v13404_v31  ;;  %12668 = vmatprep.mubr.f32.mxu1 %v14983_v34 }
 0x663   : > { %v13709_v24 = vpop.permute.xlu1 %13708  ;;  %v12503_v37 = vpop.permute.xlu0 %12502  ;;  %12739 = vmatprep.mubr.f32.mxu0 %v14983_v34  ;;  %v9744_v50 = vadd.f32 %v15168_v59, %v6611_v23 }
 0x664   : > { %v13711_v41 = vunpack.i.h.bf16 %v13709_v24  ;;  %v13710_v19 = vunpack.i.l.bf16 %v13709_v24  ;;  %13410 = vmatmul.mubr.msk.f32.vlgmr.msra.gmra.mrb[12].mxu1 %vm255_vm2, %v13404_v31  ;;  %v6612_v24 = vadd.f32 %v14730_v11, %v3433_v12 }
 0x665   : > { %12810 = vmatprep.mubr.f32.mxu1 %v14983_v34 }
 0x666   : > { %v12511_v16 = vsel %vm10443_vm3, %v12499_v48, %v13710_v19  ;;  %v12512_v27 = vsel %vm10443_vm3, %v13710_v19, %v12503_v37  ;;  %v12513_v61 = vsel %vm10443_vm3, %v12503_v37, %v13711_v41  ;;  %v9745_v37 = vadd.f32 %v15182_v14, %v6612_v24 }
 0x667   : > { %13411 = vmatprep.subr.msk.mxu0 %vm259_vm1, %v12511_v16  ;;  %13414 = vmatprep.subr.msk.mxu1 %vm259_vm1, %v12513_v61 }
 0x668   : > { %13412 = vmatpush1.msk.msra.mxu0 %vm259_vm1, %v12510_v46  ;;  %13415 = vmatpush1.msk.msra.mxu1 %vm259_vm1, %v12512_v27 }
 0x669   : > { %13413 = vmatmul.mubr.msk.f32.vlgmr.msra.gmra.mrb[14].mxu0 %vm255_vm2, %v13404_v31  ;;  %13416 = vmatmul.mubr.msk.f32.vlgmr.msra.gmra.mrb[14].mxu1 %vm255_vm2, %v13404_v31 }
 0x674   : > { %v12830_v34 = vpop.permute.xlu1 %12829 }
 0x735   : > { %v12599_v29 = vpop.f32.mrb[12].mxu0 }
 0x736   : > { %v12832_v53 = vadd.f32 %v12830_v34, %v12599_v29  ;;  %v12601_v5 = vpop.f32.mrb[13].mxu0 }
 0x737   : > { %v12833_v54 = vadd.f32 %v12830_v34, %v12601_v5  ;;  %v12670_v57 = vpop.f32.mrb[12].mxu1 }
 0x738   : > { %v12840_v51 = vmax.f32 %v12832_v53, 0.0  ;;  %v12834_v49 = vadd.f32 %v12830_v34, %v12670_v57  ;;  %v12672_v8 = vpop.f32.mrb[13].mxu1 }
 0x739   : > { %v12841_v10 = vmax.f32 %v12833_v54, 0.0  ;;  %v12835_v15 = vadd.f32 %v12830_v34, %v12672_v8 }
 0x73a   : > { %v12848_v28 = vmul.f32 %v12840_v51, %v14142_v63  ;;  %v12842_v0 = vmax.f32 %v12834_v49, 0.0 }
 0x73b   : > { %v12849_v33 = vmul.f32 %v12841_v10, %v14144_v6  ;;  %v12843_v39 = vmax.f32 %v12835_v15, 0.0 }
 0x73c   : > { %v12850_v25 = vmul.f32 %v12842_v0, %v14147_v13  ;;  %v12741_v62 = vpop.f32.mrb[14].mxu0  ;;  %v12812_v32 = vpop.f32.mrb[14].mxu1 }
 0x73d   : > { %v12864_v9 = vcombine.low %v12848_v28, %v12849_v33  ;;  %v12851_v2 = vmul.f32 %v12843_v39, %v14150_v22  ;;  %v12836_v38 = vadd.f32 %v12830_v34, %v12741_v62  ;;  %v12743_v36 = vpop.f32.mrb[15].mxu0  ;;  %v12838_v7 = vadd.f32 %v12830_v34, %v12812_v32  ;;  %v12814_v63 = vpop.f32.mrb[15].mxu1 }
 0x73e   : > { %v12837_v6 = vadd.f32 %v12830_v34, %v12743_v36  ;;  %v12839_v13 = vadd.f32 %v12830_v34, %v12814_v63 }
 0x73f   : > { %12872 = vst [vmem:[#allocation2 + $0xc] sm:$0xff] %v12864_v9  ;;  %v12876_v55 = vadd.f32 %v12864_v9, %v9742_v1  ;;  %v12865_v44 = vcombine.low %v12850_v25, %v12851_v2  ;;  %v12844_v22 = vmax.f32 %v12836_v38, 0.0  ;;  %v12846_v56 = vmax.f32 %v12838_v7, 0.0 }
 0x740   : > { %v12845_v45 = vmax.f32 %v12837_v6, 0.0  ;;  %v12847_v21 = vmax.f32 %v12839_v13, 0.0 }
 0x741   : > { %12880 = vst [vmem:[%s15528_s30] sm:$0xff] %v12876_v55  ;;  %12873 = vst [vmem:[#allocation2 + $0x14] sm:$0xff] %v12865_v44  ;;  %v12877_v31 = vadd.f32 %v12865_v44, %v9743_v4  ;;  %v12852_v48 = vmul.f32 %v12844_v22, %v14155_v30  ;;  %v12854_v52 = vmul.f32 %v12846_v56, %v14164_v43 }
 0x742   : > { %v12853_v3 = vmul.f32 %v12845_v45, %v14159_v35  ;;  %v12855_v47 = vmul.f32 %v12847_v21, %v14170_v18 }
 0x743   : > { %12881 = vst [vmem:[%s15528_s30 + $0x8] sm:$0xff] %v12877_v31 }
 0x744   : > { %v12866_v41 = vcombine.low %v12852_v48, %v12853_v3  ;;  %v12867_v19 = vcombine.low %v12854_v52, %v12855_v47 }
 0x746   : > { %12874 = vst [vmem:[#allocation2 + $0x1c] sm:$0xff] %v12866_v41  ;;  %v12878_v30 = vadd.f32 %v12866_v41, %v9744_v50  ;;  %12875 = vst [vmem:[#allocation2 + $0x24] sm:$0xff] %v12867_v19  ;;  %v12879_v16 = vadd.f32 %v12867_v19, %v9745_v37 }
 0x748   : > { %12882 = vst [vmem:[%s15528_s30 + $0x10] sm:$0xff] %v12878_v30  ;;  %12883 = vst [vmem:[%s15528_s30 + $0x18] sm:$0xff] %v12879_v16 }
 0x749 PF: > { %s14_s15 = sadd.s32 1, %s13755_s15  }
 0x74a   : > { %p11_p4 = scmp.ge.s32.totalorder %s14_s15, 4  }
 0x74c   :  { %13 = sbr.rel (!%p11_p4) target bundleno = 1 (0x1), region = 104 }

</bundles_post_ra>
